<compile_context>
chip_gen: v7x
topology: tpu7x:2x2x1
jax: 0.10.0
libtpu: 0.0.40
codegen_flags: <defaults>
</compile_context>

<pallas_src>
import math

import jax
import jax.numpy as jnp
from jax.experimental import pallas as pl
from jax.experimental.pallas import tpu as pltpu

# ---------------- model hyper-params (small, consistent with the module) -----
INPUT_SIZE = 20       # vocab size
EMBED_SIZE = 16
HIDDEN_SIZE = 32
N_LAYERS = 2
SEQ_LEN = 8
BATCH = 3


# ---------------------------- fused Pallas GRU kernel ------------------------
def _encoder_gru_kernel(emb_ref, maskc_ref,
                        wih0_ref, bih0_ref, whh0_ref, bhh0_ref,
                        wih1_ref, bih1_ref, whh1_ref, bhh1_ref,
                        out_ref, hid_ref,
                        gx_scr, act_scr):
    """Whole 2-layer bidirectional GRU, fully VMEM-resident.

    Layouts (H = hidden size, H2 = 2H, G = 6H):
      emb_ref   (T*B, E)     flattened time-major embeddings
      maskc_ref (T*B, H2)    cols [0:H] = valid(t) for fwd, [H:2H] = valid(T-1-t) for bwd
      wih*_ref  (D_in, G)    gate-interleaved cols [r_f|r_b|z_f|z_b|n_f|n_b]
      whh*_ref  (H2, G)      block-diagonal (fwd rows -> fwd cols, bwd rows -> bwd cols)
      b*_ref    (1, G)
      out_ref   (T*B, H)     top-layer fwd+bwd sum (zero at padded steps)
      hid_ref   (2L, B, H)   [l0_fwd, l0_bwd, l1_fwd, l1_bwd]
      gx_scr    (T*B, G)     hoisted input projections for the current layer
      act_scr   (T*B, H2)    per-layer outputs [fwd H | bwd H] (reused by both layers)
    """
    H = out_ref.shape[1]
    B = hid_ref.shape[1]
    T = emb_ref.shape[0] // B
    H2 = 2 * H
    G = 3 * H2

    # fwd-gate column mask: True on cols belonging to the forward direction.
    col = jax.lax.broadcasted_iota(jnp.int32, (B, G), 1)
    fwd_cols = jnp.bitwise_and(col, H2 - 1) < H          # (col % H2) < H, H2 is 2^k

    def run_layer(x_flat, wih_ref, bih_ref, whh_ref, bhh_ref):
        # Hoisted input-to-hidden projection for every timestep: one MXU matmul.
        gx_scr[...] = (jnp.dot(x_flat, wih_ref[...],
                               preferred_element_type=jnp.float32)
                       + bih_ref[...])

        h = jnp.zeros((B, H2), jnp.float32)               # hidden=None -> zeros
        for s in range(T):                                # static, fully unrolled
            rf = pl.ds(s * B, B)                          # rows of time s   (fwd)
            rb = pl.ds((T - 1 - s) * B, B)                # rows of time T-1-s (bwd)

            # Combine fwd gate inputs from time s with bwd gate inputs from T-1-s.
            gx = jnp.where(fwd_cols, gx_scr[rf, :], gx_scr[rb, :])
            gh = (jnp.dot(h, whh_ref[...], preferred_element_type=jnp.float32)
                  + bhh_ref[...])

            r = jax.nn.sigmoid(gx[:, 0:H2] + gh[:, 0:H2])
            z = jax.nn.sigmoid(gx[:, H2:2 * H2] + gh[:, H2:2 * H2])
            n = jnp.tanh(gx[:, 2 * H2:3 * H2] + r * gh[:, 2 * H2:3 * H2])
            h_new = (1.0 - z) * n + z * h

            m = maskc_ref[rf, :] > 0.0                    # (B, H2) bool validity
            # per-step outputs go to VMEM scratch only (bulk HBM write at the end)
            act_scr[rf, 0:H] = jnp.where(m[:, 0:H], h_new[:, 0:H], 0.0)
            act_scr[rb, H:H2] = jnp.where(m[:, H:H2], h_new[:, H:H2], 0.0)
            h = jnp.where(m, h_new, h)                    # freeze h on padded steps
        return h

    # ---------------- layer 0 ----------------
    h0 = run_layer(emb_ref[...], wih0_ref, bih0_ref, whh0_ref, bhh0_ref)
    hid_ref[0] = h0[:, 0:H]
    hid_ref[1] = h0[:, H:H2]

    # ---------------- layer 1 ----------------
    # TODO(synk): training-mode inter-layer GRU dropout not applied (eval mode).
    x1 = act_scr[...]                                     # layer-0 outputs (T*B, 2H)
    h1 = run_layer(x1, wih1_ref, bih1_ref, whh1_ref, bhh1_ref)
    hid_ref[2] = h1[:, 0:H]
    hid_ref[3] = h1[:, H:H2]

    # outputs[:, :, :H] + outputs[:, :, H:]  ==  fwd_top + bwd_top  (one bulk store)
    out_ref[...] = act_scr[:, 0:H] + act_scr[:, H:H2]


def _full_spec(shape):
    nd = len(shape)
    return pl.BlockSpec(shape, lambda i, _nd=nd: (0,) * _nd)


# ------------------------------ parameter init --------------------------------
def init_params(key):
    params = {}
    k_emb, key = jax.random.split(key)
    emb = jax.random.normal(k_emb, (INPUT_SIZE, EMBED_SIZE), jnp.float32) * 0.1
    emb = emb.at[0].set(0.0)                     # padding_idx=0
    params["embedding"] = emb

    bound = 1.0 / math.sqrt(HIDDEN_SIZE)
    for layer in range(N_LAYERS):
        d_in = EMBED_SIZE if layer == 0 else 2 * HIDDEN_SIZE
        for direction in ("fwd", "bwd"):
            ks = jax.random.split(key, 5)
            key = ks[0]
            params[f"w_ih_l{layer}_{direction}"] = jax.random.uniform(
                ks[1], (d_in, 3 * HIDDEN_SIZE), jnp.float32, -bound, bound)
            params[f"w_hh_l{layer}_{direction}"] = jax.random.uniform(
                ks[2], (HIDDEN_SIZE, 3 * HIDDEN_SIZE), jnp.float32, -bound, bound)
            params[f"b_ih_l{layer}_{direction}"] = jax.random.uniform(
                ks[3], (1, 3 * HIDDEN_SIZE), jnp.float32, -bound, bound)
            params[f"b_hh_l{layer}_{direction}"] = jax.random.uniform(
                ks[4], (1, 3 * HIDDEN_SIZE), jnp.float32, -bound, bound)
    return params


# --------------------------- weight packing helpers ---------------------------
def _pack_dir_cols(wf, wb, H):
    """[r_f | r_b | z_f | z_b | n_f | n_b] along the last axis."""
    return jnp.concatenate(
        [wf[:, 0:H], wb[:, 0:H],
         wf[:, H:2 * H], wb[:, H:2 * H],
         wf[:, 2 * H:3 * H], wb[:, 2 * H:3 * H]], axis=1)


def _pack_layer(params, layer, H):
    wih = _pack_dir_cols(params[f"w_ih_l{layer}_fwd"],
                         params[f"w_ih_l{layer}_bwd"], H)           # (D_in, 6H)
    bih = _pack_dir_cols(params[f"b_ih_l{layer}_fwd"],
                         params[f"b_ih_l{layer}_bwd"], H)           # (1, 6H)
    bhh = _pack_dir_cols(params[f"b_hh_l{layer}_fwd"],
                         params[f"b_hh_l{layer}_bwd"], H)           # (1, 6H)
    whf = params[f"w_hh_l{layer}_fwd"]                               # (H, 3H)
    whb = params[f"w_hh_l{layer}_bwd"]
    zeros = jnp.zeros((H, H), jnp.float32)
    top = jnp.concatenate([whf[:, 0:H], zeros, whf[:, H:2 * H], zeros,
                           whf[:, 2 * H:3 * H], zeros], axis=1)
    bot = jnp.concatenate([zeros, whb[:, 0:H], zeros, whb[:, H:2 * H],
                           zeros, whb[:, 2 * H:3 * H]], axis=1)
    whh = jnp.concatenate([top, bot], axis=0)                        # (2H, 6H) block-diag
    return wih, bih, whh, bhh


# ------------------------------ forward pass ----------------------------------
@jax.jit
def encoder_rnn_forward(params, input_seqs, input_lengths):
    """Equivalent of EncoderRNN.forward(input_seqs, input_lengths, hidden=None).

    input_seqs    : (T, B) int32 token ids (time-major)
    input_lengths : (B,)   int32
    """
    T, B = input_seqs.shape
    H = HIDDEN_SIZE
    B_pad = ((B + 7) // 8) * 8                    # sublane-dense batch

    seqs_p = jnp.pad(input_seqs, ((0, 0), (0, B_pad - B)))
    lens_p = jnp.pad(input_lengths, (0, B_pad - B))   # length 0 -> stays all-zero

    embedded = jnp.take(params["embedding"], seqs_p, axis=0)         # (T, Bp, E)
    # em_dropout: eval-mode identity.
    # TODO(synk): training-mode dropout (embedding + inter-layer) not applied.

    valid = (jnp.arange(T)[:, None] < lens_p[None, :]).astype(jnp.float32)  # (T, Bp)
    mask_fwd = jnp.broadcast_to(valid[:, :, None], (T, B_pad, H))
    mask_bwd = jnp.broadcast_to(valid[::-1][:, :, None], (T, B_pad, H))
    maskc = jnp.concatenate([mask_fwd, mask_bwd], axis=-1)           # (T, Bp, 2H)

    emb_flat = embedded.reshape(T * B_pad, EMBED_SIZE)
    maskc_flat = maskc.reshape(T * B_pad, 2 * H)

    wih0, bih0, whh0, bhh0 = _pack_layer(params, 0, H)
    wih1, bih1, whh1, bhh1 = _pack_layer(params, 1, H)

    inputs = (emb_flat, maskc_flat,
              wih0, bih0, whh0, bhh0,
              wih1, bih1, whh1, bhh1)

    grid_spec = pltpu.PrefetchScalarGridSpec(
        num_scalar_prefetch=0,
        grid=(1,),                                 # single fused invocation
        in_specs=[_full_spec(a.shape) for a in inputs],
        out_specs=[
            _full_spec((T * B_pad, H)),
            _full_spec((2 * N_LAYERS, B_pad, H)),
        ],
        scratch_shapes=[
            pltpu.VMEM((T * B_pad, 6 * H), jnp.float32),   # hoisted gate inputs
            pltpu.VMEM((T * B_pad, 2 * H), jnp.float32),   # per-layer outputs
        ],
    )

    out_flat, hid = pl.pallas_call(
        _encoder_gru_kernel,
        grid_spec=grid_spec,
        out_shape=(
            jax.ShapeDtypeStruct((T * B_pad, H), jnp.float32),
            jax.ShapeDtypeStruct((2 * N_LAYERS, B_pad, H), jnp.float32),
        ),
        compiler_params=pltpu.CompilerParams(
            dimension_semantics=("arbitrary",)),
    )(*inputs)

    outputs = out_flat.reshape(T, B_pad, H)[:, :B, :]
    hidden = hid[:, :B, :]
    return outputs, hidden


# -------------------------- pure-JAX reference --------------------------------
def _gru_dir_ref(x, mask, w_ih, w_hh, b_ih, b_hh, reverse):
    T, B, _ = x.shape
    H = w_hh.shape[0]
    h = jnp.zeros((B, H), jnp.float32)
    outs = [None] * T
    order = range(T - 1, -1, -1) if reverse else range(T)
    for t in order:
        gx = x[t] @ w_ih + b_ih
        gh = h @ w_hh + b_hh
        r = jax.nn.sigmoid(gx[:, :H] + gh[:, :H])
        z = jax.nn.sigmoid(gx[:, H:2 * H] + gh[:, H:2 * H])
        n = jnp.tanh(gx[:, 2 * H:] + r * gh[:, 2 * H:])
        h_new = (1.0 - z) * n + z * h
        m = mask[t]
        outs[t] = jnp.where(m > 0, h_new, 0.0)
        h = jnp.where(m > 0, h_new, h)
    return jnp.stack(outs, axis=0), h


@jax.jit
def encoder_rnn_reference(params, input_seqs, input_lengths):
    T, B = input_seqs.shape
    embedded = jnp.take(params["embedding"], input_seqs, axis=0)
    mask = (jnp.arange(T)[:, None] < input_lengths[None, :]
            ).astype(jnp.float32)[..., None]
    layer_in = embedded
    hiddens = []
    of = ob = None
    for layer in range(N_LAYERS):
        of, hf = _gru_dir_ref(layer_in, mask,
                              params[f"w_ih_l{layer}_fwd"], params[f"w_hh_l{layer}_fwd"],
                              params[f"b_ih_l{layer}_fwd"], params[f"b_hh_l{layer}_fwd"],
                              reverse=False)
        ob, hb = _gru_dir_ref(layer_in, mask,
                              params[f"w_ih_l{layer}_bwd"], params[f"w_hh_l{layer}_bwd"],
                              params[f"b_ih_l{layer}_bwd"], params[f"b_hh_l{layer}_bwd"],
                              reverse=True)
        hiddens.extend([hf, hb])
        layer_in = jnp.concatenate([of, ob], axis=-1)
    return of + ob, jnp.stack(hiddens, axis=0)


# ------------------------------------ main -------------------------------------
if __name__ == "__main__":
    key = jax.random.PRNGKey(0)
    params = init_params(key)

    k_tok, _ = jax.random.split(jax.random.PRNGKey(0))
    input_lengths = jnp.array([SEQ_LEN, 6, 4], dtype=jnp.int32)    # sorted descending
    tokens = jax.random.randint(k_tok, (SEQ_LEN, BATCH), 1, INPUT_SIZE, jnp.int32)
    valid = (jnp.arange(SEQ_LEN)[:, None] < input_lengths[None, :])
    input_seqs = jnp.where(valid, tokens, 0).astype(jnp.int32)

    outputs, hidden = encoder_rnn_forward(params, input_seqs, input_lengths)
    jax.block_until_ready((outputs, hidden))

    assert outputs.shape == (SEQ_LEN, BATCH, HIDDEN_SIZE)
    assert hidden.shape == (2 * N_LAYERS, BATCH, HIDDEN_SIZE)

    ref_out, ref_hid = encoder_rnn_reference(params, input_seqs, input_lengths)
    jax.block_until_ready((ref_out, ref_hid))
    assert bool(jnp.allclose(outputs, ref_out, atol=5e-2, rtol=5e-2))
    assert bool(jnp.allclose(hidden, ref_hid, atol=5e-2, rtol=5e-2))

    print("KERNEL_OK")
</pallas_src>

<mosaic_0001>
module attributes {stable_mosaic.version = 11 : i64} {
  func.func @_encoder_gru_kernel(%arg0: i32, %arg1: memref<64x16xf32, #tpu.memory_space<vmem>>, %arg2: memref<64x64xf32, #tpu.memory_space<vmem>>, %arg3: memref<16x192xf32, #tpu.memory_space<vmem>>, %arg4: memref<1x192xf32, #tpu.memory_space<vmem>>, %arg5: memref<64x192xf32, #tpu.memory_space<vmem>>, %arg6: memref<1x192xf32, #tpu.memory_space<vmem>>, %arg7: memref<64x192xf32, #tpu.memory_space<vmem>>, %arg8: memref<1x192xf32, #tpu.memory_space<vmem>>, %arg9: memref<64x192xf32, #tpu.memory_space<vmem>>, %arg10: memref<1x192xf32, #tpu.memory_space<vmem>>, %arg11: memref<64x32xf32, #tpu.memory_space<vmem>>, %arg12: memref<4x8x32xf32, #tpu.memory_space<vmem>>, %arg13: memref<64x192xf32, #tpu.memory_space<vmem>>, %arg14: memref<64x64xf32, #tpu.memory_space<vmem>>) attributes {dimension_semantics = [#tpu.dimension_semantics<arbitrary>], iteration_bounds = array<i64: 1>, scalar_prefetch = 0 : i64, scratch_operands = 2 : i64, tpu.core_type = #tpu.core_type<tc>, window_params = [{pipeline_mode = #tpu.pipeline_mode<synchronous>, transform_indices = @transform_0, window_bounds = array<i64: 64, 16>}, {pipeline_mode = #tpu.pipeline_mode<synchronous>, transform_indices = @transform_1, window_bounds = array<i64: 64, 64>}, {pipeline_mode = #tpu.pipeline_mode<synchronous>, transform_indices = @transform_2, window_bounds = array<i64: 16, 192>}, {pipeline_mode = #tpu.pipeline_mode<synchronous>, transform_indices = @transform_3, window_bounds = array<i64: 1, 192>}, {pipeline_mode = #tpu.pipeline_mode<synchronous>, transform_indices = @transform_4, window_bounds = array<i64: 64, 192>}, {pipeline_mode = #tpu.pipeline_mode<synchronous>, transform_indices = @transform_5, window_bounds = array<i64: 1, 192>}, {pipeline_mode = #tpu.pipeline_mode<synchronous>, transform_indices = @transform_6, window_bounds = array<i64: 64, 192>}, {pipeline_mode = #tpu.pipeline_mode<synchronous>, transform_indices = @transform_7, window_bounds = array<i64: 1, 192>}, {pipeline_mode = #tpu.pipeline_mode<synchronous>, transform_indices = @transform_8, window_bounds = array<i64: 64, 192>}, {pipeline_mode = #tpu.pipeline_mode<synchronous>, transform_indices = @transform_9, window_bounds = array<i64: 1, 192>}, {pipeline_mode = #tpu.pipeline_mode<synchronous>, transform_indices = @transform_10, window_bounds = array<i64: 64, 32>}, {pipeline_mode = #tpu.pipeline_mode<synchronous>, transform_indices = @transform_11, window_bounds = array<i64: 4, 8, 32>}]} {
    %0 = tpu.iota {dimensions = array<i32: 1>} : vector<8x192xi32>
    %c63_i32 = arith.constant 63 : i32
    %1 = vector.broadcast %c63_i32 : i32 to vector<8x192xi32>
    %2 = arith.andi %0, %1 : vector<8x192xi32>
    %c32_i32 = arith.constant 32 : i32
    %3 = vector.broadcast %c32_i32 : i32 to vector<8x192xi32>
    %4 = arith.cmpi slt, %2, %3 : vector<8x192xi32>
    %c0 = arith.constant 0 : index
    %c0_0 = arith.constant 0 : index
    %5 = vector.load %arg1[%c0, %c0_0] : memref<64x16xf32, #tpu.memory_space<vmem>>, vector<64x16xf32>
    %c0_1 = arith.constant 0 : index
    %c0_2 = arith.constant 0 : index
    %6 = vector.load %arg3[%c0_1, %c0_2] : memref<16x192xf32, #tpu.memory_space<vmem>>, vector<16x192xf32>
    %cst = arith.constant dense<0.000000e+00> : vector<64x192xf32>
    %7 = tpu.matmul %5, %6, %cst {dimension_numbers = #tpu.dot_dimension_numbers<[1], [0], [0], [1], [0, 0, 1, 1], [], []>} : vector<64x16xf32>, vector<16x192xf32>, vector<64x192xf32> -> vector<64x192xf32>
    %c0_3 = arith.constant 0 : index
    %c0_4 = arith.constant 0 : index
    %8 = vector.load %arg4[%c0_3, %c0_4] : memref<1x192xf32, #tpu.memory_space<vmem>>, vector<1x192xf32>
    %9 = vector.broadcast %8 : vector<1x192xf32> to vector<64x192xf32>
    %10 = arith.addf %7, %9 : vector<64x192xf32>
    %c0_5 = arith.constant 0 : index
    %c0_6 = arith.constant 0 : index
    %11 = vector.load %arg13[%c0_5, %c0_6] : memref<64x192xf32, #tpu.memory_space<vmem>>, vector<64x192xf32>
    tpu.vector_store %arg13[%c0_5, %c0_6], %10 {strides = array<i32>} : memref<64x192xf32, #tpu.memory_space<vmem>>, vector<64x192xf32>,
    %cst_7 = arith.constant 0.000000e+00 : f32
    %12 = vector.broadcast %cst_7 : f32 to vector<8x64xf32>
    %c0_8 = arith.constant 0 : index
    %c0_9 = arith.constant 0 : index
    %13 = vector.load %arg13[%c0_8, %c0_9] : memref<64x192xf32, #tpu.memory_space<vmem>>, vector<8x192xf32>
    %c56 = arith.constant 56 : index
    %c0_10 = arith.constant 0 : index
    %14 = vector.load %arg13[%c56, %c0_10] : memref<64x192xf32, #tpu.memory_space<vmem>>, vector<8x192xf32>
    %15 = arith.select %4, %13, %14 : vector<8x192xi1>, vector<8x192xf32>
    %c0_11 = arith.constant 0 : index
    %c0_12 = arith.constant 0 : index
    %16 = vector.load %arg5[%c0_11, %c0_12] : memref<64x192xf32, #tpu.memory_space<vmem>>, vector<64x192xf32>
    %cst_13 = arith.constant dense<0.000000e+00> : vector<8x192xf32>
    %17 = tpu.matmul %12, %16, %cst_13 {dimension_numbers = #tpu.dot_dimension_numbers<[1], [0], [0], [1], [0, 0, 1, 1], [], []>} : vector<8x64xf32>, vector<64x192xf32>, vector<8x192xf32> -> vector<8x192xf32>
    %c0_14 = arith.constant 0 : index
    %c0_15 = arith.constant 0 : index
    %18 = vector.load %arg6[%c0_14, %c0_15] : memref<1x192xf32, #tpu.memory_space<vmem>>, vector<1x192xf32>
    %19 = vector.broadcast %18 : vector<1x192xf32> to vector<8x192xf32>
    %20 = arith.addf %17, %19 : vector<8x192xf32>
    %21 = vector.extract_strided_slice %15 {offsets = [0, 0], sizes = [8, 64], strides = [1, 1]} : vector<8x192xf32> to vector<8x64xf32>
    %22 = vector.extract_strided_slice %20 {offsets = [0, 0], sizes = [8, 64], strides = [1, 1]} : vector<8x192xf32> to vector<8x64xf32>
    %23 = arith.addf %21, %22 : vector<8x64xf32>
    %24 = arith.negf %23 : vector<8x64xf32>
    %25 = math.exp %24 : vector<8x64xf32>
    %cst_16 = arith.constant 1.000000e+00 : f32
    %26 = vector.broadcast %cst_16 : f32 to vector<8x64xf32>
    %27 = arith.addf %26, %25 : vector<8x64xf32>
    %28 = arith.divf %26, %27 : vector<8x64xf32>
    %29 = vector.extract_strided_slice %15 {offsets = [0, 64], sizes = [8, 64], strides = [1, 1]} : vector<8x192xf32> to vector<8x64xf32>
    %30 = vector.extract_strided_slice %20 {offsets = [0, 64], sizes = [8, 64], strides = [1, 1]} : vector<8x192xf32> to vector<8x64xf32>
    %31 = arith.addf %29, %30 : vector<8x64xf32>
    %32 = arith.negf %31 : vector<8x64xf32>
    %33 = math.exp %32 : vector<8x64xf32>
    %cst_17 = arith.constant 1.000000e+00 : f32
    %34 = vector.broadcast %cst_17 : f32 to vector<8x64xf32>
    %35 = arith.addf %34, %33 : vector<8x64xf32>
    %36 = arith.divf %34, %35 : vector<8x64xf32>
    %37 = vector.extract_strided_slice %15 {offsets = [0, 128], sizes = [8, 64], strides = [1, 1]} : vector<8x192xf32> to vector<8x64xf32>
    %38 = vector.extract_strided_slice %20 {offsets = [0, 128], sizes = [8, 64], strides = [1, 1]} : vector<8x192xf32> to vector<8x64xf32>
    %39 = arith.mulf %28, %38 : vector<8x64xf32>
    %40 = arith.addf %37, %39 : vector<8x64xf32>
    %41 = math.tanh %40 : vector<8x64xf32>
    %cst_18 = arith.constant 1.000000e+00 : f32
    %42 = vector.broadcast %cst_18 : f32 to vector<8x64xf32>
    %43 = arith.subf %42, %36 : vector<8x64xf32>
    %44 = arith.mulf %43, %41 : vector<8x64xf32>
    %45 = arith.mulf %36, %12 : vector<8x64xf32>
    %46 = arith.addf %44, %45 : vector<8x64xf32>
    %c0_19 = arith.constant 0 : index
    %c0_20 = arith.constant 0 : index
    %47 = vector.load %arg2[%c0_19, %c0_20] : memref<64x64xf32, #tpu.memory_space<vmem>>, vector<8x64xf32>
    %cst_21 = arith.constant 0.000000e+00 : f32
    %48 = vector.broadcast %cst_21 : f32 to vector<8x64xf32>
    %49 = arith.cmpf ogt, %47, %48 : vector<8x64xf32>
    %50 = vector.extract_strided_slice %49 {offsets = [0, 0], sizes = [8, 32], strides = [1, 1]} : vector<8x64xi1> to vector<8x32xi1>
    %51 = vector.extract_strided_slice %46 {offsets = [0, 0], sizes = [8, 32], strides = [1, 1]} : vector<8x64xf32> to vector<8x32xf32>
    %cst_22 = arith.constant 0.000000e+00 : f32
    %52 = vector.broadcast %cst_22 : f32 to vector<8x32xf32>
    %53 = arith.select %50, %51, %52 : vector<8x32xi1>, vector<8x32xf32>
    %c0_23 = arith.constant 0 : index
    %c0_24 = arith.constant 0 : index
    %54 = vector.load %arg14[%c0_23, %c0_24] : memref<64x64xf32, #tpu.memory_space<vmem>>, vector<8x32xf32>
    tpu.vector_store %arg14[%c0_23, %c0_24], %53 {strides = array<i32>} : memref<64x64xf32, #tpu.memory_space<vmem>>, vector<8x32xf32>,
    %55 = vector.extract_strided_slice %49 {offsets = [0, 32], sizes = [8, 32], strides = [1, 1]} : vector<8x64xi1> to vector<8x32xi1>
    %56 = vector.extract_strided_slice %46 {offsets = [0, 32], sizes = [8, 32], strides = [1, 1]} : vector<8x64xf32> to vector<8x32xf32>
    %cst_25 = arith.constant 0.000000e+00 : f32
    %57 = vector.broadcast %cst_25 : f32 to vector<8x32xf32>
    %58 = arith.select %55, %56, %57 : vector<8x32xi1>, vector<8x32xf32>
    %c56_26 = arith.constant 56 : index
    %c32 = arith.constant 32 : index
    %59 = vector.load %arg14[%c56_26, %c32] : memref<64x64xf32, #tpu.memory_space<vmem>>, vector<8x32xf32>
    tpu.vector_store %arg14[%c56_26, %c32], %58 {strides = array<i32>} : memref<64x64xf32, #tpu.memory_space<vmem>>, vector<8x32xf32>,
    %60 = arith.select %49, %46, %12 : vector<8x64xi1>, vector<8x64xf32>
    %c8 = arith.constant 8 : index
    %c0_27 = arith.constant 0 : index
    %61 = vector.load %arg13[%c8, %c0_27] : memref<64x192xf32, #tpu.memory_space<vmem>>, vector<8x192xf32>
    %c48 = arith.constant 48 : index
    %c0_28 = arith.constant 0 : index
    %62 = vector.load %arg13[%c48, %c0_28] : memref<64x192xf32, #tpu.memory_space<vmem>>, vector<8x192xf32>
    %63 = arith.select %4, %61, %62 : vector<8x192xi1>, vector<8x192xf32>
    %c0_29 = arith.constant 0 : index
    %c0_30 = arith.constant 0 : index
    %64 = vector.load %arg5[%c0_29, %c0_30] : memref<64x192xf32, #tpu.memory_space<vmem>>, vector<64x192xf32>
    %cst_31 = arith.constant dense<0.000000e+00> : vector<8x192xf32>
    %65 = tpu.matmul %60, %64, %cst_31 {dimension_numbers = #tpu.dot_dimension_numbers<[1], [0], [0], [1], [0, 0, 1, 1], [], []>} : vector<8x64xf32>, vector<64x192xf32>, vector<8x192xf32> -> vector<8x192xf32>
    %c0_32 = arith.constant 0 : index
    %c0_33 = arith.constant 0 : index
    %66 = vector.load %arg6[%c0_32, %c0_33] : memref<1x192xf32, #tpu.memory_space<vmem>>, vector<1x192xf32>
    %67 = vector.broadcast %66 : vector<1x192xf32> to vector<8x192xf32>
    %68 = arith.addf %65, %67 : vector<8x192xf32>
    %69 = vector.extract_strided_slice %63 {offsets = [0, 0], sizes = [8, 64], strides = [1, 1]} : vector<8x192xf32> to vector<8x64xf32>
    %70 = vector.extract_strided_slice %68 {offsets = [0, 0], sizes = [8, 64], strides = [1, 1]} : vector<8x192xf32> to vector<8x64xf32>
    %71 = arith.addf %69, %70 : vector<8x64xf32>
    %72 = arith.negf %71 : vector<8x64xf32>
    %73 = math.exp %72 : vector<8x64xf32>
    %cst_34 = arith.constant 1.000000e+00 : f32
    %74 = vector.broadcast %cst_34 : f32 to vector<8x64xf32>
    %75 = arith.addf %74, %73 : vector<8x64xf32>
    %76 = arith.divf %74, %75 : vector<8x64xf32>
    %77 = vector.extract_strided_slice %63 {offsets = [0, 64], sizes = [8, 64], strides = [1, 1]} : vector<8x192xf32> to vector<8x64xf32>
    %78 = vector.extract_strided_slice %68 {offsets = [0, 64], sizes = [8, 64], strides = [1, 1]} : vector<8x192xf32> to vector<8x64xf32>
    %79 = arith.addf %77, %78 : vector<8x64xf32>
    %80 = arith.negf %79 : vector<8x64xf32>
    %81 = math.exp %80 : vector<8x64xf32>
    %cst_35 = arith.constant 1.000000e+00 : f32
    %82 = vector.broadcast %cst_35 : f32 to vector<8x64xf32>
    %83 = arith.addf %82, %81 : vector<8x64xf32>
    %84 = arith.divf %82, %83 : vector<8x64xf32>
    %85 = vector.extract_strided_slice %63 {offsets = [0, 128], sizes = [8, 64], strides = [1, 1]} : vector<8x192xf32> to vector<8x64xf32>
    %86 = vector.extract_strided_slice %68 {offsets = [0, 128], sizes = [8, 64], strides = [1, 1]} : vector<8x192xf32> to vector<8x64xf32>
    %87 = arith.mulf %76, %86 : vector<8x64xf32>
    %88 = arith.addf %85, %87 : vector<8x64xf32>
    %89 = math.tanh %88 : vector<8x64xf32>
    %cst_36 = arith.constant 1.000000e+00 : f32
    %90 = vector.broadcast %cst_36 : f32 to vector<8x64xf32>
    %91 = arith.subf %90, %84 : vector<8x64xf32>
    %92 = arith.mulf %91, %89 : vector<8x64xf32>
    %93 = arith.mulf %84, %60 : vector<8x64xf32>
    %94 = arith.addf %92, %93 : vector<8x64xf32>
    %c8_37 = arith.constant 8 : index
    %c0_38 = arith.constant 0 : index
    %95 = vector.load %arg2[%c8_37, %c0_38] : memref<64x64xf32, #tpu.memory_space<vmem>>, vector<8x64xf32>
    %cst_39 = arith.constant 0.000000e+00 : f32
    %96 = vector.broadcast %cst_39 : f32 to vector<8x64xf32>
    %97 = arith.cmpf ogt, %95, %96 : vector<8x64xf32>
    %98 = vector.extract_strided_slice %97 {offsets = [0, 0], sizes = [8, 32], strides = [1, 1]} : vector<8x64xi1> to vector<8x32xi1>
    %99 = vector.extract_strided_slice %94 {offsets = [0, 0], sizes = [8, 32], strides = [1, 1]} : vector<8x64xf32> to vector<8x32xf32>
    %cst_40 = arith.constant 0.000000e+00 : f32
    %100 = vector.broadcast %cst_40 : f32 to vector<8x32xf32>
    %101 = arith.select %98, %99, %100 : vector<8x32xi1>, vector<8x32xf32>
    %c8_41 = arith.constant 8 : index
    %c0_42 = arith.constant 0 : index
    %102 = vector.load %arg14[%c8_41, %c0_42] : memref<64x64xf32, #tpu.memory_space<vmem>>, vector<8x32xf32>
    tpu.vector_store %arg14[%c8_41, %c0_42], %101 {strides = array<i32>} : memref<64x64xf32, #tpu.memory_space<vmem>>, vector<8x32xf32>,
    %103 = vector.extract_strided_slice %97 {offsets = [0, 32], sizes = [8, 32], strides = [1, 1]} : vector<8x64xi1> to vector<8x32xi1>
    %104 = vector.extract_strided_slice %94 {offsets = [0, 32], sizes = [8, 32], strides = [1, 1]} : vector<8x64xf32> to vector<8x32xf32>
    %cst_43 = arith.constant 0.000000e+00 : f32
    %105 = vector.broadcast %cst_43 : f32 to vector<8x32xf32>
    %106 = arith.select %103, %104, %105 : vector<8x32xi1>, vector<8x32xf32>
    %c48_44 = arith.constant 48 : index
    %c32_45 = arith.constant 32 : index
    %107 = vector.load %arg14[%c48_44, %c32_45] : memref<64x64xf32, #tpu.memory_space<vmem>>, vector<8x32xf32>
    tpu.vector_store %arg14[%c48_44, %c32_45], %106 {strides = array<i32>} : memref<64x64xf32, #tpu.memory_space<vmem>>, vector<8x32xf32>,
    %108 = arith.select %97, %94, %60 : vector<8x64xi1>, vector<8x64xf32>
    %c16 = arith.constant 16 : index
    %c0_46 = arith.constant 0 : index
    %109 = vector.load %arg13[%c16, %c0_46] : memref<64x192xf32, #tpu.memory_space<vmem>>, vector<8x192xf32>
    %c40 = arith.constant 40 : index
    %c0_47 = arith.constant 0 : index
    %110 = vector.load %arg13[%c40, %c0_47] : memref<64x192xf32, #tpu.memory_space<vmem>>, vector<8x192xf32>
    %111 = arith.select %4, %109, %110 : vector<8x192xi1>, vector<8x192xf32>
    %c0_48 = arith.constant 0 : index
    %c0_49 = arith.constant 0 : index
    %112 = vector.load %arg5[%c0_48, %c0_49] : memref<64x192xf32, #tpu.memory_space<vmem>>, vector<64x192xf32>
    %cst_50 = arith.constant dense<0.000000e+00> : vector<8x192xf32>
    %113 = tpu.matmul %108, %112, %cst_50 {dimension_numbers = #tpu.dot_dimension_numbers<[1], [0], [0], [1], [0, 0, 1, 1], [], []>} : vector<8x64xf32>, vector<64x192xf32>, vector<8x192xf32> -> vector<8x192xf32>
    %c0_51 = arith.constant 0 : index
    %c0_52 = arith.constant 0 : index
    %114 = vector.load %arg6[%c0_51, %c0_52] : memref<1x192xf32, #tpu.memory_space<vmem>>, vector<1x192xf32>
    %115 = vector.broadcast %114 : vector<1x192xf32> to vector<8x192xf32>
    %116 = arith.addf %113, %115 : vector<8x192xf32>
    %117 = vector.extract_strided_slice %111 {offsets = [0, 0], sizes = [8, 64], strides = [1, 1]} : vector<8x192xf32> to vector<8x64xf32>
    %118 = vector.extract_strided_slice %116 {offsets = [0, 0], sizes = [8, 64], strides = [1, 1]} : vector<8x192xf32> to vector<8x64xf32>
    %119 = arith.addf %117, %118 : vector<8x64xf32>
    %120 = arith.negf %119 : vector<8x64xf32>
    %121 = math.exp %120 : vector<8x64xf32>
    %cst_53 = arith.constant 1.000000e+00 : f32
    %122 = vector.broadcast %cst_53 : f32 to vector<8x64xf32>
    %123 = arith.addf %122, %121 : vector<8x64xf32>
    %124 = arith.divf %122, %123 : vector<8x64xf32>
    %125 = vector.extract_strided_slice %111 {offsets = [0, 64], sizes = [8, 64], strides = [1, 1]} : vector<8x192xf32> to vector<8x64xf32>
    %126 = vector.extract_strided_slice %116 {offsets = [0, 64], sizes = [8, 64], strides = [1, 1]} : vector<8x192xf32> to vector<8x64xf32>
    %127 = arith.addf %125, %126 : vector<8x64xf32>
    %128 = arith.negf %127 : vector<8x64xf32>
    %129 = math.exp %128 : vector<8x64xf32>
    %cst_54 = arith.constant 1.000000e+00 : f32
    %130 = vector.broadcast %cst_54 : f32 to vector<8x64xf32>
    %131 = arith.addf %130, %129 : vector<8x64xf32>
    %132 = arith.divf %130, %131 : vector<8x64xf32>
    %133 = vector.extract_strided_slice %111 {offsets = [0, 128], sizes = [8, 64], strides = [1, 1]} : vector<8x192xf32> to vector<8x64xf32>
    %134 = vector.extract_strided_slice %116 {offsets = [0, 128], sizes = [8, 64], strides = [1, 1]} : vector<8x192xf32> to vector<8x64xf32>
    %135 = arith.mulf %124, %134 : vector<8x64xf32>
    %136 = arith.addf %133, %135 : vector<8x64xf32>
    %137 = math.tanh %136 : vector<8x64xf32>
    %cst_55 = arith.constant 1.000000e+00 : f32
    %138 = vector.broadcast %cst_55 : f32 to vector<8x64xf32>
    %139 = arith.subf %138, %132 : vector<8x64xf32>
    %140 = arith.mulf %139, %137 : vector<8x64xf32>
    %141 = arith.mulf %132, %108 : vector<8x64xf32>
    %142 = arith.addf %140, %141 : vector<8x64xf32>
    %c16_56 = arith.constant 16 : index
    %c0_57 = arith.constant 0 : index
    %143 = vector.load %arg2[%c16_56, %c0_57] : memref<64x64xf32, #tpu.memory_space<vmem>>, vector<8x64xf32>
    %cst_58 = arith.constant 0.000000e+00 : f32
    %144 = vector.broadcast %cst_58 : f32 to vector<8x64xf32>
    %145 = arith.cmpf ogt, %143, %144 : vector<8x64xf32>
    %146 = vector.extract_strided_slice %145 {offsets = [0, 0], sizes = [8, 32], strides = [1, 1]} : vector<8x64xi1> to vector<8x32xi1>
    %147 = vector.extract_strided_slice %142 {offsets = [0, 0], sizes = [8, 32], strides = [1, 1]} : vector<8x64xf32> to vector<8x32xf32>
    %cst_59 = arith.constant 0.000000e+00 : f32
    %148 = vector.broadcast %cst_59 : f32 to vector<8x32xf32>
    %149 = arith.select %146, %147, %148 : vector<8x32xi1>, vector<8x32xf32>
    %c16_60 = arith.constant 16 : index
    %c0_61 = arith.constant 0 : index
    %150 = vector.load %arg14[%c16_60, %c0_61] : memref<64x64xf32, #tpu.memory_space<vmem>>, vector<8x32xf32>
    tpu.vector_store %arg14[%c16_60, %c0_61], %149 {strides = array<i32>} : memref<64x64xf32, #tpu.memory_space<vmem>>, vector<8x32xf32>,
    %151 = vector.extract_strided_slice %145 {offsets = [0, 32], sizes = [8, 32], strides = [1, 1]} : vector<8x64xi1> to vector<8x32xi1>
    %152 = vector.extract_strided_slice %142 {offsets = [0, 32], sizes = [8, 32], strides = [1, 1]} : vector<8x64xf32> to vector<8x32xf32>
    %cst_62 = arith.constant 0.000000e+00 : f32
    %153 = vector.broadcast %cst_62 : f32 to vector<8x32xf32>
    %154 = arith.select %151, %152, %153 : vector<8x32xi1>, vector<8x32xf32>
    %c40_63 = arith.constant 40 : index
    %c32_64 = arith.constant 32 : index
    %155 = vector.load %arg14[%c40_63, %c32_64] : memref<64x64xf32, #tpu.memory_space<vmem>>, vector<8x32xf32>
    tpu.vector_store %arg14[%c40_63, %c32_64], %154 {strides = array<i32>} : memref<64x64xf32, #tpu.memory_space<vmem>>, vector<8x32xf32>,
    %156 = arith.select %145, %142, %108 : vector<8x64xi1>, vector<8x64xf32>
    %c24 = arith.constant 24 : index
    %c0_65 = arith.constant 0 : index
    %157 = vector.load %arg13[%c24, %c0_65] : memref<64x192xf32, #tpu.memory_space<vmem>>, vector<8x192xf32>
    %c32_66 = arith.constant 32 : index
    %c0_67 = arith.constant 0 : index
    %158 = vector.load %arg13[%c32_66, %c0_67] : memref<64x192xf32, #tpu.memory_space<vmem>>, vector<8x192xf32>
    %159 = arith.select %4, %157, %158 : vector<8x192xi1>, vector<8x192xf32>
    %c0_68 = arith.constant 0 : index
    %c0_69 = arith.constant 0 : index
    %160 = vector.load %arg5[%c0_68, %c0_69] : memref<64x192xf32, #tpu.memory_space<vmem>>, vector<64x192xf32>
    %cst_70 = arith.constant dense<0.000000e+00> : vector<8x192xf32>
    %161 = tpu.matmul %156, %160, %cst_70 {dimension_numbers = #tpu.dot_dimension_numbers<[1], [0], [0], [1], [0, 0, 1, 1], [], []>} : vector<8x64xf32>, vector<64x192xf32>, vector<8x192xf32> -> vector<8x192xf32>
    %c0_71 = arith.constant 0 : index
    %c0_72 = arith.constant 0 : index
    %162 = vector.load %arg6[%c0_71, %c0_72] : memref<1x192xf32, #tpu.memory_space<vmem>>, vector<1x192xf32>
    %163 = vector.broadcast %162 : vector<1x192xf32> to vector<8x192xf32>
    %164 = arith.addf %161, %163 : vector<8x192xf32>
    %165 = vector.extract_strided_slice %159 {offsets = [0, 0], sizes = [8, 64], strides = [1, 1]} : vector<8x192xf32> to vector<8x64xf32>
    %166 = vector.extract_strided_slice %164 {offsets = [0, 0], sizes = [8, 64], strides = [1, 1]} : vector<8x192xf32> to vector<8x64xf32>
    %167 = arith.addf %165, %166 : vector<8x64xf32>
    %168 = arith.negf %167 : vector<8x64xf32>
    %169 = math.exp %168 : vector<8x64xf32>
    %cst_73 = arith.constant 1.000000e+00 : f32
    %170 = vector.broadcast %cst_73 : f32 to vector<8x64xf32>
    %171 = arith.addf %170, %169 : vector<8x64xf32>
    %172 = arith.divf %170, %171 : vector<8x64xf32>
    %173 = vector.extract_strided_slice %159 {offsets = [0, 64], sizes = [8, 64], strides = [1, 1]} : vector<8x192xf32> to vector<8x64xf32>
    %174 = vector.extract_strided_slice %164 {offsets = [0, 64], sizes = [8, 64], strides = [1, 1]} : vector<8x192xf32> to vector<8x64xf32>
    %175 = arith.addf %173, %174 : vector<8x64xf32>
    %176 = arith.negf %175 : vector<8x64xf32>
    %177 = math.exp %176 : vector<8x64xf32>
    %cst_74 = arith.constant 1.000000e+00 : f32
    %178 = vector.broadcast %cst_74 : f32 to vector<8x64xf32>
    %179 = arith.addf %178, %177 : vector<8x64xf32>
    %180 = arith.divf %178, %179 : vector<8x64xf32>
    %181 = vector.extract_strided_slice %159 {offsets = [0, 128], sizes = [8, 64], strides = [1, 1]} : vector<8x192xf32> to vector<8x64xf32>
    %182 = vector.extract_strided_slice %164 {offsets = [0, 128], sizes = [8, 64], strides = [1, 1]} : vector<8x192xf32> to vector<8x64xf32>
    %183 = arith.mulf %172, %182 : vector<8x64xf32>
    %184 = arith.addf %181, %183 : vector<8x64xf32>
    %185 = math.tanh %184 : vector<8x64xf32>
    %cst_75 = arith.constant 1.000000e+00 : f32
    %186 = vector.broadcast %cst_75 : f32 to vector<8x64xf32>
    %187 = arith.subf %186, %180 : vector<8x64xf32>
    %188 = arith.mulf %187, %185 : vector<8x64xf32>
    %189 = arith.mulf %180, %156 : vector<8x64xf32>
    %190 = arith.addf %188, %189 : vector<8x64xf32>
    %c24_76 = arith.constant 24 : index
    %c0_77 = arith.constant 0 : index
    %191 = vector.load %arg2[%c24_76, %c0_77] : memref<64x64xf32, #tpu.memory_space<vmem>>, vector<8x64xf32>
    %cst_78 = arith.constant 0.000000e+00 : f32
    %192 = vector.broadcast %cst_78 : f32 to vector<8x64xf32>
    %193 = arith.cmpf ogt, %191, %192 : vector<8x64xf32>
    %194 = vector.extract_strided_slice %193 {offsets = [0, 0], sizes = [8, 32], strides = [1, 1]} : vector<8x64xi1> to vector<8x32xi1>
    %195 = vector.extract_strided_slice %190 {offsets = [0, 0], sizes = [8, 32], strides = [1, 1]} : vector<8x64xf32> to vector<8x32xf32>
    %cst_79 = arith.constant 0.000000e+00 : f32
    %196 = vector.broadcast %cst_79 : f32 to vector<8x32xf32>
    %197 = arith.select %194, %195, %196 : vector<8x32xi1>, vector<8x32xf32>
    %c24_80 = arith.constant 24 : index
    %c0_81 = arith.constant 0 : index
    %198 = vector.load %arg14[%c24_80, %c0_81] : memref<64x64xf32, #tpu.memory_space<vmem>>, vector<8x32xf32>
    tpu.vector_store %arg14[%c24_80, %c0_81], %197 {strides = array<i32>} : memref<64x64xf32, #tpu.memory_space<vmem>>, vector<8x32xf32>,
    %199 = vector.extract_strided_slice %193 {offsets = [0, 32], sizes = [8, 32], strides = [1, 1]} : vector<8x64xi1> to vector<8x32xi1>
    %200 = vector.extract_strided_slice %190 {offsets = [0, 32], sizes = [8, 32], strides = [1, 1]} : vector<8x64xf32> to vector<8x32xf32>
    %cst_82 = arith.constant 0.000000e+00 : f32
    %201 = vector.broadcast %cst_82 : f32 to vector<8x32xf32>
    %202 = arith.select %199, %200, %201 : vector<8x32xi1>, vector<8x32xf32>
    %c32_83 = arith.constant 32 : index
    %c32_84 = arith.constant 32 : index
    %203 = vector.load %arg14[%c32_83, %c32_84] : memref<64x64xf32, #tpu.memory_space<vmem>>, vector<8x32xf32>
    tpu.vector_store %arg14[%c32_83, %c32_84], %202 {strides = array<i32>} : memref<64x64xf32, #tpu.memory_space<vmem>>, vector<8x32xf32>,
    %204 = arith.select %193, %190, %156 : vector<8x64xi1>, vector<8x64xf32>
    %c32_85 = arith.constant 32 : index
    %c0_86 = arith.constant 0 : index
    %205 = vector.load %arg13[%c32_85, %c0_86] : memref<64x192xf32, #tpu.memory_space<vmem>>, vector<8x192xf32>
    %c24_87 = arith.constant 24 : index
    %c0_88 = arith.constant 0 : index
    %206 = vector.load %arg13[%c24_87, %c0_88] : memref<64x192xf32, #tpu.memory_space<vmem>>, vector<8x192xf32>
    %207 = arith.select %4, %205, %206 : vector<8x192xi1>, vector<8x192xf32>
    %c0_89 = arith.constant 0 : index
    %c0_90 = arith.constant 0 : index
    %208 = vector.load %arg5[%c0_89, %c0_90] : memref<64x192xf32, #tpu.memory_space<vmem>>, vector<64x192xf32>
    %cst_91 = arith.constant dense<0.000000e+00> : vector<8x192xf32>
    %209 = tpu.matmul %204, %208, %cst_91 {dimension_numbers = #tpu.dot_dimension_numbers<[1], [0], [0], [1], [0, 0, 1, 1], [], []>} : vector<8x64xf32>, vector<64x192xf32>, vector<8x192xf32> -> vector<8x192xf32>
    %c0_92 = arith.constant 0 : index
    %c0_93 = arith.constant 0 : index
    %210 = vector.load %arg6[%c0_92, %c0_93] : memref<1x192xf32, #tpu.memory_space<vmem>>, vector<1x192xf32>
    %211 = vector.broadcast %210 : vector<1x192xf32> to vector<8x192xf32>
    %212 = arith.addf %209, %211 : vector<8x192xf32>
    %213 = vector.extract_strided_slice %207 {offsets = [0, 0], sizes = [8, 64], strides = [1, 1]} : vector<8x192xf32> to vector<8x64xf32>
    %214 = vector.extract_strided_slice %212 {offsets = [0, 0], sizes = [8, 64], strides = [1, 1]} : vector<8x192xf32> to vector<8x64xf32>
    %215 = arith.addf %213, %214 : vector<8x64xf32>
    %216 = arith.negf %215 : vector<8x64xf32>
    %217 = math.exp %216 : vector<8x64xf32>
    %cst_94 = arith.constant 1.000000e+00 : f32
    %218 = vector.broadcast %cst_94 : f32 to vector<8x64xf32>
    %219 = arith.addf %218, %217 : vector<8x64xf32>
    %220 = arith.divf %218, %219 : vector<8x64xf32>
    %221 = vector.extract_strided_slice %207 {offsets = [0, 64], sizes = [8, 64], strides = [1, 1]} : vector<8x192xf32> to vector<8x64xf32>
    %222 = vector.extract_strided_slice %212 {offsets = [0, 64], sizes = [8, 64], strides = [1, 1]} : vector<8x192xf32> to vector<8x64xf32>
    %223 = arith.addf %221, %222 : vector<8x64xf32>
    %224 = arith.negf %223 : vector<8x64xf32>
    %225 = math.exp %224 : vector<8x64xf32>
    %cst_95 = arith.constant 1.000000e+00 : f32
    %226 = vector.broadcast %cst_95 : f32 to vector<8x64xf32>
    %227 = arith.addf %226, %225 : vector<8x64xf32>
    %228 = arith.divf %226, %227 : vector<8x64xf32>
    %229 = vector.extract_strided_slice %207 {offsets = [0, 128], sizes = [8, 64], strides = [1, 1]} : vector<8x192xf32> to vector<8x64xf32>
    %230 = vector.extract_strided_slice %212 {offsets = [0, 128], sizes = [8, 64], strides = [1, 1]} : vector<8x192xf32> to vector<8x64xf32>
    %231 = arith.mulf %220, %230 : vector<8x64xf32>
    %232 = arith.addf %229, %231 : vector<8x64xf32>
    %233 = math.tanh %232 : vector<8x64xf32>
    %cst_96 = arith.constant 1.000000e+00 : f32
    %234 = vector.broadcast %cst_96 : f32 to vector<8x64xf32>
    %235 = arith.subf %234, %228 : vector<8x64xf32>
    %236 = arith.mulf %235, %233 : vector<8x64xf32>
    %237 = arith.mulf %228, %204 : vector<8x64xf32>
    %238 = arith.addf %236, %237 : vector<8x64xf32>
    %c32_97 = arith.constant 32 : index
    %c0_98 = arith.constant 0 : index
    %239 = vector.load %arg2[%c32_97, %c0_98] : memref<64x64xf32, #tpu.memory_space<vmem>>, vector<8x64xf32>
    %cst_99 = arith.constant 0.000000e+00 : f32
    %240 = vector.broadcast %cst_99 : f32 to vector<8x64xf32>
    %241 = arith.cmpf ogt, %239, %240 : vector<8x64xf32>
    %242 = vector.extract_strided_slice %241 {offsets = [0, 0], sizes = [8, 32], strides = [1, 1]} : vector<8x64xi1> to vector<8x32xi1>
    %243 = vector.extract_strided_slice %238 {offsets = [0, 0], sizes = [8, 32], strides = [1, 1]} : vector<8x64xf32> to vector<8x32xf32>
    %cst_100 = arith.constant 0.000000e+00 : f32
    %244 = vector.broadcast %cst_100 : f32 to vector<8x32xf32>
    %245 = arith.select %242, %243, %244 : vector<8x32xi1>, vector<8x32xf32>
    %c32_101 = arith.constant 32 : index
    %c0_102 = arith.constant 0 : index
    %246 = vector.load %arg14[%c32_101, %c0_102] : memref<64x64xf32, #tpu.memory_space<vmem>>, vector<8x32xf32>
    tpu.vector_store %arg14[%c32_101, %c0_102], %245 {strides = array<i32>} : memref<64x64xf32, #tpu.memory_space<vmem>>, vector<8x32xf32>,
    %247 = vector.extract_strided_slice %241 {offsets = [0, 32], sizes = [8, 32], strides = [1, 1]} : vector<8x64xi1> to vector<8x32xi1>
    %248 = vector.extract_strided_slice %238 {offsets = [0, 32], sizes = [8, 32], strides = [1, 1]} : vector<8x64xf32> to vector<8x32xf32>
    %cst_103 = arith.constant 0.000000e+00 : f32
    %249 = vector.broadcast %cst_103 : f32 to vector<8x32xf32>
    %250 = arith.select %247, %248, %249 : vector<8x32xi1>, vector<8x32xf32>
    %c24_104 = arith.constant 24 : index
    %c32_105 = arith.constant 32 : index
    %251 = vector.load %arg14[%c24_104, %c32_105] : memref<64x64xf32, #tpu.memory_space<vmem>>, vector<8x32xf32>
    tpu.vector_store %arg14[%c24_104, %c32_105], %250 {strides = array<i32>} : memref<64x64xf32, #tpu.memory_space<vmem>>, vector<8x32xf32>,
    %252 = arith.select %241, %238, %204 : vector<8x64xi1>, vector<8x64xf32>
    %c40_106 = arith.constant 40 : index
    %c0_107 = arith.constant 0 : index
    %253 = vector.load %arg13[%c40_106, %c0_107] : memref<64x192xf32, #tpu.memory_space<vmem>>, vector<8x192xf32>
    %c16_108 = arith.constant 16 : index
    %c0_109 = arith.constant 0 : index
    %254 = vector.load %arg13[%c16_108, %c0_109] : memref<64x192xf32, #tpu.memory_space<vmem>>, vector<8x192xf32>
    %255 = arith.select %4, %253, %254 : vector<8x192xi1>, vector<8x192xf32>
    %c0_110 = arith.constant 0 : index
    %c0_111 = arith.constant 0 : index
    %256 = vector.load %arg5[%c0_110, %c0_111] : memref<64x192xf32, #tpu.memory_space<vmem>>, vector<64x192xf32>
    %cst_112 = arith.constant dense<0.000000e+00> : vector<8x192xf32>
    %257 = tpu.matmul %252, %256, %cst_112 {dimension_numbers = #tpu.dot_dimension_numbers<[1], [0], [0], [1], [0, 0, 1, 1], [], []>} : vector<8x64xf32>, vector<64x192xf32>, vector<8x192xf32> -> vector<8x192xf32>
    %c0_113 = arith.constant 0 : index
    %c0_114 = arith.constant 0 : index
    %258 = vector.load %arg6[%c0_113, %c0_114] : memref<1x192xf32, #tpu.memory_space<vmem>>, vector<1x192xf32>
    %259 = vector.broadcast %258 : vector<1x192xf32> to vector<8x192xf32>
    %260 = arith.addf %257, %259 : vector<8x192xf32>
    %261 = vector.extract_strided_slice %255 {offsets = [0, 0], sizes = [8, 64], strides = [1, 1]} : vector<8x192xf32> to vector<8x64xf32>
    %262 = vector.extract_strided_slice %260 {offsets = [0, 0], sizes = [8, 64], strides = [1, 1]} : vector<8x192xf32> to vector<8x64xf32>
    %263 = arith.addf %261, %262 : vector<8x64xf32>
    %264 = arith.negf %263 : vector<8x64xf32>
    %265 = math.exp %264 : vector<8x64xf32>
    %cst_115 = arith.constant 1.000000e+00 : f32
    %266 = vector.broadcast %cst_115 : f32 to vector<8x64xf32>
    %267 = arith.addf %266, %265 : vector<8x64xf32>
    %268 = arith.divf %266, %267 : vector<8x64xf32>
    %269 = vector.extract_strided_slice %255 {offsets = [0, 64], sizes = [8, 64], strides = [1, 1]} : vector<8x192xf32> to vector<8x64xf32>
    %270 = vector.extract_strided_slice %260 {offsets = [0, 64], sizes = [8, 64], strides = [1, 1]} : vector<8x192xf32> to vector<8x64xf32>
    %271 = arith.addf %269, %270 : vector<8x64xf32>
    %272 = arith.negf %271 : vector<8x64xf32>
    %273 = math.exp %272 : vector<8x64xf32>
    %cst_116 = arith.constant 1.000000e+00 : f32
    %274 = vector.broadcast %cst_116 : f32 to vector<8x64xf32>
    %275 = arith.addf %274, %273 : vector<8x64xf32>
    %276 = arith.divf %274, %275 : vector<8x64xf32>
    %277 = vector.extract_strided_slice %255 {offsets = [0, 128], sizes = [8, 64], strides = [1, 1]} : vector<8x192xf32> to vector<8x64xf32>
    %278 = vector.extract_strided_slice %260 {offsets = [0, 128], sizes = [8, 64], strides = [1, 1]} : vector<8x192xf32> to vector<8x64xf32>
    %279 = arith.mulf %268, %278 : vector<8x64xf32>
    %280 = arith.addf %277, %279 : vector<8x64xf32>
    %281 = math.tanh %280 : vector<8x64xf32>
    %cst_117 = arith.constant 1.000000e+00 : f32
    %282 = vector.broadcast %cst_117 : f32 to vector<8x64xf32>
    %283 = arith.subf %282, %276 : vector<8x64xf32>
    %284 = arith.mulf %283, %281 : vector<8x64xf32>
    %285 = arith.mulf %276, %252 : vector<8x64xf32>
    %286 = arith.addf %284, %285 : vector<8x64xf32>
    %c40_118 = arith.constant 40 : index
    %c0_119 = arith.constant 0 : index
    %287 = vector.load %arg2[%c40_118, %c0_119] : memref<64x64xf32, #tpu.memory_space<vmem>>, vector<8x64xf32>
    %cst_120 = arith.constant 0.000000e+00 : f32
    %288 = vector.broadcast %cst_120 : f32 to vector<8x64xf32>
    %289 = arith.cmpf ogt, %287, %288 : vector<8x64xf32>
    %290 = vector.extract_strided_slice %289 {offsets = [0, 0], sizes = [8, 32], strides = [1, 1]} : vector<8x64xi1> to vector<8x32xi1>
    %291 = vector.extract_strided_slice %286 {offsets = [0, 0], sizes = [8, 32], strides = [1, 1]} : vector<8x64xf32> to vector<8x32xf32>
    %cst_121 = arith.constant 0.000000e+00 : f32
    %292 = vector.broadcast %cst_121 : f32 to vector<8x32xf32>
    %293 = arith.select %290, %291, %292 : vector<8x32xi1>, vector<8x32xf32>
    %c40_122 = arith.constant 40 : index
    %c0_123 = arith.constant 0 : index
    %294 = vector.load %arg14[%c40_122, %c0_123] : memref<64x64xf32, #tpu.memory_space<vmem>>, vector<8x32xf32>
    tpu.vector_store %arg14[%c40_122, %c0_123], %293 {strides = array<i32>} : memref<64x64xf32, #tpu.memory_space<vmem>>, vector<8x32xf32>,
    %295 = vector.extract_strided_slice %289 {offsets = [0, 32], sizes = [8, 32], strides = [1, 1]} : vector<8x64xi1> to vector<8x32xi1>
    %296 = vector.extract_strided_slice %286 {offsets = [0, 32], sizes = [8, 32], strides = [1, 1]} : vector<8x64xf32> to vector<8x32xf32>
    %cst_124 = arith.constant 0.000000e+00 : f32
    %297 = vector.broadcast %cst_124 : f32 to vector<8x32xf32>
    %298 = arith.select %295, %296, %297 : vector<8x32xi1>, vector<8x32xf32>
    %c16_125 = arith.constant 16 : index
    %c32_126 = arith.constant 32 : index
    %299 = vector.load %arg14[%c16_125, %c32_126] : memref<64x64xf32, #tpu.memory_space<vmem>>, vector<8x32xf32>
    tpu.vector_store %arg14[%c16_125, %c32_126], %298 {strides = array<i32>} : memref<64x64xf32, #tpu.memory_space<vmem>>, vector<8x32xf32>,
    %300 = arith.select %289, %286, %252 : vector<8x64xi1>, vector<8x64xf32>
    %c48_127 = arith.constant 48 : index
    %c0_128 = arith.constant 0 : index
    %301 = vector.load %arg13[%c48_127, %c0_128] : memref<64x192xf32, #tpu.memory_space<vmem>>, vector<8x192xf32>
    %c8_129 = arith.constant 8 : index
    %c0_130 = arith.constant 0 : index
    %302 = vector.load %arg13[%c8_129, %c0_130] : memref<64x192xf32, #tpu.memory_space<vmem>>, vector<8x192xf32>
    %303 = arith.select %4, %301, %302 : vector<8x192xi1>, vector<8x192xf32>
    %c0_131 = arith.constant 0 : index
    %c0_132 = arith.constant 0 : index
    %304 = vector.load %arg5[%c0_131, %c0_132] : memref<64x192xf32, #tpu.memory_space<vmem>>, vector<64x192xf32>
    %cst_133 = arith.constant dense<0.000000e+00> : vector<8x192xf32>
    %305 = tpu.matmul %300, %304, %cst_133 {dimension_numbers = #tpu.dot_dimension_numbers<[1], [0], [0], [1], [0, 0, 1, 1], [], []>} : vector<8x64xf32>, vector<64x192xf32>, vector<8x192xf32> -> vector<8x192xf32>
    %c0_134 = arith.constant 0 : index
    %c0_135 = arith.constant 0 : index
    %306 = vector.load %arg6[%c0_134, %c0_135] : memref<1x192xf32, #tpu.memory_space<vmem>>, vector<1x192xf32>
    %307 = vector.broadcast %306 : vector<1x192xf32> to vector<8x192xf32>
    %308 = arith.addf %305, %307 : vector<8x192xf32>
    %309 = vector.extract_strided_slice %303 {offsets = [0, 0], sizes = [8, 64], strides = [1, 1]} : vector<8x192xf32> to vector<8x64xf32>
    %310 = vector.extract_strided_slice %308 {offsets = [0, 0], sizes = [8, 64], strides = [1, 1]} : vector<8x192xf32> to vector<8x64xf32>
    %311 = arith.addf %309, %310 : vector<8x64xf32>
    %312 = arith.negf %311 : vector<8x64xf32>
    %313 = math.exp %312 : vector<8x64xf32>
    %cst_136 = arith.constant 1.000000e+00 : f32
    %314 = vector.broadcast %cst_136 : f32 to vector<8x64xf32>
    %315 = arith.addf %314, %313 : vector<8x64xf32>
    %316 = arith.divf %314, %315 : vector<8x64xf32>
    %317 = vector.extract_strided_slice %303 {offsets = [0, 64], sizes = [8, 64], strides = [1, 1]} : vector<8x192xf32> to vector<8x64xf32>
    %318 = vector.extract_strided_slice %308 {offsets = [0, 64], sizes = [8, 64], strides = [1, 1]} : vector<8x192xf32> to vector<8x64xf32>
    %319 = arith.addf %317, %318 : vector<8x64xf32>
    %320 = arith.negf %319 : vector<8x64xf32>
    %321 = math.exp %320 : vector<8x64xf32>
    %cst_137 = arith.constant 1.000000e+00 : f32
    %322 = vector.broadcast %cst_137 : f32 to vector<8x64xf32>
    %323 = arith.addf %322, %321 : vector<8x64xf32>
    %324 = arith.divf %322, %323 : vector<8x64xf32>
    %325 = vector.extract_strided_slice %303 {offsets = [0, 128], sizes = [8, 64], strides = [1, 1]} : vector<8x192xf32> to vector<8x64xf32>
    %326 = vector.extract_strided_slice %308 {offsets = [0, 128], sizes = [8, 64], strides = [1, 1]} : vector<8x192xf32> to vector<8x64xf32>
    %327 = arith.mulf %316, %326 : vector<8x64xf32>
    %328 = arith.addf %325, %327 : vector<8x64xf32>
    %329 = math.tanh %328 : vector<8x64xf32>
    %cst_138 = arith.constant 1.000000e+00 : f32
    %330 = vector.broadcast %cst_138 : f32 to vector<8x64xf32>
    %331 = arith.subf %330, %324 : vector<8x64xf32>
    %332 = arith.mulf %331, %329 : vector<8x64xf32>
    %333 = arith.mulf %324, %300 : vector<8x64xf32>
    %334 = arith.addf %332, %333 : vector<8x64xf32>
    %c48_139 = arith.constant 48 : index
    %c0_140 = arith.constant 0 : index
    %335 = vector.load %arg2[%c48_139, %c0_140] : memref<64x64xf32, #tpu.memory_space<vmem>>, vector<8x64xf32>
    %cst_141 = arith.constant 0.000000e+00 : f32
    %336 = vector.broadcast %cst_141 : f32 to vector<8x64xf32>
    %337 = arith.cmpf ogt, %335, %336 : vector<8x64xf32>
    %338 = vector.extract_strided_slice %337 {offsets = [0, 0], sizes = [8, 32], strides = [1, 1]} : vector<8x64xi1> to vector<8x32xi1>
    %339 = vector.extract_strided_slice %334 {offsets = [0, 0], sizes = [8, 32], strides = [1, 1]} : vector<8x64xf32> to vector<8x32xf32>
    %cst_142 = arith.constant 0.000000e+00 : f32
    %340 = vector.broadcast %cst_142 : f32 to vector<8x32xf32>
    %341 = arith.select %338, %339, %340 : vector<8x32xi1>, vector<8x32xf32>
    %c48_143 = arith.constant 48 : index
    %c0_144 = arith.constant 0 : index
    %342 = vector.load %arg14[%c48_143, %c0_144] : memref<64x64xf32, #tpu.memory_space<vmem>>, vector<8x32xf32>
    tpu.vector_store %arg14[%c48_143, %c0_144], %341 {strides = array<i32>} : memref<64x64xf32, #tpu.memory_space<vmem>>, vector<8x32xf32>,
    %343 = vector.extract_strided_slice %337 {offsets = [0, 32], sizes = [8, 32], strides = [1, 1]} : vector<8x64xi1> to vector<8x32xi1>
    %344 = vector.extract_strided_slice %334 {offsets = [0, 32], sizes = [8, 32], strides = [1, 1]} : vector<8x64xf32> to vector<8x32xf32>
    %cst_145 = arith.constant 0.000000e+00 : f32
    %345 = vector.broadcast %cst_145 : f32 to vector<8x32xf32>
    %346 = arith.select %343, %344, %345 : vector<8x32xi1>, vector<8x32xf32>
    %c8_146 = arith.constant 8 : index
    %c32_147 = arith.constant 32 : index
    %347 = vector.load %arg14[%c8_146, %c32_147] : memref<64x64xf32, #tpu.memory_space<vmem>>, vector<8x32xf32>
    tpu.vector_store %arg14[%c8_146, %c32_147], %346 {strides = array<i32>} : memref<64x64xf32, #tpu.memory_space<vmem>>, vector<8x32xf32>,
    %348 = arith.select %337, %334, %300 : vector<8x64xi1>, vector<8x64xf32>
    %c56_148 = arith.constant 56 : index
    %c0_149 = arith.constant 0 : index
    %349 = vector.load %arg13[%c56_148, %c0_149] : memref<64x192xf32, #tpu.memory_space<vmem>>, vector<8x192xf32>
    %c0_150 = arith.constant 0 : index
    %c0_151 = arith.constant 0 : index
    %350 = vector.load %arg13[%c0_150, %c0_151] : memref<64x192xf32, #tpu.memory_space<vmem>>, vector<8x192xf32>
    %351 = arith.select %4, %349, %350 : vector<8x192xi1>, vector<8x192xf32>
    %c0_152 = arith.constant 0 : index
    %c0_153 = arith.constant 0 : index
    %352 = vector.load %arg5[%c0_152, %c0_153] : memref<64x192xf32, #tpu.memory_space<vmem>>, vector<64x192xf32>
    %cst_154 = arith.constant dense<0.000000e+00> : vector<8x192xf32>
    %353 = tpu.matmul %348, %352, %cst_154 {dimension_numbers = #tpu.dot_dimension_numbers<[1], [0], [0], [1], [0, 0, 1, 1], [], []>} : vector<8x64xf32>, vector<64x192xf32>, vector<8x192xf32> -> vector<8x192xf32>
    %c0_155 = arith.constant 0 : index
    %c0_156 = arith.constant 0 : index
    %354 = vector.load %arg6[%c0_155, %c0_156] : memref<1x192xf32, #tpu.memory_space<vmem>>, vector<1x192xf32>
    %355 = vector.broadcast %354 : vector<1x192xf32> to vector<8x192xf32>
    %356 = arith.addf %353, %355 : vector<8x192xf32>
    %357 = vector.extract_strided_slice %351 {offsets = [0, 0], sizes = [8, 64], strides = [1, 1]} : vector<8x192xf32> to vector<8x64xf32>
    %358 = vector.extract_strided_slice %356 {offsets = [0, 0], sizes = [8, 64], strides = [1, 1]} : vector<8x192xf32> to vector<8x64xf32>
    %359 = arith.addf %357, %358 : vector<8x64xf32>
    %360 = arith.negf %359 : vector<8x64xf32>
    %361 = math.exp %360 : vector<8x64xf32>
    %cst_157 = arith.constant 1.000000e+00 : f32
    %362 = vector.broadcast %cst_157 : f32 to vector<8x64xf32>
    %363 = arith.addf %362, %361 : vector<8x64xf32>
    %364 = arith.divf %362, %363 : vector<8x64xf32>
    %365 = vector.extract_strided_slice %351 {offsets = [0, 64], sizes = [8, 64], strides = [1, 1]} : vector<8x192xf32> to vector<8x64xf32>
    %366 = vector.extract_strided_slice %356 {offsets = [0, 64], sizes = [8, 64], strides = [1, 1]} : vector<8x192xf32> to vector<8x64xf32>
    %367 = arith.addf %365, %366 : vector<8x64xf32>
    %368 = arith.negf %367 : vector<8x64xf32>
    %369 = math.exp %368 : vector<8x64xf32>
    %cst_158 = arith.constant 1.000000e+00 : f32
    %370 = vector.broadcast %cst_158 : f32 to vector<8x64xf32>
    %371 = arith.addf %370, %369 : vector<8x64xf32>
    %372 = arith.divf %370, %371 : vector<8x64xf32>
    %373 = vector.extract_strided_slice %351 {offsets = [0, 128], sizes = [8, 64], strides = [1, 1]} : vector<8x192xf32> to vector<8x64xf32>
    %374 = vector.extract_strided_slice %356 {offsets = [0, 128], sizes = [8, 64], strides = [1, 1]} : vector<8x192xf32> to vector<8x64xf32>
    %375 = arith.mulf %364, %374 : vector<8x64xf32>
    %376 = arith.addf %373, %375 : vector<8x64xf32>
    %377 = math.tanh %376 : vector<8x64xf32>
    %cst_159 = arith.constant 1.000000e+00 : f32
    %378 = vector.broadcast %cst_159 : f32 to vector<8x64xf32>
    %379 = arith.subf %378, %372 : vector<8x64xf32>
    %380 = arith.mulf %379, %377 : vector<8x64xf32>
    %381 = arith.mulf %372, %348 : vector<8x64xf32>
    %382 = arith.addf %380, %381 : vector<8x64xf32>
    %c56_160 = arith.constant 56 : index
    %c0_161 = arith.constant 0 : index
    %383 = vector.load %arg2[%c56_160, %c0_161] : memref<64x64xf32, #tpu.memory_space<vmem>>, vector<8x64xf32>
    %cst_162 = arith.constant 0.000000e+00 : f32
    %384 = vector.broadcast %cst_162 : f32 to vector<8x64xf32>
    %385 = arith.cmpf ogt, %383, %384 : vector<8x64xf32>
    %386 = vector.extract_strided_slice %385 {offsets = [0, 0], sizes = [8, 32], strides = [1, 1]} : vector<8x64xi1> to vector<8x32xi1>
    %387 = vector.extract_strided_slice %382 {offsets = [0, 0], sizes = [8, 32], strides = [1, 1]} : vector<8x64xf32> to vector<8x32xf32>
    %cst_163 = arith.constant 0.000000e+00 : f32
    %388 = vector.broadcast %cst_163 : f32 to vector<8x32xf32>
    %389 = arith.select %386, %387, %388 : vector<8x32xi1>, vector<8x32xf32>
    %c56_164 = arith.constant 56 : index
    %c0_165 = arith.constant 0 : index
    %390 = vector.load %arg14[%c56_164, %c0_165] : memref<64x64xf32, #tpu.memory_space<vmem>>, vector<8x32xf32>
    tpu.vector_store %arg14[%c56_164, %c0_165], %389 {strides = array<i32>} : memref<64x64xf32, #tpu.memory_space<vmem>>, vector<8x32xf32>,
    %391 = vector.extract_strided_slice %385 {offsets = [0, 32], sizes = [8, 32], strides = [1, 1]} : vector<8x64xi1> to vector<8x32xi1>
    %392 = vector.extract_strided_slice %382 {offsets = [0, 32], sizes = [8, 32], strides = [1, 1]} : vector<8x64xf32> to vector<8x32xf32>
    %cst_166 = arith.constant 0.000000e+00 : f32
    %393 = vector.broadcast %cst_166 : f32 to vector<8x32xf32>
    %394 = arith.select %391, %392, %393 : vector<8x32xi1>, vector<8x32xf32>
    %c0_167 = arith.constant 0 : index
    %c32_168 = arith.constant 32 : index
    %395 = vector.load %arg14[%c0_167, %c32_168] : memref<64x64xf32, #tpu.memory_space<vmem>>, vector<8x32xf32>
    tpu.vector_store %arg14[%c0_167, %c32_168], %394 {strides = array<i32>} : memref<64x64xf32, #tpu.memory_space<vmem>>, vector<8x32xf32>,
    %396 = arith.select %385, %382, %348 : vector<8x64xi1>, vector<8x64xf32>
    %397 = vector.extract_strided_slice %396 {offsets = [0, 0], sizes = [8, 32], strides = [1, 1]} : vector<8x64xf32> to vector<8x32xf32>
    %c0_169 = arith.constant 0 : index
    %c0_170 = arith.constant 0 : index
    %c0_171 = arith.constant 0 : index
    %398 = vector.load %arg12[%c0_169, %c0_170, %c0_171] : memref<4x8x32xf32, #tpu.memory_space<vmem>>, vector<1x8x32xf32>
    %399 = vector.shape_cast %398 : vector<1x8x32xf32> to vector<8x32xf32>
    %400 = vector.shape_cast %397 : vector<8x32xf32> to vector<1x8x32xf32>
    tpu.vector_store %arg12[%c0_169, %c0_170, %c0_171], %400 {strides = array<i32>} : memref<4x8x32xf32, #tpu.memory_space<vmem>>, vector<1x8x32xf32>,
    %401 = vector.extract_strided_slice %396 {offsets = [0, 32], sizes = [8, 32], strides = [1, 1]} : vector<8x64xf32> to vector<8x32xf32>
    %c1 = arith.constant 1 : index
    %c0_172 = arith.constant 0 : index
    %c0_173 = arith.constant 0 : index
    %402 = vector.load %arg12[%c1, %c0_172, %c0_173] : memref<4x8x32xf32, #tpu.memory_space<vmem>>, vector<1x8x32xf32>
    %403 = vector.shape_cast %402 : vector<1x8x32xf32> to vector<8x32xf32>
    %404 = vector.shape_cast %401 : vector<8x32xf32> to vector<1x8x32xf32>
    tpu.vector_store %arg12[%c1, %c0_172, %c0_173], %404 {strides = array<i32>} : memref<4x8x32xf32, #tpu.memory_space<vmem>>, vector<1x8x32xf32>,
    %c0_174 = arith.constant 0 : index
    %c0_175 = arith.constant 0 : index
    %405 = vector.load %arg14[%c0_174, %c0_175] : memref<64x64xf32, #tpu.memory_space<vmem>>, vector<64x64xf32>
    %c0_176 = arith.constant 0 : index
    %c0_177 = arith.constant 0 : index
    %406 = vector.load %arg7[%c0_176, %c0_177] : memref<64x192xf32, #tpu.memory_space<vmem>>, vector<64x192xf32>
    %cst_178 = arith.constant dense<0.000000e+00> : vector<64x192xf32>
    %407 = tpu.matmul %405, %406, %cst_178 {dimension_numbers = #tpu.dot_dimension_numbers<[1], [0], [0], [1], [0, 0, 1, 1], [], []>} : vector<64x64xf32>, vector<64x192xf32>, vector<64x192xf32> -> vector<64x192xf32>
    %c0_179 = arith.constant 0 : index
    %c0_180 = arith.constant 0 : index
    %408 = vector.load %arg8[%c0_179, %c0_180] : memref<1x192xf32, #tpu.memory_space<vmem>>, vector<1x192xf32>
    %409 = vector.broadcast %408 : vector<1x192xf32> to vector<64x192xf32>
    %410 = arith.addf %407, %409 : vector<64x192xf32>
    %c0_181 = arith.constant 0 : index
    %c0_182 = arith.constant 0 : index
    %411 = vector.load %arg13[%c0_181, %c0_182] : memref<64x192xf32, #tpu.memory_space<vmem>>, vector<64x192xf32>
    tpu.vector_store %arg13[%c0_181, %c0_182], %410 {strides = array<i32>} : memref<64x192xf32, #tpu.memory_space<vmem>>, vector<64x192xf32>,
    %cst_183 = arith.constant 0.000000e+00 : f32
    %412 = vector.broadcast %cst_183 : f32 to vector<8x64xf32>
    %c0_184 = arith.constant 0 : index
    %c0_185 = arith.constant 0 : index
    %413 = vector.load %arg13[%c0_184, %c0_185] : memref<64x192xf32, #tpu.memory_space<vmem>>, vector<8x192xf32>
    %c56_186 = arith.constant 56 : index
    %c0_187 = arith.constant 0 : index
    %414 = vector.load %arg13[%c56_186, %c0_187] : memref<64x192xf32, #tpu.memory_space<vmem>>, vector<8x192xf32>
    %415 = arith.select %4, %413, %414 : vector<8x192xi1>, vector<8x192xf32>
    %c0_188 = arith.constant 0 : index
    %c0_189 = arith.constant 0 : index
    %416 = vector.load %arg9[%c0_188, %c0_189] : memref<64x192xf32, #tpu.memory_space<vmem>>, vector<64x192xf32>
    %cst_190 = arith.constant dense<0.000000e+00> : vector<8x192xf32>
    %417 = tpu.matmul %412, %416, %cst_190 {dimension_numbers = #tpu.dot_dimension_numbers<[1], [0], [0], [1], [0, 0, 1, 1], [], []>} : vector<8x64xf32>, vector<64x192xf32>, vector<8x192xf32> -> vector<8x192xf32>
    %c0_191 = arith.constant 0 : index
    %c0_192 = arith.constant 0 : index
    %418 = vector.load %arg10[%c0_191, %c0_192] : memref<1x192xf32, #tpu.memory_space<vmem>>, vector<1x192xf32>
    %419 = vector.broadcast %418 : vector<1x192xf32> to vector<8x192xf32>
    %420 = arith.addf %417, %419 : vector<8x192xf32>
    %421 = vector.extract_strided_slice %415 {offsets = [0, 0], sizes = [8, 64], strides = [1, 1]} : vector<8x192xf32> to vector<8x64xf32>
    %422 = vector.extract_strided_slice %420 {offsets = [0, 0], sizes = [8, 64], strides = [1, 1]} : vector<8x192xf32> to vector<8x64xf32>
    %423 = arith.addf %421, %422 : vector<8x64xf32>
    %424 = arith.negf %423 : vector<8x64xf32>
    %425 = math.exp %424 : vector<8x64xf32>
    %cst_193 = arith.constant 1.000000e+00 : f32
    %426 = vector.broadcast %cst_193 : f32 to vector<8x64xf32>
    %427 = arith.addf %426, %425 : vector<8x64xf32>
    %428 = arith.divf %426, %427 : vector<8x64xf32>
    %429 = vector.extract_strided_slice %415 {offsets = [0, 64], sizes = [8, 64], strides = [1, 1]} : vector<8x192xf32> to vector<8x64xf32>
    %430 = vector.extract_strided_slice %420 {offsets = [0, 64], sizes = [8, 64], strides = [1, 1]} : vector<8x192xf32> to vector<8x64xf32>
    %431 = arith.addf %429, %430 : vector<8x64xf32>
    %432 = arith.negf %431 : vector<8x64xf32>
    %433 = math.exp %432 : vector<8x64xf32>
    %cst_194 = arith.constant 1.000000e+00 : f32
    %434 = vector.broadcast %cst_194 : f32 to vector<8x64xf32>
    %435 = arith.addf %434, %433 : vector<8x64xf32>
    %436 = arith.divf %434, %435 : vector<8x64xf32>
    %437 = vector.extract_strided_slice %415 {offsets = [0, 128], sizes = [8, 64], strides = [1, 1]} : vector<8x192xf32> to vector<8x64xf32>
    %438 = vector.extract_strided_slice %420 {offsets = [0, 128], sizes = [8, 64], strides = [1, 1]} : vector<8x192xf32> to vector<8x64xf32>
    %439 = arith.mulf %428, %438 : vector<8x64xf32>
    %440 = arith.addf %437, %439 : vector<8x64xf32>
    %441 = math.tanh %440 : vector<8x64xf32>
    %cst_195 = arith.constant 1.000000e+00 : f32
    %442 = vector.broadcast %cst_195 : f32 to vector<8x64xf32>
    %443 = arith.subf %442, %436 : vector<8x64xf32>
    %444 = arith.mulf %443, %441 : vector<8x64xf32>
    %445 = arith.mulf %436, %412 : vector<8x64xf32>
    %446 = arith.addf %444, %445 : vector<8x64xf32>
    %c0_196 = arith.constant 0 : index
    %c0_197 = arith.constant 0 : index
    %447 = vector.load %arg2[%c0_196, %c0_197] : memref<64x64xf32, #tpu.memory_space<vmem>>, vector<8x64xf32>
    %cst_198 = arith.constant 0.000000e+00 : f32
    %448 = vector.broadcast %cst_198 : f32 to vector<8x64xf32>
    %449 = arith.cmpf ogt, %447, %448 : vector<8x64xf32>
    %450 = vector.extract_strided_slice %449 {offsets = [0, 0], sizes = [8, 32], strides = [1, 1]} : vector<8x64xi1> to vector<8x32xi1>
    %451 = vector.extract_strided_slice %446 {offsets = [0, 0], sizes = [8, 32], strides = [1, 1]} : vector<8x64xf32> to vector<8x32xf32>
    %cst_199 = arith.constant 0.000000e+00 : f32
    %452 = vector.broadcast %cst_199 : f32 to vector<8x32xf32>
    %453 = arith.select %450, %451, %452 : vector<8x32xi1>, vector<8x32xf32>
    %c0_200 = arith.constant 0 : index
    %c0_201 = arith.constant 0 : index
    %454 = vector.load %arg14[%c0_200, %c0_201] : memref<64x64xf32, #tpu.memory_space<vmem>>, vector<8x32xf32>
    tpu.vector_store %arg14[%c0_200, %c0_201], %453 {strides = array<i32>} : memref<64x64xf32, #tpu.memory_space<vmem>>, vector<8x32xf32>,
    %455 = vector.extract_strided_slice %449 {offsets = [0, 32], sizes = [8, 32], strides = [1, 1]} : vector<8x64xi1> to vector<8x32xi1>
    %456 = vector.extract_strided_slice %446 {offsets = [0, 32], sizes = [8, 32], strides = [1, 1]} : vector<8x64xf32> to vector<8x32xf32>
    %cst_202 = arith.constant 0.000000e+00 : f32
    %457 = vector.broadcast %cst_202 : f32 to vector<8x32xf32>
    %458 = arith.select %455, %456, %457 : vector<8x32xi1>, vector<8x32xf32>
    %c56_203 = arith.constant 56 : index
    %c32_204 = arith.constant 32 : index
    %459 = vector.load %arg14[%c56_203, %c32_204] : memref<64x64xf32, #tpu.memory_space<vmem>>, vector<8x32xf32>
    tpu.vector_store %arg14[%c56_203, %c32_204], %458 {strides = array<i32>} : memref<64x64xf32, #tpu.memory_space<vmem>>, vector<8x32xf32>,
    %460 = arith.select %449, %446, %412 : vector<8x64xi1>, vector<8x64xf32>
    %c8_205 = arith.constant 8 : index
    %c0_206 = arith.constant 0 : index
    %461 = vector.load %arg13[%c8_205, %c0_206] : memref<64x192xf32, #tpu.memory_space<vmem>>, vector<8x192xf32>
    %c48_207 = arith.constant 48 : index
    %c0_208 = arith.constant 0 : index
    %462 = vector.load %arg13[%c48_207, %c0_208] : memref<64x192xf32, #tpu.memory_space<vmem>>, vector<8x192xf32>
    %463 = arith.select %4, %461, %462 : vector<8x192xi1>, vector<8x192xf32>
    %c0_209 = arith.constant 0 : index
    %c0_210 = arith.constant 0 : index
    %464 = vector.load %arg9[%c0_209, %c0_210] : memref<64x192xf32, #tpu.memory_space<vmem>>, vector<64x192xf32>
    %cst_211 = arith.constant dense<0.000000e+00> : vector<8x192xf32>
    %465 = tpu.matmul %460, %464, %cst_211 {dimension_numbers = #tpu.dot_dimension_numbers<[1], [0], [0], [1], [0, 0, 1, 1], [], []>} : vector<8x64xf32>, vector<64x192xf32>, vector<8x192xf32> -> vector<8x192xf32>
    %c0_212 = arith.constant 0 : index
    %c0_213 = arith.constant 0 : index
    %466 = vector.load %arg10[%c0_212, %c0_213] : memref<1x192xf32, #tpu.memory_space<vmem>>, vector<1x192xf32>
    %467 = vector.broadcast %466 : vector<1x192xf32> to vector<8x192xf32>
    %468 = arith.addf %465, %467 : vector<8x192xf32>
    %469 = vector.extract_strided_slice %463 {offsets = [0, 0], sizes = [8, 64], strides = [1, 1]} : vector<8x192xf32> to vector<8x64xf32>
    %470 = vector.extract_strided_slice %468 {offsets = [0, 0], sizes = [8, 64], strides = [1, 1]} : vector<8x192xf32> to vector<8x64xf32>
    %471 = arith.addf %469, %470 : vector<8x64xf32>
    %472 = arith.negf %471 : vector<8x64xf32>
    %473 = math.exp %472 : vector<8x64xf32>
    %cst_214 = arith.constant 1.000000e+00 : f32
    %474 = vector.broadcast %cst_214 : f32 to vector<8x64xf32>
    %475 = arith.addf %474, %473 : vector<8x64xf32>
    %476 = arith.divf %474, %475 : vector<8x64xf32>
    %477 = vector.extract_strided_slice %463 {offsets = [0, 64], sizes = [8, 64], strides = [1, 1]} : vector<8x192xf32> to vector<8x64xf32>
    %478 = vector.extract_strided_slice %468 {offsets = [0, 64], sizes = [8, 64], strides = [1, 1]} : vector<8x192xf32> to vector<8x64xf32>
    %479 = arith.addf %477, %478 : vector<8x64xf32>
    %480 = arith.negf %479 : vector<8x64xf32>
    %481 = math.exp %480 : vector<8x64xf32>
    %cst_215 = arith.constant 1.000000e+00 : f32
    %482 = vector.broadcast %cst_215 : f32 to vector<8x64xf32>
    %483 = arith.addf %482, %481 : vector<8x64xf32>
    %484 = arith.divf %482, %483 : vector<8x64xf32>
    %485 = vector.extract_strided_slice %463 {offsets = [0, 128], sizes = [8, 64], strides = [1, 1]} : vector<8x192xf32> to vector<8x64xf32>
    %486 = vector.extract_strided_slice %468 {offsets = [0, 128], sizes = [8, 64], strides = [1, 1]} : vector<8x192xf32> to vector<8x64xf32>
    %487 = arith.mulf %476, %486 : vector<8x64xf32>
    %488 = arith.addf %485, %487 : vector<8x64xf32>
    %489 = math.tanh %488 : vector<8x64xf32>
    %cst_216 = arith.constant 1.000000e+00 : f32
    %490 = vector.broadcast %cst_216 : f32 to vector<8x64xf32>
    %491 = arith.subf %490, %484 : vector<8x64xf32>
    %492 = arith.mulf %491, %489 : vector<8x64xf32>
    %493 = arith.mulf %484, %460 : vector<8x64xf32>
    %494 = arith.addf %492, %493 : vector<8x64xf32>
    %c8_217 = arith.constant 8 : index
    %c0_218 = arith.constant 0 : index
    %495 = vector.load %arg2[%c8_217, %c0_218] : memref<64x64xf32, #tpu.memory_space<vmem>>, vector<8x64xf32>
    %cst_219 = arith.constant 0.000000e+00 : f32
    %496 = vector.broadcast %cst_219 : f32 to vector<8x64xf32>
    %497 = arith.cmpf ogt, %495, %496 : vector<8x64xf32>
    %498 = vector.extract_strided_slice %497 {offsets = [0, 0], sizes = [8, 32], strides = [1, 1]} : vector<8x64xi1> to vector<8x32xi1>
    %499 = vector.extract_strided_slice %494 {offsets = [0, 0], sizes = [8, 32], strides = [1, 1]} : vector<8x64xf32> to vector<8x32xf32>
    %cst_220 = arith.constant 0.000000e+00 : f32
    %500 = vector.broadcast %cst_220 : f32 to vector<8x32xf32>
    %501 = arith.select %498, %499, %500 : vector<8x32xi1>, vector<8x32xf32>
    %c8_221 = arith.constant 8 : index
    %c0_222 = arith.constant 0 : index
    %502 = vector.load %arg14[%c8_221, %c0_222] : memref<64x64xf32, #tpu.memory_space<vmem>>, vector<8x32xf32>
    tpu.vector_store %arg14[%c8_221, %c0_222], %501 {strides = array<i32>} : memref<64x64xf32, #tpu.memory_space<vmem>>, vector<8x32xf32>,
    %503 = vector.extract_strided_slice %497 {offsets = [0, 32], sizes = [8, 32], strides = [1, 1]} : vector<8x64xi1> to vector<8x32xi1>
    %504 = vector.extract_strided_slice %494 {offsets = [0, 32], sizes = [8, 32], strides = [1, 1]} : vector<8x64xf32> to vector<8x32xf32>
    %cst_223 = arith.constant 0.000000e+00 : f32
    %505 = vector.broadcast %cst_223 : f32 to vector<8x32xf32>
    %506 = arith.select %503, %504, %505 : vector<8x32xi1>, vector<8x32xf32>
    %c48_224 = arith.constant 48 : index
    %c32_225 = arith.constant 32 : index
    %507 = vector.load %arg14[%c48_224, %c32_225] : memref<64x64xf32, #tpu.memory_space<vmem>>, vector<8x32xf32>
    tpu.vector_store %arg14[%c48_224, %c32_225], %506 {strides = array<i32>} : memref<64x64xf32, #tpu.memory_space<vmem>>, vector<8x32xf32>,
    %508 = arith.select %497, %494, %460 : vector<8x64xi1>, vector<8x64xf32>
    %c16_226 = arith.constant 16 : index
    %c0_227 = arith.constant 0 : index
    %509 = vector.load %arg13[%c16_226, %c0_227] : memref<64x192xf32, #tpu.memory_space<vmem>>, vector<8x192xf32>
    %c40_228 = arith.constant 40 : index
    %c0_229 = arith.constant 0 : index
    %510 = vector.load %arg13[%c40_228, %c0_229] : memref<64x192xf32, #tpu.memory_space<vmem>>, vector<8x192xf32>
    %511 = arith.select %4, %509, %510 : vector<8x192xi1>, vector<8x192xf32>
    %c0_230 = arith.constant 0 : index
    %c0_231 = arith.constant 0 : index
    %512 = vector.load %arg9[%c0_230, %c0_231] : memref<64x192xf32, #tpu.memory_space<vmem>>, vector<64x192xf32>
    %cst_232 = arith.constant dense<0.000000e+00> : vector<8x192xf32>
    %513 = tpu.matmul %508, %512, %cst_232 {dimension_numbers = #tpu.dot_dimension_numbers<[1], [0], [0], [1], [0, 0, 1, 1], [], []>} : vector<8x64xf32>, vector<64x192xf32>, vector<8x192xf32> -> vector<8x192xf32>
    %c0_233 = arith.constant 0 : index
    %c0_234 = arith.constant 0 : index
    %514 = vector.load %arg10[%c0_233, %c0_234] : memref<1x192xf32, #tpu.memory_space<vmem>>, vector<1x192xf32>
    %515 = vector.broadcast %514 : vector<1x192xf32> to vector<8x192xf32>
    %516 = arith.addf %513, %515 : vector<8x192xf32>
    %517 = vector.extract_strided_slice %511 {offsets = [0, 0], sizes = [8, 64], strides = [1, 1]} : vector<8x192xf32> to vector<8x64xf32>
    %518 = vector.extract_strided_slice %516 {offsets = [0, 0], sizes = [8, 64], strides = [1, 1]} : vector<8x192xf32> to vector<8x64xf32>
    %519 = arith.addf %517, %518 : vector<8x64xf32>
    %520 = arith.negf %519 : vector<8x64xf32>
    %521 = math.exp %520 : vector<8x64xf32>
    %cst_235 = arith.constant 1.000000e+00 : f32
    %522 = vector.broadcast %cst_235 : f32 to vector<8x64xf32>
    %523 = arith.addf %522, %521 : vector<8x64xf32>
    %524 = arith.divf %522, %523 : vector<8x64xf32>
    %525 = vector.extract_strided_slice %511 {offsets = [0, 64], sizes = [8, 64], strides = [1, 1]} : vector<8x192xf32> to vector<8x64xf32>
    %526 = vector.extract_strided_slice %516 {offsets = [0, 64], sizes = [8, 64], strides = [1, 1]} : vector<8x192xf32> to vector<8x64xf32>
    %527 = arith.addf %525, %526 : vector<8x64xf32>
    %528 = arith.negf %527 : vector<8x64xf32>
    %529 = math.exp %528 : vector<8x64xf32>
    %cst_236 = arith.constant 1.000000e+00 : f32
    %530 = vector.broadcast %cst_236 : f32 to vector<8x64xf32>
    %531 = arith.addf %530, %529 : vector<8x64xf32>
    %532 = arith.divf %530, %531 : vector<8x64xf32>
    %533 = vector.extract_strided_slice %511 {offsets = [0, 128], sizes = [8, 64], strides = [1, 1]} : vector<8x192xf32> to vector<8x64xf32>
    %534 = vector.extract_strided_slice %516 {offsets = [0, 128], sizes = [8, 64], strides = [1, 1]} : vector<8x192xf32> to vector<8x64xf32>
    %535 = arith.mulf %524, %534 : vector<8x64xf32>
    %536 = arith.addf %533, %535 : vector<8x64xf32>
    %537 = math.tanh %536 : vector<8x64xf32>
    %cst_237 = arith.constant 1.000000e+00 : f32
    %538 = vector.broadcast %cst_237 : f32 to vector<8x64xf32>
    %539 = arith.subf %538, %532 : vector<8x64xf32>
    %540 = arith.mulf %539, %537 : vector<8x64xf32>
    %541 = arith.mulf %532, %508 : vector<8x64xf32>
    %542 = arith.addf %540, %541 : vector<8x64xf32>
    %c16_238 = arith.constant 16 : index
    %c0_239 = arith.constant 0 : index
    %543 = vector.load %arg2[%c16_238, %c0_239] : memref<64x64xf32, #tpu.memory_space<vmem>>, vector<8x64xf32>
    %cst_240 = arith.constant 0.000000e+00 : f32
    %544 = vector.broadcast %cst_240 : f32 to vector<8x64xf32>
    %545 = arith.cmpf ogt, %543, %544 : vector<8x64xf32>
    %546 = vector.extract_strided_slice %545 {offsets = [0, 0], sizes = [8, 32], strides = [1, 1]} : vector<8x64xi1> to vector<8x32xi1>
    %547 = vector.extract_strided_slice %542 {offsets = [0, 0], sizes = [8, 32], strides = [1, 1]} : vector<8x64xf32> to vector<8x32xf32>
    %cst_241 = arith.constant 0.000000e+00 : f32
    %548 = vector.broadcast %cst_241 : f32 to vector<8x32xf32>
    %549 = arith.select %546, %547, %548 : vector<8x32xi1>, vector<8x32xf32>
    %c16_242 = arith.constant 16 : index
    %c0_243 = arith.constant 0 : index
    %550 = vector.load %arg14[%c16_242, %c0_243] : memref<64x64xf32, #tpu.memory_space<vmem>>, vector<8x32xf32>
    tpu.vector_store %arg14[%c16_242, %c0_243], %549 {strides = array<i32>} : memref<64x64xf32, #tpu.memory_space<vmem>>, vector<8x32xf32>,
    %551 = vector.extract_strided_slice %545 {offsets = [0, 32], sizes = [8, 32], strides = [1, 1]} : vector<8x64xi1> to vector<8x32xi1>
    %552 = vector.extract_strided_slice %542 {offsets = [0, 32], sizes = [8, 32], strides = [1, 1]} : vector<8x64xf32> to vector<8x32xf32>
    %cst_244 = arith.constant 0.000000e+00 : f32
    %553 = vector.broadcast %cst_244 : f32 to vector<8x32xf32>
    %554 = arith.select %551, %552, %553 : vector<8x32xi1>, vector<8x32xf32>
    %c40_245 = arith.constant 40 : index
    %c32_246 = arith.constant 32 : index
    %555 = vector.load %arg14[%c40_245, %c32_246] : memref<64x64xf32, #tpu.memory_space<vmem>>, vector<8x32xf32>
    tpu.vector_store %arg14[%c40_245, %c32_246], %554 {strides = array<i32>} : memref<64x64xf32, #tpu.memory_space<vmem>>, vector<8x32xf32>,
    %556 = arith.select %545, %542, %508 : vector<8x64xi1>, vector<8x64xf32>
    %c24_247 = arith.constant 24 : index
    %c0_248 = arith.constant 0 : index
    %557 = vector.load %arg13[%c24_247, %c0_248] : memref<64x192xf32, #tpu.memory_space<vmem>>, vector<8x192xf32>
    %c32_249 = arith.constant 32 : index
    %c0_250 = arith.constant 0 : index
    %558 = vector.load %arg13[%c32_249, %c0_250] : memref<64x192xf32, #tpu.memory_space<vmem>>, vector<8x192xf32>
    %559 = arith.select %4, %557, %558 : vector<8x192xi1>, vector<8x192xf32>
    %c0_251 = arith.constant 0 : index
    %c0_252 = arith.constant 0 : index
    %560 = vector.load %arg9[%c0_251, %c0_252] : memref<64x192xf32, #tpu.memory_space<vmem>>, vector<64x192xf32>
    %cst_253 = arith.constant dense<0.000000e+00> : vector<8x192xf32>
    %561 = tpu.matmul %556, %560, %cst_253 {dimension_numbers = #tpu.dot_dimension_numbers<[1], [0], [0], [1], [0, 0, 1, 1], [], []>} : vector<8x64xf32>, vector<64x192xf32>, vector<8x192xf32> -> vector<8x192xf32>
    %c0_254 = arith.constant 0 : index
    %c0_255 = arith.constant 0 : index
    %562 = vector.load %arg10[%c0_254, %c0_255] : memref<1x192xf32, #tpu.memory_space<vmem>>, vector<1x192xf32>
    %563 = vector.broadcast %562 : vector<1x192xf32> to vector<8x192xf32>
    %564 = arith.addf %561, %563 : vector<8x192xf32>
    %565 = vector.extract_strided_slice %559 {offsets = [0, 0], sizes = [8, 64], strides = [1, 1]} : vector<8x192xf32> to vector<8x64xf32>
    %566 = vector.extract_strided_slice %564 {offsets = [0, 0], sizes = [8, 64], strides = [1, 1]} : vector<8x192xf32> to vector<8x64xf32>
    %567 = arith.addf %565, %566 : vector<8x64xf32>
    %568 = arith.negf %567 : vector<8x64xf32>
    %569 = math.exp %568 : vector<8x64xf32>
    %cst_256 = arith.constant 1.000000e+00 : f32
    %570 = vector.broadcast %cst_256 : f32 to vector<8x64xf32>
    %571 = arith.addf %570, %569 : vector<8x64xf32>
    %572 = arith.divf %570, %571 : vector<8x64xf32>
    %573 = vector.extract_strided_slice %559 {offsets = [0, 64], sizes = [8, 64], strides = [1, 1]} : vector<8x192xf32> to vector<8x64xf32>
    %574 = vector.extract_strided_slice %564 {offsets = [0, 64], sizes = [8, 64], strides = [1, 1]} : vector<8x192xf32> to vector<8x64xf32>
    %575 = arith.addf %573, %574 : vector<8x64xf32>
    %576 = arith.negf %575 : vector<8x64xf32>
    %577 = math.exp %576 : vector<8x64xf32>
    %cst_257 = arith.constant 1.000000e+00 : f32
    %578 = vector.broadcast %cst_257 : f32 to vector<8x64xf32>
    %579 = arith.addf %578, %577 : vector<8x64xf32>
    %580 = arith.divf %578, %579 : vector<8x64xf32>
    %581 = vector.extract_strided_slice %559 {offsets = [0, 128], sizes = [8, 64], strides = [1, 1]} : vector<8x192xf32> to vector<8x64xf32>
    %582 = vector.extract_strided_slice %564 {offsets = [0, 128], sizes = [8, 64], strides = [1, 1]} : vector<8x192xf32> to vector<8x64xf32>
    %583 = arith.mulf %572, %582 : vector<8x64xf32>
    %584 = arith.addf %581, %583 : vector<8x64xf32>
    %585 = math.tanh %584 : vector<8x64xf32>
    %cst_258 = arith.constant 1.000000e+00 : f32
    %586 = vector.broadcast %cst_258 : f32 to vector<8x64xf32>
    %587 = arith.subf %586, %580 : vector<8x64xf32>
    %588 = arith.mulf %587, %585 : vector<8x64xf32>
    %589 = arith.mulf %580, %556 : vector<8x64xf32>
    %590 = arith.addf %588, %589 : vector<8x64xf32>
    %c24_259 = arith.constant 24 : index
    %c0_260 = arith.constant 0 : index
    %591 = vector.load %arg2[%c24_259, %c0_260] : memref<64x64xf32, #tpu.memory_space<vmem>>, vector<8x64xf32>
    %cst_261 = arith.constant 0.000000e+00 : f32
    %592 = vector.broadcast %cst_261 : f32 to vector<8x64xf32>
    %593 = arith.cmpf ogt, %591, %592 : vector<8x64xf32>
    %594 = vector.extract_strided_slice %593 {offsets = [0, 0], sizes = [8, 32], strides = [1, 1]} : vector<8x64xi1> to vector<8x32xi1>
    %595 = vector.extract_strided_slice %590 {offsets = [0, 0], sizes = [8, 32], strides = [1, 1]} : vector<8x64xf32> to vector<8x32xf32>
    %cst_262 = arith.constant 0.000000e+00 : f32
    %596 = vector.broadcast %cst_262 : f32 to vector<8x32xf32>
    %597 = arith.select %594, %595, %596 : vector<8x32xi1>, vector<8x32xf32>
    %c24_263 = arith.constant 24 : index
    %c0_264 = arith.constant 0 : index
    %598 = vector.load %arg14[%c24_263, %c0_264] : memref<64x64xf32, #tpu.memory_space<vmem>>, vector<8x32xf32>
    tpu.vector_store %arg14[%c24_263, %c0_264], %597 {strides = array<i32>} : memref<64x64xf32, #tpu.memory_space<vmem>>, vector<8x32xf32>,
    %599 = vector.extract_strided_slice %593 {offsets = [0, 32], sizes = [8, 32], strides = [1, 1]} : vector<8x64xi1> to vector<8x32xi1>
    %600 = vector.extract_strided_slice %590 {offsets = [0, 32], sizes = [8, 32], strides = [1, 1]} : vector<8x64xf32> to vector<8x32xf32>
    %cst_265 = arith.constant 0.000000e+00 : f32
    %601 = vector.broadcast %cst_265 : f32 to vector<8x32xf32>
    %602 = arith.select %599, %600, %601 : vector<8x32xi1>, vector<8x32xf32>
    %c32_266 = arith.constant 32 : index
    %c32_267 = arith.constant 32 : index
    %603 = vector.load %arg14[%c32_266, %c32_267] : memref<64x64xf32, #tpu.memory_space<vmem>>, vector<8x32xf32>
    tpu.vector_store %arg14[%c32_266, %c32_267], %602 {strides = array<i32>} : memref<64x64xf32, #tpu.memory_space<vmem>>, vector<8x32xf32>,
    %604 = arith.select %593, %590, %556 : vector<8x64xi1>, vector<8x64xf32>
    %c32_268 = arith.constant 32 : index
    %c0_269 = arith.constant 0 : index
    %605 = vector.load %arg13[%c32_268, %c0_269] : memref<64x192xf32, #tpu.memory_space<vmem>>, vector<8x192xf32>
    %c24_270 = arith.constant 24 : index
    %c0_271 = arith.constant 0 : index
    %606 = vector.load %arg13[%c24_270, %c0_271] : memref<64x192xf32, #tpu.memory_space<vmem>>, vector<8x192xf32>
    %607 = arith.select %4, %605, %606 : vector<8x192xi1>, vector<8x192xf32>
    %c0_272 = arith.constant 0 : index
    %c0_273 = arith.constant 0 : index
    %608 = vector.load %arg9[%c0_272, %c0_273] : memref<64x192xf32, #tpu.memory_space<vmem>>, vector<64x192xf32>
    %cst_274 = arith.constant dense<0.000000e+00> : vector<8x192xf32>
    %609 = tpu.matmul %604, %608, %cst_274 {dimension_numbers = #tpu.dot_dimension_numbers<[1], [0], [0], [1], [0, 0, 1, 1], [], []>} : vector<8x64xf32>, vector<64x192xf32>, vector<8x192xf32> -> vector<8x192xf32>
    %c0_275 = arith.constant 0 : index
    %c0_276 = arith.constant 0 : index
    %610 = vector.load %arg10[%c0_275, %c0_276] : memref<1x192xf32, #tpu.memory_space<vmem>>, vector<1x192xf32>
    %611 = vector.broadcast %610 : vector<1x192xf32> to vector<8x192xf32>
    %612 = arith.addf %609, %611 : vector<8x192xf32>
    %613 = vector.extract_strided_slice %607 {offsets = [0, 0], sizes = [8, 64], strides = [1, 1]} : vector<8x192xf32> to vector<8x64xf32>
    %614 = vector.extract_strided_slice %612 {offsets = [0, 0], sizes = [8, 64], strides = [1, 1]} : vector<8x192xf32> to vector<8x64xf32>
    %615 = arith.addf %613, %614 : vector<8x64xf32>
    %616 = arith.negf %615 : vector<8x64xf32>
    %617 = math.exp %616 : vector<8x64xf32>
    %cst_277 = arith.constant 1.000000e+00 : f32
    %618 = vector.broadcast %cst_277 : f32 to vector<8x64xf32>
    %619 = arith.addf %618, %617 : vector<8x64xf32>
    %620 = arith.divf %618, %619 : vector<8x64xf32>
    %621 = vector.extract_strided_slice %607 {offsets = [0, 64], sizes = [8, 64], strides = [1, 1]} : vector<8x192xf32> to vector<8x64xf32>
    %622 = vector.extract_strided_slice %612 {offsets = [0, 64], sizes = [8, 64], strides = [1, 1]} : vector<8x192xf32> to vector<8x64xf32>
    %623 = arith.addf %621, %622 : vector<8x64xf32>
    %624 = arith.negf %623 : vector<8x64xf32>
    %625 = math.exp %624 : vector<8x64xf32>
    %cst_278 = arith.constant 1.000000e+00 : f32
    %626 = vector.broadcast %cst_278 : f32 to vector<8x64xf32>
    %627 = arith.addf %626, %625 : vector<8x64xf32>
    %628 = arith.divf %626, %627 : vector<8x64xf32>
    %629 = vector.extract_strided_slice %607 {offsets = [0, 128], sizes = [8, 64], strides = [1, 1]} : vector<8x192xf32> to vector<8x64xf32>
    %630 = vector.extract_strided_slice %612 {offsets = [0, 128], sizes = [8, 64], strides = [1, 1]} : vector<8x192xf32> to vector<8x64xf32>
    %631 = arith.mulf %620, %630 : vector<8x64xf32>
    %632 = arith.addf %629, %631 : vector<8x64xf32>
    %633 = math.tanh %632 : vector<8x64xf32>
    %cst_279 = arith.constant 1.000000e+00 : f32
    %634 = vector.broadcast %cst_279 : f32 to vector<8x64xf32>
    %635 = arith.subf %634, %628 : vector<8x64xf32>
    %636 = arith.mulf %635, %633 : vector<8x64xf32>
    %637 = arith.mulf %628, %604 : vector<8x64xf32>
    %638 = arith.addf %636, %637 : vector<8x64xf32>
    %c32_280 = arith.constant 32 : index
    %c0_281 = arith.constant 0 : index
    %639 = vector.load %arg2[%c32_280, %c0_281] : memref<64x64xf32, #tpu.memory_space<vmem>>, vector<8x64xf32>
    %cst_282 = arith.constant 0.000000e+00 : f32
    %640 = vector.broadcast %cst_282 : f32 to vector<8x64xf32>
    %641 = arith.cmpf ogt, %639, %640 : vector<8x64xf32>
    %642 = vector.extract_strided_slice %641 {offsets = [0, 0], sizes = [8, 32], strides = [1, 1]} : vector<8x64xi1> to vector<8x32xi1>
    %643 = vector.extract_strided_slice %638 {offsets = [0, 0], sizes = [8, 32], strides = [1, 1]} : vector<8x64xf32> to vector<8x32xf32>
    %cst_283 = arith.constant 0.000000e+00 : f32
    %644 = vector.broadcast %cst_283 : f32 to vector<8x32xf32>
    %645 = arith.select %642, %643, %644 : vector<8x32xi1>, vector<8x32xf32>
    %c32_284 = arith.constant 32 : index
    %c0_285 = arith.constant 0 : index
    %646 = vector.load %arg14[%c32_284, %c0_285] : memref<64x64xf32, #tpu.memory_space<vmem>>, vector<8x32xf32>
    tpu.vector_store %arg14[%c32_284, %c0_285], %645 {strides = array<i32>} : memref<64x64xf32, #tpu.memory_space<vmem>>, vector<8x32xf32>,
    %647 = vector.extract_strided_slice %641 {offsets = [0, 32], sizes = [8, 32], strides = [1, 1]} : vector<8x64xi1> to vector<8x32xi1>
    %648 = vector.extract_strided_slice %638 {offsets = [0, 32], sizes = [8, 32], strides = [1, 1]} : vector<8x64xf32> to vector<8x32xf32>
    %cst_286 = arith.constant 0.000000e+00 : f32
    %649 = vector.broadcast %cst_286 : f32 to vector<8x32xf32>
    %650 = arith.select %647, %648, %649 : vector<8x32xi1>, vector<8x32xf32>
    %c24_287 = arith.constant 24 : index
    %c32_288 = arith.constant 32 : index
    %651 = vector.load %arg14[%c24_287, %c32_288] : memref<64x64xf32, #tpu.memory_space<vmem>>, vector<8x32xf32>
    tpu.vector_store %arg14[%c24_287, %c32_288], %650 {strides = array<i32>} : memref<64x64xf32, #tpu.memory_space<vmem>>, vector<8x32xf32>,
    %652 = arith.select %641, %638, %604 : vector<8x64xi1>, vector<8x64xf32>
    %c40_289 = arith.constant 40 : index
    %c0_290 = arith.constant 0 : index
    %653 = vector.load %arg13[%c40_289, %c0_290] : memref<64x192xf32, #tpu.memory_space<vmem>>, vector<8x192xf32>
    %c16_291 = arith.constant 16 : index
    %c0_292 = arith.constant 0 : index
    %654 = vector.load %arg13[%c16_291, %c0_292] : memref<64x192xf32, #tpu.memory_space<vmem>>, vector<8x192xf32>
    %655 = arith.select %4, %653, %654 : vector<8x192xi1>, vector<8x192xf32>
    %c0_293 = arith.constant 0 : index
    %c0_294 = arith.constant 0 : index
    %656 = vector.load %arg9[%c0_293, %c0_294] : memref<64x192xf32, #tpu.memory_space<vmem>>, vector<64x192xf32>
    %cst_295 = arith.constant dense<0.000000e+00> : vector<8x192xf32>
    %657 = tpu.matmul %652, %656, %cst_295 {dimension_numbers = #tpu.dot_dimension_numbers<[1], [0], [0], [1], [0, 0, 1, 1], [], []>} : vector<8x64xf32>, vector<64x192xf32>, vector<8x192xf32> -> vector<8x192xf32>
    %c0_296 = arith.constant 0 : index
    %c0_297 = arith.constant 0 : index
    %658 = vector.load %arg10[%c0_296, %c0_297] : memref<1x192xf32, #tpu.memory_space<vmem>>, vector<1x192xf32>
    %659 = vector.broadcast %658 : vector<1x192xf32> to vector<8x192xf32>
    %660 = arith.addf %657, %659 : vector<8x192xf32>
    %661 = vector.extract_strided_slice %655 {offsets = [0, 0], sizes = [8, 64], strides = [1, 1]} : vector<8x192xf32> to vector<8x64xf32>
    %662 = vector.extract_strided_slice %660 {offsets = [0, 0], sizes = [8, 64], strides = [1, 1]} : vector<8x192xf32> to vector<8x64xf32>
    %663 = arith.addf %661, %662 : vector<8x64xf32>
    %664 = arith.negf %663 : vector<8x64xf32>
    %665 = math.exp %664 : vector<8x64xf32>
    %cst_298 = arith.constant 1.000000e+00 : f32
    %666 = vector.broadcast %cst_298 : f32 to vector<8x64xf32>
    %667 = arith.addf %666, %665 : vector<8x64xf32>
    %668 = arith.divf %666, %667 : vector<8x64xf32>
    %669 = vector.extract_strided_slice %655 {offsets = [0, 64], sizes = [8, 64], strides = [1, 1]} : vector<8x192xf32> to vector<8x64xf32>
    %670 = vector.extract_strided_slice %660 {offsets = [0, 64], sizes = [8, 64], strides = [1, 1]} : vector<8x192xf32> to vector<8x64xf32>
    %671 = arith.addf %669, %670 : vector<8x64xf32>
    %672 = arith.negf %671 : vector<8x64xf32>
    %673 = math.exp %672 : vector<8x64xf32>
    %cst_299 = arith.constant 1.000000e+00 : f32
    %674 = vector.broadcast %cst_299 : f32 to vector<8x64xf32>
    %675 = arith.addf %674, %673 : vector<8x64xf32>
    %676 = arith.divf %674, %675 : vector<8x64xf32>
    %677 = vector.extract_strided_slice %655 {offsets = [0, 128], sizes = [8, 64], strides = [1, 1]} : vector<8x192xf32> to vector<8x64xf32>
    %678 = vector.extract_strided_slice %660 {offsets = [0, 128], sizes = [8, 64], strides = [1, 1]} : vector<8x192xf32> to vector<8x64xf32>
    %679 = arith.mulf %668, %678 : vector<8x64xf32>
    %680 = arith.addf %677, %679 : vector<8x64xf32>
    %681 = math.tanh %680 : vector<8x64xf32>
    %cst_300 = arith.constant 1.000000e+00 : f32
    %682 = vector.broadcast %cst_300 : f32 to vector<8x64xf32>
    %683 = arith.subf %682, %676 : vector<8x64xf32>
    %684 = arith.mulf %683, %681 : vector<8x64xf32>
    %685 = arith.mulf %676, %652 : vector<8x64xf32>
    %686 = arith.addf %684, %685 : vector<8x64xf32>
    %c40_301 = arith.constant 40 : index
    %c0_302 = arith.constant 0 : index
    %687 = vector.load %arg2[%c40_301, %c0_302] : memref<64x64xf32, #tpu.memory_space<vmem>>, vector<8x64xf32>
    %cst_303 = arith.constant 0.000000e+00 : f32
    %688 = vector.broadcast %cst_303 : f32 to vector<8x64xf32>
    %689 = arith.cmpf ogt, %687, %688 : vector<8x64xf32>
    %690 = vector.extract_strided_slice %689 {offsets = [0, 0], sizes = [8, 32], strides = [1, 1]} : vector<8x64xi1> to vector<8x32xi1>
    %691 = vector.extract_strided_slice %686 {offsets = [0, 0], sizes = [8, 32], strides = [1, 1]} : vector<8x64xf32> to vector<8x32xf32>
    %cst_304 = arith.constant 0.000000e+00 : f32
    %692 = vector.broadcast %cst_304 : f32 to vector<8x32xf32>
    %693 = arith.select %690, %691, %692 : vector<8x32xi1>, vector<8x32xf32>
    %c40_305 = arith.constant 40 : index
    %c0_306 = arith.constant 0 : index
    %694 = vector.load %arg14[%c40_305, %c0_306] : memref<64x64xf32, #tpu.memory_space<vmem>>, vector<8x32xf32>
    tpu.vector_store %arg14[%c40_305, %c0_306], %693 {strides = array<i32>} : memref<64x64xf32, #tpu.memory_space<vmem>>, vector<8x32xf32>,
    %695 = vector.extract_strided_slice %689 {offsets = [0, 32], sizes = [8, 32], strides = [1, 1]} : vector<8x64xi1> to vector<8x32xi1>
    %696 = vector.extract_strided_slice %686 {offsets = [0, 32], sizes = [8, 32], strides = [1, 1]} : vector<8x64xf32> to vector<8x32xf32>
    %cst_307 = arith.constant 0.000000e+00 : f32
    %697 = vector.broadcast %cst_307 : f32 to vector<8x32xf32>
    %698 = arith.select %695, %696, %697 : vector<8x32xi1>, vector<8x32xf32>
    %c16_308 = arith.constant 16 : index
    %c32_309 = arith.constant 32 : index
    %699 = vector.load %arg14[%c16_308, %c32_309] : memref<64x64xf32, #tpu.memory_space<vmem>>, vector<8x32xf32>
    tpu.vector_store %arg14[%c16_308, %c32_309], %698 {strides = array<i32>} : memref<64x64xf32, #tpu.memory_space<vmem>>, vector<8x32xf32>,
    %700 = arith.select %689, %686, %652 : vector<8x64xi1>, vector<8x64xf32>
    %c48_310 = arith.constant 48 : index
    %c0_311 = arith.constant 0 : index
    %701 = vector.load %arg13[%c48_310, %c0_311] : memref<64x192xf32, #tpu.memory_space<vmem>>, vector<8x192xf32>
    %c8_312 = arith.constant 8 : index
    %c0_313 = arith.constant 0 : index
    %702 = vector.load %arg13[%c8_312, %c0_313] : memref<64x192xf32, #tpu.memory_space<vmem>>, vector<8x192xf32>
    %703 = arith.select %4, %701, %702 : vector<8x192xi1>, vector<8x192xf32>
    %c0_314 = arith.constant 0 : index
    %c0_315 = arith.constant 0 : index
    %704 = vector.load %arg9[%c0_314, %c0_315] : memref<64x192xf32, #tpu.memory_space<vmem>>, vector<64x192xf32>
    %cst_316 = arith.constant dense<0.000000e+00> : vector<8x192xf32>
    %705 = tpu.matmul %700, %704, %cst_316 {dimension_numbers = #tpu.dot_dimension_numbers<[1], [0], [0], [1], [0, 0, 1, 1], [], []>} : vector<8x64xf32>, vector<64x192xf32>, vector<8x192xf32> -> vector<8x192xf32>
    %c0_317 = arith.constant 0 : index
    %c0_318 = arith.constant 0 : index
    %706 = vector.load %arg10[%c0_317, %c0_318] : memref<1x192xf32, #tpu.memory_space<vmem>>, vector<1x192xf32>
    %707 = vector.broadcast %706 : vector<1x192xf32> to vector<8x192xf32>
    %708 = arith.addf %705, %707 : vector<8x192xf32>
    %709 = vector.extract_strided_slice %703 {offsets = [0, 0], sizes = [8, 64], strides = [1, 1]} : vector<8x192xf32> to vector<8x64xf32>
    %710 = vector.extract_strided_slice %708 {offsets = [0, 0], sizes = [8, 64], strides = [1, 1]} : vector<8x192xf32> to vector<8x64xf32>
    %711 = arith.addf %709, %710 : vector<8x64xf32>
    %712 = arith.negf %711 : vector<8x64xf32>
    %713 = math.exp %712 : vector<8x64xf32>
    %cst_319 = arith.constant 1.000000e+00 : f32
    %714 = vector.broadcast %cst_319 : f32 to vector<8x64xf32>
    %715 = arith.addf %714, %713 : vector<8x64xf32>
    %716 = arith.divf %714, %715 : vector<8x64xf32>
    %717 = vector.extract_strided_slice %703 {offsets = [0, 64], sizes = [8, 64], strides = [1, 1]} : vector<8x192xf32> to vector<8x64xf32>
    %718 = vector.extract_strided_slice %708 {offsets = [0, 64], sizes = [8, 64], strides = [1, 1]} : vector<8x192xf32> to vector<8x64xf32>
    %719 = arith.addf %717, %718 : vector<8x64xf32>
    %720 = arith.negf %719 : vector<8x64xf32>
    %721 = math.exp %720 : vector<8x64xf32>
    %cst_320 = arith.constant 1.000000e+00 : f32
    %722 = vector.broadcast %cst_320 : f32 to vector<8x64xf32>
    %723 = arith.addf %722, %721 : vector<8x64xf32>
    %724 = arith.divf %722, %723 : vector<8x64xf32>
    %725 = vector.extract_strided_slice %703 {offsets = [0, 128], sizes = [8, 64], strides = [1, 1]} : vector<8x192xf32> to vector<8x64xf32>
    %726 = vector.extract_strided_slice %708 {offsets = [0, 128], sizes = [8, 64], strides = [1, 1]} : vector<8x192xf32> to vector<8x64xf32>
    %727 = arith.mulf %716, %726 : vector<8x64xf32>
    %728 = arith.addf %725, %727 : vector<8x64xf32>
    %729 = math.tanh %728 : vector<8x64xf32>
    %cst_321 = arith.constant 1.000000e+00 : f32
    %730 = vector.broadcast %cst_321 : f32 to vector<8x64xf32>
    %731 = arith.subf %730, %724 : vector<8x64xf32>
    %732 = arith.mulf %731, %729 : vector<8x64xf32>
    %733 = arith.mulf %724, %700 : vector<8x64xf32>
    %734 = arith.addf %732, %733 : vector<8x64xf32>
    %c48_322 = arith.constant 48 : index
    %c0_323 = arith.constant 0 : index
    %735 = vector.load %arg2[%c48_322, %c0_323] : memref<64x64xf32, #tpu.memory_space<vmem>>, vector<8x64xf32>
    %cst_324 = arith.constant 0.000000e+00 : f32
    %736 = vector.broadcast %cst_324 : f32 to vector<8x64xf32>
    %737 = arith.cmpf ogt, %735, %736 : vector<8x64xf32>
    %738 = vector.extract_strided_slice %737 {offsets = [0, 0], sizes = [8, 32], strides = [1, 1]} : vector<8x64xi1> to vector<8x32xi1>
    %739 = vector.extract_strided_slice %734 {offsets = [0, 0], sizes = [8, 32], strides = [1, 1]} : vector<8x64xf32> to vector<8x32xf32>
    %cst_325 = arith.constant 0.000000e+00 : f32
    %740 = vector.broadcast %cst_325 : f32 to vector<8x32xf32>
    %741 = arith.select %738, %739, %740 : vector<8x32xi1>, vector<8x32xf32>
    %c48_326 = arith.constant 48 : index
    %c0_327 = arith.constant 0 : index
    %742 = vector.load %arg14[%c48_326, %c0_327] : memref<64x64xf32, #tpu.memory_space<vmem>>, vector<8x32xf32>
    tpu.vector_store %arg14[%c48_326, %c0_327], %741 {strides = array<i32>} : memref<64x64xf32, #tpu.memory_space<vmem>>, vector<8x32xf32>,
    %743 = vector.extract_strided_slice %737 {offsets = [0, 32], sizes = [8, 32], strides = [1, 1]} : vector<8x64xi1> to vector<8x32xi1>
    %744 = vector.extract_strided_slice %734 {offsets = [0, 32], sizes = [8, 32], strides = [1, 1]} : vector<8x64xf32> to vector<8x32xf32>
    %cst_328 = arith.constant 0.000000e+00 : f32
    %745 = vector.broadcast %cst_328 : f32 to vector<8x32xf32>
    %746 = arith.select %743, %744, %745 : vector<8x32xi1>, vector<8x32xf32>
    %c8_329 = arith.constant 8 : index
    %c32_330 = arith.constant 32 : index
    %747 = vector.load %arg14[%c8_329, %c32_330] : memref<64x64xf32, #tpu.memory_space<vmem>>, vector<8x32xf32>
    tpu.vector_store %arg14[%c8_329, %c32_330], %746 {strides = array<i32>} : memref<64x64xf32, #tpu.memory_space<vmem>>, vector<8x32xf32>,
    %748 = arith.select %737, %734, %700 : vector<8x64xi1>, vector<8x64xf32>
    %c56_331 = arith.constant 56 : index
    %c0_332 = arith.constant 0 : index
    %749 = vector.load %arg13[%c56_331, %c0_332] : memref<64x192xf32, #tpu.memory_space<vmem>>, vector<8x192xf32>
    %c0_333 = arith.constant 0 : index
    %c0_334 = arith.constant 0 : index
    %750 = vector.load %arg13[%c0_333, %c0_334] : memref<64x192xf32, #tpu.memory_space<vmem>>, vector<8x192xf32>
    %751 = arith.select %4, %749, %750 : vector<8x192xi1>, vector<8x192xf32>
    %c0_335 = arith.constant 0 : index
    %c0_336 = arith.constant 0 : index
    %752 = vector.load %arg9[%c0_335, %c0_336] : memref<64x192xf32, #tpu.memory_space<vmem>>, vector<64x192xf32>
    %cst_337 = arith.constant dense<0.000000e+00> : vector<8x192xf32>
    %753 = tpu.matmul %748, %752, %cst_337 {dimension_numbers = #tpu.dot_dimension_numbers<[1], [0], [0], [1], [0, 0, 1, 1], [], []>} : vector<8x64xf32>, vector<64x192xf32>, vector<8x192xf32> -> vector<8x192xf32>
    %c0_338 = arith.constant 0 : index
    %c0_339 = arith.constant 0 : index
    %754 = vector.load %arg10[%c0_338, %c0_339] : memref<1x192xf32, #tpu.memory_space<vmem>>, vector<1x192xf32>
    %755 = vector.broadcast %754 : vector<1x192xf32> to vector<8x192xf32>
    %756 = arith.addf %753, %755 : vector<8x192xf32>
    %757 = vector.extract_strided_slice %751 {offsets = [0, 0], sizes = [8, 64], strides = [1, 1]} : vector<8x192xf32> to vector<8x64xf32>
    %758 = vector.extract_strided_slice %756 {offsets = [0, 0], sizes = [8, 64], strides = [1, 1]} : vector<8x192xf32> to vector<8x64xf32>
    %759 = arith.addf %757, %758 : vector<8x64xf32>
    %760 = arith.negf %759 : vector<8x64xf32>
    %761 = math.exp %760 : vector<8x64xf32>
    %cst_340 = arith.constant 1.000000e+00 : f32
    %762 = vector.broadcast %cst_340 : f32 to vector<8x64xf32>
    %763 = arith.addf %762, %761 : vector<8x64xf32>
    %764 = arith.divf %762, %763 : vector<8x64xf32>
    %765 = vector.extract_strided_slice %751 {offsets = [0, 64], sizes = [8, 64], strides = [1, 1]} : vector<8x192xf32> to vector<8x64xf32>
    %766 = vector.extract_strided_slice %756 {offsets = [0, 64], sizes = [8, 64], strides = [1, 1]} : vector<8x192xf32> to vector<8x64xf32>
    %767 = arith.addf %765, %766 : vector<8x64xf32>
    %768 = arith.negf %767 : vector<8x64xf32>
    %769 = math.exp %768 : vector<8x64xf32>
    %cst_341 = arith.constant 1.000000e+00 : f32
    %770 = vector.broadcast %cst_341 : f32 to vector<8x64xf32>
    %771 = arith.addf %770, %769 : vector<8x64xf32>
    %772 = arith.divf %770, %771 : vector<8x64xf32>
    %773 = vector.extract_strided_slice %751 {offsets = [0, 128], sizes = [8, 64], strides = [1, 1]} : vector<8x192xf32> to vector<8x64xf32>
    %774 = vector.extract_strided_slice %756 {offsets = [0, 128], sizes = [8, 64], strides = [1, 1]} : vector<8x192xf32> to vector<8x64xf32>
    %775 = arith.mulf %764, %774 : vector<8x64xf32>
    %776 = arith.addf %773, %775 : vector<8x64xf32>
    %777 = math.tanh %776 : vector<8x64xf32>
    %cst_342 = arith.constant 1.000000e+00 : f32
    %778 = vector.broadcast %cst_342 : f32 to vector<8x64xf32>
    %779 = arith.subf %778, %772 : vector<8x64xf32>
    %780 = arith.mulf %779, %777 : vector<8x64xf32>
    %781 = arith.mulf %772, %748 : vector<8x64xf32>
    %782 = arith.addf %780, %781 : vector<8x64xf32>
    %c56_343 = arith.constant 56 : index
    %c0_344 = arith.constant 0 : index
    %783 = vector.load %arg2[%c56_343, %c0_344] : memref<64x64xf32, #tpu.memory_space<vmem>>, vector<8x64xf32>
    %cst_345 = arith.constant 0.000000e+00 : f32
    %784 = vector.broadcast %cst_345 : f32 to vector<8x64xf32>
    %785 = arith.cmpf ogt, %783, %784 : vector<8x64xf32>
    %786 = vector.extract_strided_slice %785 {offsets = [0, 0], sizes = [8, 32], strides = [1, 1]} : vector<8x64xi1> to vector<8x32xi1>
    %787 = vector.extract_strided_slice %782 {offsets = [0, 0], sizes = [8, 32], strides = [1, 1]} : vector<8x64xf32> to vector<8x32xf32>
    %cst_346 = arith.constant 0.000000e+00 : f32
    %788 = vector.broadcast %cst_346 : f32 to vector<8x32xf32>
    %789 = arith.select %786, %787, %788 : vector<8x32xi1>, vector<8x32xf32>
    %c56_347 = arith.constant 56 : index
    %c0_348 = arith.constant 0 : index
    %790 = vector.load %arg14[%c56_347, %c0_348] : memref<64x64xf32, #tpu.memory_space<vmem>>, vector<8x32xf32>
    tpu.vector_store %arg14[%c56_347, %c0_348], %789 {strides = array<i32>} : memref<64x64xf32, #tpu.memory_space<vmem>>, vector<8x32xf32>,
    %791 = vector.extract_strided_slice %785 {offsets = [0, 32], sizes = [8, 32], strides = [1, 1]} : vector<8x64xi1> to vector<8x32xi1>
    %792 = vector.extract_strided_slice %782 {offsets = [0, 32], sizes = [8, 32], strides = [1, 1]} : vector<8x64xf32> to vector<8x32xf32>
    %cst_349 = arith.constant 0.000000e+00 : f32
    %793 = vector.broadcast %cst_349 : f32 to vector<8x32xf32>
    %794 = arith.select %791, %792, %793 : vector<8x32xi1>, vector<8x32xf32>
    %c0_350 = arith.constant 0 : index
    %c32_351 = arith.constant 32 : index
    %795 = vector.load %arg14[%c0_350, %c32_351] : memref<64x64xf32, #tpu.memory_space<vmem>>, vector<8x32xf32>
    tpu.vector_store %arg14[%c0_350, %c32_351], %794 {strides = array<i32>} : memref<64x64xf32, #tpu.memory_space<vmem>>, vector<8x32xf32>,
    %796 = arith.select %785, %782, %748 : vector<8x64xi1>, vector<8x64xf32>
    %797 = vector.extract_strided_slice %796 {offsets = [0, 0], sizes = [8, 32], strides = [1, 1]} : vector<8x64xf32> to vector<8x32xf32>
    %c2 = arith.constant 2 : index
    %c0_352 = arith.constant 0 : index
    %c0_353 = arith.constant 0 : index
    %798 = vector.load %arg12[%c2, %c0_352, %c0_353] : memref<4x8x32xf32, #tpu.memory_space<vmem>>, vector<1x8x32xf32>
    %799 = vector.shape_cast %798 : vector<1x8x32xf32> to vector<8x32xf32>
    %800 = vector.shape_cast %797 : vector<8x32xf32> to vector<1x8x32xf32>
    tpu.vector_store %arg12[%c2, %c0_352, %c0_353], %800 {strides = array<i32>} : memref<4x8x32xf32, #tpu.memory_space<vmem>>, vector<1x8x32xf32>,
    %801 = vector.extract_strided_slice %796 {offsets = [0, 32], sizes = [8, 32], strides = [1, 1]} : vector<8x64xf32> to vector<8x32xf32>
    %c3 = arith.constant 3 : index
    %c0_354 = arith.constant 0 : index
    %c0_355 = arith.constant 0 : index
    %802 = vector.load %arg12[%c3, %c0_354, %c0_355] : memref<4x8x32xf32, #tpu.memory_space<vmem>>, vector<1x8x32xf32>
    %803 = vector.shape_cast %802 : vector<1x8x32xf32> to vector<8x32xf32>
    %804 = vector.shape_cast %801 : vector<8x32xf32> to vector<1x8x32xf32>
    tpu.vector_store %arg12[%c3, %c0_354, %c0_355], %804 {strides = array<i32>} : memref<4x8x32xf32, #tpu.memory_space<vmem>>, vector<1x8x32xf32>,
    %c0_356 = arith.constant 0 : index
    %c0_357 = arith.constant 0 : index
    %805 = vector.load %arg14[%c0_356, %c0_357] : memref<64x64xf32, #tpu.memory_space<vmem>>, vector<64x32xf32>
    %c0_358 = arith.constant 0 : index
    %c32_359 = arith.constant 32 : index
    %806 = vector.load %arg14[%c0_358, %c32_359] : memref<64x64xf32, #tpu.memory_space<vmem>>, vector<64x32xf32>
    %807 = arith.addf %805, %806 : vector<64x32xf32>
    %c0_360 = arith.constant 0 : index
    %c0_361 = arith.constant 0 : index
    %808 = vector.load %arg11[%c0_360, %c0_361] : memref<64x32xf32, #tpu.memory_space<vmem>>, vector<64x32xf32>
    tpu.vector_store %arg11[%c0_360, %c0_361], %807 {strides = array<i32>} : memref<64x32xf32, #tpu.memory_space<vmem>>, vector<64x32xf32>,
    return
  }
  func.func @transform_0(%arg0: i32) -> (i32, i32) {
    %c0_i32 = arith.constant 0 : i32
    %c0_i32_0 = arith.constant 0 : i32
    %c0_i32_1 = arith.constant 0 : i32
    return %c0_i32, %c0_i32_0 : i32, i32
  }
  func.func @transform_1(%arg0: i32) -> (i32, i32) {
    %c0_i32 = arith.constant 0 : i32
    %c0_i32_0 = arith.constant 0 : i32
    %c0_i32_1 = arith.constant 0 : i32
    return %c0_i32, %c0_i32_0 : i32, i32
  }
  func.func @transform_2(%arg0: i32) -> (i32, i32) {
    %c0_i32 = arith.constant 0 : i32
    %c0_i32_0 = arith.constant 0 : i32
    %c0_i32_1 = arith.constant 0 : i32
    return %c0_i32, %c0_i32_0 : i32, i32
  }
  func.func @transform_3(%arg0: i32) -> (i32, i32) {
    %c0_i32 = arith.constant 0 : i32
    %c0_i32_0 = arith.constant 0 : i32
    %c0_i32_1 = arith.constant 0 : i32
    return %c0_i32, %c0_i32_0 : i32, i32
  }
  func.func @transform_4(%arg0: i32) -> (i32, i32) {
    %c0_i32 = arith.constant 0 : i32
    %c0_i32_0 = arith.constant 0 : i32
    %c0_i32_1 = arith.constant 0 : i32
    return %c0_i32, %c0_i32_0 : i32, i32
  }
  func.func @transform_5(%arg0: i32) -> (i32, i32) {
    %c0_i32 = arith.constant 0 : i32
    %c0_i32_0 = arith.constant 0 : i32
    %c0_i32_1 = arith.constant 0 : i32
    return %c0_i32, %c0_i32_0 : i32, i32
  }
  func.func @transform_6(%arg0: i32) -> (i32, i32) {
    %c0_i32 = arith.constant 0 : i32
    %c0_i32_0 = arith.constant 0 : i32
    %c0_i32_1 = arith.constant 0 : i32
    return %c0_i32, %c0_i32_0 : i32, i32
  }
  func.func @transform_7(%arg0: i32) -> (i32, i32) {
    %c0_i32 = arith.constant 0 : i32
    %c0_i32_0 = arith.constant 0 : i32
    %c0_i32_1 = arith.constant 0 : i32
    return %c0_i32, %c0_i32_0 : i32, i32
  }
  func.func @transform_8(%arg0: i32) -> (i32, i32) {
    %c0_i32 = arith.constant 0 : i32
    %c0_i32_0 = arith.constant 0 : i32
    %c0_i32_1 = arith.constant 0 : i32
    return %c0_i32, %c0_i32_0 : i32, i32
  }
  func.func @transform_9(%arg0: i32) -> (i32, i32) {
    %c0_i32 = arith.constant 0 : i32
    %c0_i32_0 = arith.constant 0 : i32
    %c0_i32_1 = arith.constant 0 : i32
    return %c0_i32, %c0_i32_0 : i32, i32
  }
  func.func @transform_10(%arg0: i32) -> (i32, i32) {
    %c0_i32 = arith.constant 0 : i32
    %c0_i32_0 = arith.constant 0 : i32
    %c0_i32_1 = arith.constant 0 : i32
    return %c0_i32, %c0_i32_0 : i32, i32
  }
  func.func @transform_11(%arg0: i32) -> (i32, i32, i32) {
    %c0_i32 = arith.constant 0 : i32
    %c0_i32_0 = arith.constant 0 : i32
    %c0_i32_1 = arith.constant 0 : i32
    %c0_i32_2 = arith.constant 0 : i32
    return %c0_i32, %c0_i32_0, %c0_i32_1 : i32, i32, i32
  }
}

</mosaic_0001>

<bundles_post_ra>
// kernel: encoder_rnn_forward.1
= control target key start
LH: loop header
LB: loop body
LE: loop exit
PB: predicated region body
PF: predicated region fallthrough
CT: control target
= control target key end

     0   :  { %v3130_v3 = vmov 0.0   ;;  %vm68_vm0 = vcmask 130048   ;;  %v37_v39 = vlaneseq  ;;  %vm207_vm1 = vcmask 523264   ;;  %s3131_s15 = smov 64   ;;  %s4244_s2 = inlined_call_operand.vmem [shape: f32[16,192], index: 2, kind: input, shape index: {}]   ;;  %s4245_s4 = inlined_call_operand.vmem [shape: f32[64,192], index: 4, kind: input, shape index: {}]   ;;  %s4246_s0 = inlined_call_operand.vmem [shape: f32[64,16], index: 0, kind: input, shape index: {}]   ;;  %s4247_s3 = inlined_call_operand.vmem [shape: f32[1,192], index: 3, kind: input, shape index: {}]   ;;  %s4248_s5 = inlined_call_operand.vmem [shape: f32[1,192], index: 5, kind: input, shape index: {}]   ;;  %s4249_s1 = inlined_call_operand.vmem [shape: f32[64,64], index: 1, kind: input, shape index: {}]   ;;  %s4250_s6 = inlined_call_operand.vmem [shape: f32[64,192], index: 6, kind: input, shape index: {}]   ;;  %s4251_s8 = inlined_call_operand.vmem [shape: f32[64,192], index: 8, kind: input, shape index: {}]   ;;  %s4252_s11 = inlined_call_operand.vmem [shape: f32[4,8,32], index: 11, kind: output, shape index: {1}]   ;;  %s4253_s7 = inlined_call_operand.vmem [shape: f32[1,192], index: 7, kind: input, shape index: {}]   ;;  %s4254_s9 = inlined_call_operand.vmem [shape: f32[1,192], index: 9, kind: input, shape index: {}]   ;;  %s4255_s10 = inlined_call_operand.vmem [shape: f32[64,32], index: 10, kind: output, shape index: {0}]  }
   0x1   :  { %v53_v0 = vld [vmem:[%s4244_s2 + $0x8] sm:$0xff]  ;;  %v55_v1 = vld [vmem:[%s4244_s2 + $0x18] sm:$0xff]  ;;  %v52_v2 = vld [vmem:[%s4244_s2] sm:$0xff]  ;;  %157 = vmatprep.mubr.f32.mxu0 %v3130_v3  ;;  %324 = vmatprep.mubr.f32.mxu1 %v3130_v3  ;;  %vm356_vm5 = vcmask 261120   ;;  %vm358_vm6 = vcmask 523520  }
   0x2   :  { %v2755_v4 = vpack.c.bf16 %v55_v1, %v53_v0  ;;  %v54_v5 = vld [vmem:[%s4244_s2 + $0x10] sm:$0xff]  ;;  %v230_v7 = vld [vmem:[%s4245_s4 + $0x8] sm:$0xff]  ;;  %v232_v8 = vld [vmem:[%s4245_s4 + $0x18] sm:$0xff]  ;;  %v59_v40 = vshrl.u32 %v37_v39, 7  ;;  %v38_v55 = vand.u32 127, %v37_v39 }
   0x3   :  { %v2757_v6 = vpack.c.bf16 %v54_v5, %v52_v2  ;;  %v44_v9 = vld [vmem:[%s4246_s0] sm:$0xff]  ;;  %v3216_v10 = vpack.c.bf16 %v232_v8, %v230_v7  ;;  %v231_v12 = vld [vmem:[%s4245_s4 + $0x10] sm:$0xff]  ;;  %v234_v14 = vld [vmem:[%s4245_s4 + $0x28] sm:$0xff] }
   0x4   :  { %2756 = vmatprep.subr.bf16.mxu0 %v2755_v4  ;;  %v229_v11 = vld [vmem:[%s4245_s4] sm:$0xff]  ;;  %v236_v15 = vld [vmem:[%s4245_s4 + $0x38] sm:$0xff]  ;;  %v235_v18 = vld [vmem:[%s4245_s4 + $0x30] sm:$0xff]  ;;  %v3339_v41 = vsub.s32 0, %v59_v40  ;;  %v3344_v43 = vsub.s32 1, %v59_v40  ;;  %v40_v60 = vand.u32 63, %v38_v55 }
   0x5   :  { %2758 = vmatpush1.bf16.msra.mxu0 %v2757_v6  ;;  %v3224_v13 = vpack.c.bf16 %v231_v12, %v229_v11  ;;  %v233_v16 = vld [vmem:[%s4245_s4 + $0x20] sm:$0xff]  ;;  %2760 = vmatprep.subr.bf16.mxu1 %v3216_v10  ;;  %v3236_v17 = vpack.c.bf16 %v236_v15, %v234_v14  ;;  %v238_v19 = vld [vmem:[%s4245_s4 + $0x48] sm:$0xff]  ;;  %v240_v21 = vld [vmem:[%s4245_s4 + $0x58] sm:$0xff] }
   0x6   :  { %2792 = vmatprep.subr.bf16.mxu0 %v3216_v10  ;;  %v3247_v20 = vpack.c.bf16 %v235_v18, %v233_v16  ;;  %v45_v22 = vld [vmem:[%s4246_s0 + $0x8] sm:$0xff]  ;;  %v3257_v23 = vpack.c.bf16 %v240_v21, %v238_v19  ;;  %v237_v24 = vld [vmem:[%s4245_s4 + $0x40] sm:$0xff]  ;;  %v239_v25 = vld [vmem:[%s4245_s4 + $0x50] sm:$0xff]  ;;  %vm3358_vm2 = vcmp.lt.s32.totalorder %v40_v60, 32 }
   0x7   :  { %2762 = vmatpush1.bf16.msra.mxu1 %v3224_v13  ;;  %v242_v26 = vld [vmem:[%s4245_s4 + $0x68] sm:$0xff]  ;;  %v244_v27 = vld [vmem:[%s4245_s4 + $0x78] sm:$0xff]  ;;  %v3275_v28 = vpack.c.bf16 %v239_v25, %v237_v24  ;;  %v46_v29 = vld [vmem:[%s4246_s0 + $0x10] sm:$0xff] }
   0x8   :  { %2706 = vmatmul.mubr.msk.f32.vlgmr.msra.gmra.mrb[0].mxu0 %vm68_vm0, %v44_v9  ;;  %2764 = vmatprep.subr.bf16.mxu1 %v3236_v17  ;;  %v3282_v30 = vpack.c.bf16 %v244_v27, %v242_v26  ;;  %v241_v31 = vld [vmem:[%s4245_s4 + $0x60] sm:$0xff]  ;;  %v243_v32 = vld [vmem:[%s4245_s4 + $0x70] sm:$0xff]  ;;  %v47_v34 = vld [vmem:[%s4246_s0 + $0x18] sm:$0xff] }
   0x9   :  { %163 = vmatprep.mubr.f32.mxu0 %v3130_v3  ;;  %2794 = vmatpush1.bf16.msra.mxu0 %v3224_v13  ;;  %v3294_v33 = vpack.c.bf16 %v243_v32, %v241_v31  ;;  %v48_v35 = vld [vmem:[%s4246_s0 + $0x20] sm:$0xff]  ;;  %v49_v36 = vld [vmem:[%s4246_s0 + $0x28] sm:$0xff]  ;;  %v50_v37 = vld [vmem:[%s4246_s0 + $0x30] sm:$0xff] }
   0xa   :  { %2796 = vmatprep.subr.bf16.mxu0 %v3236_v17  ;;  %v51_v38 = vld [vmem:[%s4246_s0 + $0x38] sm:$0xff]  ;;  %v56_v42 = vld [vmem:[%s4247_s3] sm:$0x3] }
   0xb   :  { %2766 = vmatpush1.bf16.msra.mxu1 %v3247_v20  ;;  %v61_v44 = vrot.slane %v56_v42, %v3339_v41  ;;  %v65_v45 = vrot.slane %v56_v42, %v3344_v43  ;;  %v245_v15 = vld [vmem:[%s4248_s5] sm:$0x3] }
   0xc   :  { %2707 = vmatmul.mubr.msk.f32.gmra.mrb[2].mxu0 %vm68_vm0, %v45_v22  ;;  %2768 = vmatprep.subr.bf16.mxu1 %v3257_v23  ;;  %v250_v22 = vrot.slane %v245_v15, %v3339_v41 }
   0xd   :  { %169 = vmatprep.mubr.f32.mxu0 %v3130_v3  ;;  %2798 = vmatpush1.bf16.msra.mxu0 %v3247_v20 }
   0xe   :  { %2800 = vmatprep.subr.bf16.mxu0 %v3257_v23 }
   0xf   :  { %2770 = vmatpush1.bf16.msra.mxu1 %v3275_v28 }
  0x10   :  { %2708 = vmatmul.mubr.msk.f32.gmra.mrb[4].mxu0 %vm68_vm0, %v46_v29  ;;  %2772 = vmatprep.subr.bf16.mxu1 %v3282_v30 }
  0x11   :  { %175 = vmatprep.mubr.f32.mxu0 %v3130_v3  ;;  %2802 = vmatpush1.bf16.msra.mxu0 %v3275_v28 }
  0x12   :  { %2804 = vmatprep.subr.bf16.mxu0 %v3282_v30 }
  0x13   :  { %2774 = vmatpush1.bf16.msra.mxu1 %v3294_v33 }
  0x14   :  { %2709 = vmatmul.mubr.msk.f32.gmra.mrb[6].mxu0 %vm68_vm0, %v47_v34  ;;  %2776 = vmatprep.subr.bf16.mxu1 %v3216_v10 }
  0x15   :  { %181 = vmatprep.mubr.f32.mxu0 %v3130_v3  ;;  %2806 = vmatpush1.bf16.msra.mxu0 %v3294_v33 }
  0x16   :  { %325 = vmatmul.mubr.f32.vlgmr.msra.gmra.mrb[0].mxu1 %v3130_v3  ;;  %2824 = vmatprep.subr.bf16.mxu0 %v3216_v10 }
  0x17   :  { %2778 = vmatpush1.bf16.msra.mxu1 %v3224_v13  ;;  %461 = vmatprep.mubr.f32.mxu1 %v3130_v3 }
  0x18   :  { %2710 = vmatmul.mubr.msk.f32.gmra.mrb[8].mxu0 %vm68_vm0, %v48_v35  ;;  %2780 = vmatprep.subr.bf16.mxu1 %v3236_v17 }
  0x19   :  { %187 = vmatprep.mubr.f32.mxu0 %v3130_v3 }
  0x1b   :  { %2782 = vmatpush1.bf16.msra.mxu1 %v3247_v20 }
  0x1c   :  { %2711 = vmatmul.mubr.msk.f32.gmra.mrb[10].mxu0 %vm68_vm0, %v49_v36  ;;  %2784 = vmatprep.subr.bf16.mxu1 %v3257_v23 }
  0x1d   :  { %193 = vmatprep.mubr.f32.mxu0 %v3130_v3 }
  0x1f   :  { %2786 = vmatpush1.bf16.msra.mxu1 %v3275_v28 }
  0x20   :  { %2712 = vmatmul.mubr.msk.f32.gmra.mrb[12].mxu0 %vm68_vm0, %v50_v37  ;;  %2788 = vmatprep.subr.bf16.mxu1 %v3282_v30 }
  0x21   :  { %199 = vmatprep.mubr.f32.mxu0 %v3130_v3 }
  0x23   :  { %2790 = vmatpush1.bf16.msra.mxu1 %v3294_v33 }
  0x24   :  { %2713 = vmatmul.mubr.msk.f32.gmra.mrb[14].mxu0 %vm68_vm0, %v51_v38  ;;  %2808 = vmatprep.subr.bf16.mxu1 %v3216_v10 }
  0x25   :  { %600 = vmatprep.mubr.f32.mxu0 %v3130_v3 }
  0xdb   :  { %v159_v46 = vpop.f32.mrb[0].mxu0 }
  0xdc   :  { %v160_v47 = vadd.f32 %v159_v46, %v61_v44  ;;  %v161_v48 = vpop.f32.mrb[1].mxu0  ;;  %v39_v46 = vadd.s32 128, %v38_v55 }
  0xdd   :  { %v162_v49 = vadd.f32 %v161_v48, %v65_v45  ;;  %v254_v48 = vrot.slane %v245_v15, %v3344_v43 }
  0xde   :  { %206 = vst [vmem:[#allocation2] sm:$0xff] %v160_v47 }
  0xdf   :  { %208 = vst.msk [vmem:[#allocation2 + $0x8] sm:$0xff] %vm207_vm1, %v162_v49  ;;  %v165_v50 = vpop.f32.mrb[2].mxu0  ;;  %v41_v49 = vand.u32 63, %v39_v46 }
  0xe0   :  { %v3349_v51 = vadd.f32 %v165_v50, %v61_v44  ;;  %v167_v52 = vpop.f32.mrb[3].mxu0 }
  0xe1   :  { %v168_v53 = vadd.f32 %v167_v52, %v65_v45  ;;  %vm3408_vm3 = vcmp.lt.s32.totalorder %v41_v49, 32 }
  0xe3   :  { %210 = vst.msk [vmem:[#allocation2 + $0x18] sm:$0xff] %vm207_vm1, %v168_v53  ;;  %v171_v54 = vpop.f32.mrb[4].mxu0 }
  0xe4   :  { %v3352_v56 = vadd.f32 %v171_v54, %v61_v44  ;;  %v173_v57 = vpop.f32.mrb[5].mxu0 }
  0xe5   :  { %v174_v58 = vadd.f32 %v173_v57, %v65_v45 }
  0xe7   :  { %212 = vst.msk [vmem:[#allocation2 + $0x28] sm:$0xff] %vm207_vm1, %v174_v58  ;;  %v177_v59 = vpop.f32.mrb[6].mxu0 }
  0xe8   :  { %v3355_v61 = vadd.f32 %v177_v59, %v61_v44  ;;  %v179_v62 = vpop.f32.mrb[7].mxu0 }
  0xe9   :  { %v180_v63 = vadd.f32 %v179_v62, %v65_v45  ;;  %v326_v0 = vpop.f32.mrb[0].mxu1 }
  0xea   :  { %v328_v4 = vpop.f32.mrb[1].mxu1  ;;  %v327_v32 = vadd.f32 %v326_v0, %v250_v22  ;;  %v349_v0 = vld [vmem:[%s4249_s1] sm:$0xff] }
  0xeb   :  { %214 = vst.msk [vmem:[#allocation2 + $0x38] sm:$0xff] %vm207_vm1, %v180_v63  ;;  %v183_v1 = vpop.f32.mrb[8].mxu0  ;;  %v329_v50 = vadd.f32 %v328_v4, %v254_v48  ;;  %vm350_vm4 = vcmp.gt.f32.partialorder %v349_v0, 0.0 }
  0xec   :  { %v3362_v5 = vadd.f32 %v183_v1, %v61_v44  ;;  %v185_v6 = vpop.f32.mrb[9].mxu0 }
  0xed   :  { %v186_v7 = vadd.f32 %v185_v6, %v65_v45  ;;  %v382_v6 = vld [vmem:[%s4248_s5] sm:$0x3] }
  0xee   :  { %v642_v8 = vsel %vm3358_vm2, %v3355_v61, %v3362_v5  ;;  %v781_v9 = vsel %vm3358_vm2, %v3362_v5, %v3355_v61 }
  0xef   :  { %216 = vst.msk [vmem:[#allocation2 + $0x48] sm:$0xff] %vm207_vm1, %v186_v7  ;;  %v189_v11 = vpop.f32.mrb[10].mxu0  ;;  %v387_v7 = vrot.slane %v382_v6, %v3339_v41 }
  0xf0   :  { %v3373_v12 = vadd.f32 %v189_v11, %v61_v44  ;;  %v191_v14 = vpop.f32.mrb[11].mxu0 }
  0xf1   :  { %v192_v16 = vadd.f32 %v191_v14, %v65_v45 }
  0xf2   :  { %v503_v18 = vsel %vm3358_vm2, %v3352_v56, %v3373_v12  ;;  %v920_v19 = vsel %vm3358_vm2, %v3373_v12, %v3352_v56 }
  0xf3   :  { %218 = vst.msk [vmem:[#allocation2 + $0x58] sm:$0xff] %vm207_vm1, %v192_v16  ;;  %v195_v21 = vpop.f32.mrb[12].mxu0 }
  0xf4   :  { %v3388_v24 = vadd.f32 %v195_v21, %v61_v44  ;;  %v197_v25 = vpop.f32.mrb[13].mxu0 }
  0xf5   :  { %v198_v26 = vadd.f32 %v197_v25, %v65_v45 }
  0xf6   :  { %v364_v27 = vsel %vm3358_vm2, %v3349_v51, %v3388_v24  ;;  %v1059_v29 = vsel %vm3358_vm2, %v3388_v24, %v3349_v51  ;;  %v1201_v51 = vld [vmem:[%s4245_s4 + $0x8] sm:$0xff]  ;;  %v1203_v24 = vld [vmem:[%s4245_s4 + $0x18] sm:$0xff] }
  0xf7   :  { %220 = vst.msk [vmem:[#allocation2 + $0x68] sm:$0xff] %vm207_vm1, %v198_v26  ;;  %v201_v31 = vpop.f32.mrb[14].mxu0  ;;  %v391_v26 = vrot.slane %v382_v6, %v3344_v43 }
  0xf8   :  { %v3399_v34 = vadd.f32 %v201_v31, %v61_v44  ;;  %v203_v35 = vpop.f32.mrb[15].mxu0 }
  0xf9   :  { %v204_v36 = vadd.f32 %v203_v35, %v65_v45 }
  0xfa   :  { %v227_v37 = vsel %vm3358_vm2, %v160_v47, %v3399_v34  ;;  %v3412_v47 = vld [vmem:[#allocation2 + $0x8] sm:$0xff]  ;;  %v3477_v6 = vld [vmem:[#allocation2 + $0x58] sm:$0xff] }
  0xfb   :  { %222 = vst.msk [vmem:[#allocation2 + $0x78] sm:$0xff] %vm207_vm1, %v204_v36  ;;  %v331_v38 = vadd.f32 %v327_v32, %v227_v37  ;;  %v3442_v36 = vld [vmem:[#allocation2 + $0x18] sm:$0xff] }
  0xfd   :  { %v2714_v39 = vmul.f32 -1.442695, %v331_v38 }
  0xfe   :  { %v3440_v31 = vld [vmem:[#allocation2 + $0x68] sm:$0xff] }
  0xff   :  { %3034 = vpow2.f32 %v2714_v39  ;;  %v365_v38 = vsel %vm3408_vm3, %v3442_v36, %v3440_v31 }
 0x102   :  { %v3406_v44 = vld [vmem:[#allocation2 + $0x78] sm:$0xff] }
 0x103   :  { %v228_v54 = vsel %vm3408_vm3, %v3412_v47, %v3406_v44 }
 0x109   :  { %v3035_v40 = vpop.eup %3034 }
 0x10a   :  { %v335_v42 = vadd.f32 1.0, %v3035_v40 }
 0x10c   :  { %3036 = vrcp.f32 %v335_v42 }
 0x116   :  { %v3037_v45 = vpop.eup %3036 }
 0x117   :  { %v338_v53 = vmul.f32 %v3037_v45, %v329_v50  ;;  %v341_v58 = vsub.f32 1.0, %v3037_v45  ;;  %v347_v60 = vmul.f32 0.0, %v3037_v45  ;;  %v489_v45 = vld [vmem:[%s4249_s1 + $0x8] sm:$0xff] }
 0x118   :  { %vm490_vm7 = vcmp.gt.f32.partialorder %v489_v45, 0.0 }
 0x119   :  { %v339_v55 = vadd.f32 %v338_v53, %v228_v54 }
 0x11b   :  { %3038 = vtanh.f32 %v339_v55 }
 0x125   :  { %v3039_v57 = vpop.eup %3038 }
 0x126   :  { %343 = vrot.lane.b32.xlu0 %v3039_v57, %s3131_s15  ;;  %v521_v57 = vld [vmem:[%s4248_s5] sm:$0x3] }
 0x198   :  { %v344_v59 = vpop.permute.xlu0 %343 }
 0x199   :  { %v346_v62 = vmul.f32 %v344_v59, %v341_v58  ;;  %v526_v58 = vrot.slane %v521_v57, %v3339_v41 }
 0x19b   :  { %v348_v63 = vadd.f32 %v347_v60, %v346_v62 }
 0x19d   :  { %352 = vrot.lane.b32.xlu0 %v348_v63, %s3131_s15 }
 0x20f   :  { %v353_v1 = vpop.permute.xlu0 %352 }
 0x210   :  { %v355_v4 = vsel %vm350_vm4, %v353_v1, 0.0 }
 0x211   :  { %2715 = vmatmul.mubr.msk.f32.vlgmr.msra.gmra.mrb[2].mxu1 %vm207_vm1, %v355_v4  ;;  %357 = vst.msk [vmem:[#allocation3] sm:$0xff] %vm356_vm5, %v355_v4 }
 0x212   :  { %359 = vst.msk [vmem:[#allocation3 + $0x38] sm:$0xff] %vm358_vm6, %v355_v4  ;;  %2810 = vmatpush1.bf16.msra.mxu1 %v3224_v13  ;;  %739 = vmatprep.mubr.f32.mxu1 %v3130_v3 }
 0x213   :  { %2812 = vmatprep.subr.bf16.mxu1 %v3236_v17 }
 0x216   :  { %2814 = vmatpush1.bf16.msra.mxu1 %v3247_v20 }
 0x217   :  { %2816 = vmatprep.subr.bf16.mxu1 %v3257_v23 }
 0x21a   :  { %2818 = vmatpush1.bf16.msra.mxu1 %v3275_v28 }
 0x21b   :  { %2820 = vmatprep.subr.bf16.mxu1 %v3282_v30 }
 0x21e   :  { %2822 = vmatpush1.bf16.msra.mxu1 %v3294_v33 }
 0x21f   :  { %2840 = vmatprep.subr.bf16.mxu1 %v3216_v10 }
 0x2e4   :  { %v463_v11 = vpop.f32.mrb[2].mxu1 }
 0x2e5   :  { %v464_v14 = vadd.f32 %v463_v11, %v387_v7  ;;  %v465_v15 = vpop.f32.mrb[3].mxu1 }
 0x2e6   :  { %v466_v32 = vadd.f32 %v465_v15, %v391_v26 }
 0x2e7   :  { %v468_v16 = vadd.f32 %v464_v14, %v364_v27  ;;  %v3479_v14 = vld [vmem:[#allocation2 + $0x28] sm:$0xff] }
 0x2e9   :  { %v2716_v21 = vmul.f32 -1.442695, %v468_v16  ;;  %v504_v16 = vsel %vm3408_vm3, %v3479_v14, %v3477_v6 }
 0x2eb   :  { %3040 = vpow2.f32 %v2716_v21 }
 0x2f5   :  { %v3041_v22 = vpop.eup %3040 }
 0x2f6   :  { %v472_v25 = vadd.f32 1.0, %v3041_v22 }
 0x2f8   :  { %3042 = vrcp.f32 %v472_v25 }
 0x302   :  { %v3043_v35 = vpop.eup %3042 }
 0x303   :  { %v475_v37 = vmul.f32 %v3043_v35, %v466_v32  ;;  %v478_v42 = vsub.f32 1.0, %v3043_v35 }
 0x305   :  { %v476_v27 = vadd.f32 %v475_v37, %v365_v38  ;;  %v628_v38 = vld [vmem:[%s4249_s1 + $0x10] sm:$0xff] }
 0x306   :  { %vm629_vm8 = vcmp.gt.f32.partialorder %v628_v38, 0.0 }
 0x307   :  { %3044 = vtanh.f32 %v476_v27 }
 0x311   :  { %v3045_v39 = vpop.eup %3044 }
 0x312   :  { %480 = vrot.lane.b32.xlu1 %v3045_v39, %s3131_s15 }
 0x316   :  { %484 = vrot.lane.b32.xlu1 %v355_v4, %s3131_s15 }
 0x384   :  { %v481_v40 = vpop.permute.xlu1 %480 }
 0x385   :  { %v483_v48 = vmul.f32 %v481_v40, %v478_v42  ;;  %v660_v42 = vld [vmem:[%s4248_s5] sm:$0x3] }
 0x388   :  { %v485_v46 = vpop.permute.xlu1 %484 }
 0x389   :  { %v487_v49 = vmul.f32 %v3043_v35, %v485_v46  ;;  %v665_v46 = vrot.slane %v660_v42, %v3339_v41 }
 0x38b   :  { %v488_v50 = vadd.f32 %v487_v49, %v483_v48 }
 0x38d   :  { %492 = vrot.lane.b32.xlu0 %v488_v50, %s3131_s15 }
 0x3ff   :  { %v493_v53 = vpop.permute.xlu0 %492 }
 0x400   :  { %v495_v54 = vsel %vm490_vm7, %v493_v53, 0.0  ;;  %v498_v55 = vsel %vm490_vm7, %v493_v53, %v355_v4 }
 0x401   :  { %496 = vst.msk [vmem:[#allocation3 + $0x8] sm:$0xff] %vm356_vm5, %v495_v54  ;;  %623 = vrot.lane.b32.xlu0 %v498_v55, %s3131_s15  ;;  %2717 = vmatmul.mubr.msk.f32.vlgmr.msra.gmra.mrb[16].mxu0 %vm207_vm1, %v498_v55 }
 0x402   :  { %497 = vst.msk [vmem:[#allocation3 + $0x30] sm:$0xff] %vm358_vm6, %v495_v54  ;;  %2826 = vmatpush1.bf16.msra.mxu0 %v3224_v13  ;;  %878 = vmatprep.mubr.f32.mxu0 %v3130_v3 }
 0x403   :  { %2828 = vmatprep.subr.bf16.mxu0 %v3236_v17 }
 0x406   :  { %2830 = vmatpush1.bf16.msra.mxu0 %v3247_v20 }
 0x407   :  { %2832 = vmatprep.subr.bf16.mxu0 %v3257_v23 }
 0x40a   :  { %2834 = vmatpush1.bf16.msra.mxu0 %v3275_v28 }
 0x40b   :  { %2836 = vmatprep.subr.bf16.mxu0 %v3282_v30 }
 0x40e   :  { %2838 = vmatpush1.bf16.msra.mxu0 %v3294_v33 }
 0x40f   :  { %2856 = vmatprep.subr.bf16.mxu0 %v3216_v10  ;;  %v530_v10 = vrot.slane %v521_v57, %v3344_v43  ;;  %v669_v57 = vrot.slane %v660_v42, %v3344_v43 }
 0x473   :  { %v624_v25 = vpop.permute.xlu0 %623 }
 0x4d4   :  { %v602_v59 = vpop.f32.mrb[16].mxu0 }
 0x4d5   :  { %v603_v60 = vadd.f32 %v602_v59, %v526_v58  ;;  %v604_v62 = vpop.f32.mrb[17].mxu0  ;;  %v641_v58 = vld [vmem:[#allocation2 + $0x48] sm:$0xff] }
 0x4d6   :  { %v605_v7 = vadd.f32 %v604_v62, %v530_v10  ;;  %v639_v62 = vld [vmem:[#allocation2 + $0x38] sm:$0xff] }
 0x4d7   :  { %v607_v63 = vadd.f32 %v603_v60, %v503_v18 }
 0x4d9   :  { %v2718_v0 = vmul.f32 -1.442695, %v607_v63 }
 0x4db   :  { %3046 = vpow2.f32 %v2718_v0  ;;  %v643_v0 = vsel %vm3408_vm3, %v639_v62, %v641_v58 }
 0x4e5   :  { %v3047_v1 = vpop.eup %3046 }
 0x4e6   :  { %v611_v4 = vadd.f32 1.0, %v3047_v1 }
 0x4e8   :  { %3048 = vrcp.f32 %v611_v4 }
 0x4f2   :  { %v3049_v11 = vpop.eup %3048 }
 0x4f3   :  { %v614_v15 = vmul.f32 %v3049_v11, %v605_v7  ;;  %v617_v22 = vsub.f32 1.0, %v3049_v11  ;;  %v626_v32 = vmul.f32 %v3049_v11, %v624_v25 }
 0x4f5   :  { %v615_v18 = vadd.f32 %v614_v15, %v504_v16 }
 0x4f7   :  { %3050 = vtanh.f32 %v615_v18  ;;  %v767_v18 = vld [vmem:[%s4249_s1 + $0x18] sm:$0xff] }
 0x4f8   :  { %vm768_vm9 = vcmp.gt.f32.partialorder %v767_v18, 0.0 }
 0x501   :  { %v3051_v21 = vpop.eup %3050 }
 0x502   :  { %619 = vrot.lane.b32.xlu1 %v3051_v21, %s3131_s15 }
 0x574   :  { %v620_v26 = vpop.permute.xlu1 %619 }
 0x575   :  { %v622_v35 = vmul.f32 %v620_v26, %v617_v22  ;;  %v799_v26 = vld [vmem:[%s4248_s5] sm:$0x3] }
 0x577   :  { %v627_v37 = vadd.f32 %v626_v32, %v622_v35 }
 0x579   :  { %631 = vrot.lane.b32.xlu1 %v627_v37, %s3131_s15 }
 0x5eb   :  { %v632_v27 = vpop.permute.xlu1 %631 }
 0x5ec   :  { %v634_v39 = vsel %vm629_vm8, %v632_v27, 0.0  ;;  %v637_v40 = vsel %vm629_vm8, %v632_v27, %v498_v55 }
 0x5ed   :  { %635 = vst.msk [vmem:[#allocation3 + $0x10] sm:$0xff] %vm356_vm5, %v634_v39  ;;  %762 = vrot.lane.b32.xlu1 %v637_v40, %s3131_s15  ;;  %2719 = vmatmul.mubr.msk.f32.vlgmr.msra.gmra.mrb[4].mxu1 %vm207_vm1, %v637_v40 }
 0x5ee   :  { %636 = vst.msk [vmem:[#allocation3 + $0x28] sm:$0xff] %vm358_vm6, %v634_v39  ;;  %2842 = vmatpush1.bf16.msra.mxu1 %v3224_v13  ;;  %1017 = vmatprep.mubr.f32.mxu1 %v3130_v3  ;;  %v782_v39 = vsel %vm3408_vm3, %v641_v58, %v639_v62 }
 0x5ef   :  { %2844 = vmatprep.subr.bf16.mxu1 %v3236_v17 }
 0x5f2   :  { %2846 = vmatpush1.bf16.msra.mxu1 %v3247_v20 }
 0x5f3   :  { %2848 = vmatprep.subr.bf16.mxu1 %v3257_v23 }
 0x5f6   :  { %2850 = vmatpush1.bf16.msra.mxu1 %v3275_v28 }
 0x5f7   :  { %2852 = vmatprep.subr.bf16.mxu1 %v3282_v30 }
 0x5fa   :  { %2854 = vmatpush1.bf16.msra.mxu1 %v3294_v33 }
 0x65f   :  { %v763_v10 = vpop.permute.xlu1 %762 }
 0x6c0   :  { %v741_v48 = vpop.f32.mrb[4].mxu1 }
 0x6c1   :  { %v742_v49 = vadd.f32 %v741_v48, %v665_v46  ;;  %v743_v50 = vpop.f32.mrb[5].mxu1 }
 0x6c2   :  { %v744_v59 = vadd.f32 %v743_v50, %v669_v57  ;;  %v906_v50 = vld [vmem:[%s4249_s1 + $0x20] sm:$0xff] }
 0x6c3   :  { %v746_v45 = vadd.f32 %v742_v49, %v642_v8  ;;  %vm907_vm10 = vcmp.gt.f32.partialorder %v906_v50, 0.0  ;;  %v1209_v50 = vld [vmem:[%s4245_s4 + $0x48] sm:$0xff] }
 0x6c5   :  { %v2720_v53 = vmul.f32 -1.442695, %v746_v45 }
 0x6c7   :  { %3052 = vpow2.f32 %v2720_v53 }
 0x6d1   :  { %v3053_v54 = vpop.eup %3052 }
 0x6d2   :  { %v750_v55 = vadd.f32 1.0, %v3053_v54 }
 0x6d4   :  { %3054 = vrcp.f32 %v750_v55  ;;  %v938_v55 = vld [vmem:[%s4248_s5] sm:$0x3] }
 0x6d5   :  { %v943_v57 = vrot.slane %v938_v55, %v3339_v41 }
 0x6de   :  { %v3055_v60 = vpop.eup %3054 }
 0x6df   :  { %v753_v63 = vmul.f32 %v3055_v60, %v744_v59  ;;  %v756_v8 = vsub.f32 1.0, %v3055_v60  ;;  %v765_v11 = vmul.f32 %v3055_v60, %v763_v10 }
 0x6e1   :  { %v754_v1 = vadd.f32 %v753_v63, %v643_v0 }
 0x6e3   :  { %3056 = vtanh.f32 %v754_v1 }
 0x6ed   :  { %v3057_v4 = vpop.eup %3056 }
 0x6ee   :  { %758 = vrot.lane.b32.xlu0 %v3057_v4, %s3131_s15  ;;  %v947_v4 = vrot.slane %v938_v55, %v3344_v43  ;;  %v1208_v55 = vld [vmem:[%s4245_s4 + $0x40] sm:$0xff] }
 0x760   :  { %v759_v7 = vpop.permute.xlu0 %758 }
 0x761   :  { %v761_v15 = vmul.f32 %v759_v7, %v756_v8 }
 0x763   :  { %v766_v16 = vadd.f32 %v765_v11, %v761_v15  ;;  %v921_v11 = vsel %vm3408_vm3, %v3477_v6, %v3479_v14 }
 0x765   :  { %770 = vrot.lane.b32.xlu0 %v766_v16, %s3131_s15 }
 0x7d7   :  { %v771_v21 = vpop.permute.xlu0 %770 }
 0x7d8   :  { %v773_v22 = vsel %vm768_vm9, %v771_v21, 0.0  ;;  %v776_v25 = vsel %vm768_vm9, %v771_v21, %v637_v40 }
 0x7d9   :  { %774 = vst.msk [vmem:[#allocation3 + $0x18] sm:$0xff] %vm356_vm5, %v773_v22  ;;  %901 = vrot.lane.b32.xlu0 %v776_v25, %s3131_s15  ;;  %2721 = vmatmul.mubr.msk.f32.vlgmr.msra.gmra.mrb[18].mxu0 %vm207_vm1, %v776_v25 }
 0x7da   :  { %775 = vst.msk [vmem:[#allocation3 + $0x20] sm:$0xff] %vm358_vm6, %v773_v22  ;;  %2858 = vmatpush1.bf16.msra.mxu0 %v3224_v13  ;;  %1156 = vmatprep.mubr.f32.mxu0 %v3130_v3  ;;  %v804_v13 = vrot.slane %v799_v26, %v3339_v41 }
 0x7db   :  { %2860 = vmatprep.subr.bf16.mxu0 %v3236_v17 }
 0x7de   :  { %2862 = vmatpush1.bf16.msra.mxu0 %v3247_v20 }
 0x7df   :  { %2864 = vmatprep.subr.bf16.mxu0 %v3257_v23 }
 0x7e2   :  { %2866 = vmatpush1.bf16.msra.mxu0 %v3275_v28 }
 0x7e3   :  { %2868 = vmatprep.subr.bf16.mxu0 %v3282_v30  ;;  %v808_v30 = vrot.slane %v799_v26, %v3344_v43 }
 0x7e6   :  { %2870 = vmatpush1.bf16.msra.mxu0 %v3294_v33 }
 0x84b   :  { %v902_v5 = vpop.permute.xlu0 %901 }
 0x8ac   :  { %v880_v32 = vpop.f32.mrb[18].mxu0 }
 0x8ad   :  { %v881_v35 = vadd.f32 %v880_v32, %v804_v13  ;;  %v882_v37 = vpop.f32.mrb[19].mxu0  ;;  %v1077_v13 = vld [vmem:[%s4248_s5] sm:$0x3] }
 0x8ae   :  { %v883_v33 = vadd.f32 %v882_v37, %v808_v30  ;;  %v1082_v32 = vrot.slane %v1077_v13, %v3339_v41 }
 0x8af   :  { %v885_v17 = vadd.f32 %v881_v35, %v781_v9 }
 0x8b1   :  { %v2722_v20 = vmul.f32 -1.442695, %v885_v17 }
 0x8b3   :  { %3058 = vpow2.f32 %v2722_v20 }
 0x8bd   :  { %v3059_v23 = vpop.eup %3058 }
 0x8be   :  { %v889_v28 = vadd.f32 1.0, %v3059_v23 }
 0x8c0   :  { %3060 = vrcp.f32 %v889_v28 }
 0x8ca   :  { %v3061_v38 = vpop.eup %3060 }
 0x8cb   :  { %v892_v27 = vmul.f32 %v3061_v38, %v883_v33  ;;  %v895_v61 = vsub.f32 1.0, %v3061_v38  ;;  %v904_v46 = vmul.f32 %v3061_v38, %v902_v5  ;;  %v1086_v33 = vrot.slane %v1077_v13, %v3344_v43  ;;  %v1202_v5 = vld [vmem:[%s4245_s4 + $0x10] sm:$0xff] }
 0x8cd   :  { %v893_v40 = vadd.f32 %v892_v27, %v782_v39 }
 0x8cf   :  { %3062 = vtanh.f32 %v893_v40  ;;  %v1060_v40 = vsel %vm3408_vm3, %v3440_v31, %v3442_v36  ;;  %v1205_v31 = vld [vmem:[%s4245_s4 + $0x28] sm:$0xff]  ;;  %v1207_v36 = vld [vmem:[%s4245_s4 + $0x38] sm:$0xff] }
 0x8d9   :  { %v3063_v42 = vpop.eup %3062 }
 0x8da   :  { %897 = vrot.lane.b32.xlu1 %v3063_v42, %s3131_s15 }
 0x94c   :  { %v898_v9 = vpop.permute.xlu1 %897 }
 0x94d   :  { %v900_v48 = vmul.f32 %v898_v9, %v895_v61  ;;  %v2871_v61 = vpack.c.bf16 %v1203_v24, %v1201_v51 }
 0x94f   :  { %v905_v49 = vadd.f32 %v904_v46, %v900_v48  ;;  %v2875_v46 = vpack.c.bf16 %v1207_v36, %v1205_v31  ;;  %v1204_v48 = vld [vmem:[%s4245_s4 + $0x20] sm:$0xff]  ;;  %2872 = vmatprep.subr.bf16.mxu1 %v2871_v61  ;;  %v1354_v61 = vld [vmem:[%s4250_s6 + $0x30] sm:$0xff]  ;;  %v1357_v36 = vld [vmem:[%s4250_s6 + $0x48] sm:$0xff] }
 0x951   :  { %909 = vrot.lane.b32.xlu1 %v905_v49, %s3131_s15  ;;  %v1206_v49 = vld [vmem:[%s4245_s4 + $0x30] sm:$0xff] }
 0x9c3   :  { %v910_v45 = vpop.permute.xlu1 %909 }
 0x9c4   :  { %v912_v53 = vsel %vm907_vm10, %v910_v45, 0.0  ;;  %v915_v54 = vsel %vm907_vm10, %v910_v45, %v776_v25  ;;  %v1045_v25 = vld [vmem:[%s4249_s1 + $0x28] sm:$0xff]  ;;  %v1211_v45 = vld [vmem:[%s4245_s4 + $0x58] sm:$0xff] }
 0x9c5   :  { %913 = vst.msk [vmem:[#allocation3 + $0x20] sm:$0xff] %vm356_vm5, %v912_v53  ;;  %1040 = vrot.lane.b32.xlu1 %v915_v54, %s3131_s15  ;;  %2723 = vmatmul.mubr.msk.f32.vlgmr.msra.gmra.mrb[6].mxu1 %vm207_vm1, %v915_v54  ;;  %vm1046_vm11 = vcmp.gt.f32.partialorder %v1045_v25, 0.0 }
 0x9c6   :  { %914 = vst.msk [vmem:[#allocation3 + $0x18] sm:$0xff] %vm358_vm6, %v912_v53  ;;  %1295 = vmatprep.mubr.f32.mxu1 %v3130_v3  ;;  %v2877_v53 = vpack.c.bf16 %v1206_v49, %v1204_v48  ;;  %v1356_v48 = vld [vmem:[%s4250_s6 + $0x40] sm:$0xff]  ;;  %v1358_v49 = vld [vmem:[%s4250_s6 + $0x50] sm:$0xff] }
 0xa37   :  { %v1041_v12 = vpop.permute.xlu1 %1040 }
 0xa98   :  { %v1019_v58 = vpop.f32.mrb[6].mxu1 }
 0xa99   :  { %v1020_v59 = vadd.f32 %v1019_v58, %v943_v57  ;;  %v1021_v60 = vpop.f32.mrb[7].mxu1  ;;  %v1210_v57 = vld [vmem:[%s4245_s4 + $0x50] sm:$0xff]  ;;  %v1213_v58 = vld [vmem:[%s4245_s4 + $0x68] sm:$0xff] }
 0xa9a   :  { %v1022_v8 = vadd.f32 %v1021_v60, %v947_v4 }
 0xa9b   :  { %v1024_v62 = vadd.f32 %v1020_v59, %v920_v19  ;;  %v1215_v59 = vld [vmem:[%s4245_s4 + $0x78] sm:$0xff] }
 0xa9d   :  { %v2724_v63 = vmul.f32 -1.442695, %v1024_v62  ;;  %v2881_v62 = vpack.c.bf16 %v1210_v57, %v1208_v55  ;;  %v1362_v57 = vld [vmem:[%s4250_s6 + $0x70] sm:$0xff] }
 0xa9f   :  { %3064 = vpow2.f32 %v2724_v63  ;;  %v2883_v63 = vpack.c.bf16 %v1215_v59, %v1213_v58 }
 0xaa9   :  { %v3065_v0 = vpop.eup %3064 }
 0xaaa   :  { %v1028_v1 = vadd.f32 1.0, %v3065_v0  ;;  %v1212_v0 = vld [vmem:[%s4245_s4 + $0x60] sm:$0xff] }
 0xaac   :  { %3066 = vrcp.f32 %v1028_v1  ;;  %v1214_v1 = vld [vmem:[%s4245_s4 + $0x70] sm:$0xff] }
 0xaad   :  { %v2885_v4 = vpack.c.bf16 %v1214_v1, %v1212_v0 }
 0xab6   :  { %v3067_v10 = vpop.eup %3066 }
 0xab7   :  { %v1031_v7 = vmul.f32 %v3067_v10, %v1022_v8  ;;  %v1034_v56 = vsub.f32 1.0, %v3067_v10  ;;  %v1043_v18 = vmul.f32 %v3067_v10, %v1041_v12 }
 0xab9   :  { %v1032_v15 = vadd.f32 %v1031_v7, %v921_v11 }
 0xabb   :  { %3068 = vtanh.f32 %v1032_v15 }
 0xac5   :  { %v3069_v16 = vpop.eup %3068 }
 0xac6   :  { %1036 = vrot.lane.b32.xlu0 %v3069_v16, %s3131_s15 }
 0xb38   :  { %v1037_v19 = vpop.permute.xlu0 %1036 }
 0xb39   :  { %v1039_v21 = vmul.f32 %v1037_v19, %v1034_v56  ;;  %v1184_v56 = vld [vmem:[%s4249_s1 + $0x30] sm:$0xff] }
 0xb3a   :  { %vm1185_vm12 = vcmp.gt.f32.partialorder %v1184_v56, 0.0  ;;  %v1542_v56 = vld [vmem:[%s4251_s8 + $0x38] sm:$0xff] }
 0xb3b   :  { %v1044_v22 = vadd.f32 %v1043_v18, %v1039_v21  ;;  %v1216_v21 = vld [vmem:[%s4248_s5] sm:$0x3] }
 0xb3d   :  { %1048 = vrot.lane.b32.xlu0 %v1044_v22, %s3131_s15  ;;  %v1221_v22 = vrot.slane %v1216_v21, %v3339_v41 }
 0xbaf   :  { %v1049_v26 = vpop.permute.xlu0 %1048 }
 0xbb0   :  { %v1051_v6 = vsel %vm1046_vm11, %v1049_v26, 0.0  ;;  %v3572_v14 = vsel %vm1046_vm11, %v1049_v26, %v915_v54  ;;  %v2879_v54 = vpack.c.bf16 %v1211_v45, %v1209_v50  ;;  %v1196_v26 = vld [vmem:[#allocation2] sm:$0xff]  ;;  %v2897_v50 = vpack.c.bf16 %v1358_v49, %v1356_v48  ;;  %v1361_v45 = vld [vmem:[%s4250_s6 + $0x68] sm:$0xff] }
 0xbb1   :  { %1052 = vst.msk [vmem:[#allocation3 + $0x28] sm:$0xff] %vm356_vm5, %v1051_v6  ;;  %1179 = vrot.lane.b32.xlu0 %v3572_v14, %s3131_s15  ;;  %2725 = vmatmul.mubr.msk.f32.vlgmr.msra.gmra.mrb[20].mxu0 %vm207_vm1, %v3572_v14  ;;  %v1198_v13 = vsel %vm3358_vm2, %v3399_v34, %v1196_v26  ;;  %v1349_v34 = vld [vmem:[%s4250_s6 + $0x8] sm:$0xff]  ;;  %v1546_v26 = vld [vmem:[%s4251_s8 + $0x58] sm:$0xff] }
 0xbb2   :  { %1053 = vst.msk [vmem:[#allocation3 + $0x10] sm:$0xff] %vm358_vm6, %v1051_v6  ;;  %1464 = vmatprep.mubr.f32.mxu0 %v3130_v3 }
 0xc23   :  { %v1180_v10 = vpop.permute.xlu0 %1179 }
 0xc84   :  { %v1158_v35 = vpop.f32.mrb[20].mxu0 }
 0xc85   :  { %v1159_v37 = vadd.f32 %v1158_v35, %v1082_v32  ;;  %v1160_v17 = vpop.f32.mrb[21].mxu0 }
 0xc86   :  { %v1161_v38 = vadd.f32 %v1160_v17, %v1086_v33  ;;  %v1199_v33 = vsel %vm3408_vm3, %v3406_v44, %v3412_v47  ;;  %v1353_v44 = vld [vmem:[%s4250_s6 + $0x28] sm:$0xff]  ;;  %v1355_v47 = vld [vmem:[%s4250_s6 + $0x38] sm:$0xff] }
 0xc87   :  { %v1163_v20 = vadd.f32 %v1159_v37, %v1059_v29  ;;  %v1200_v29 = vld [vmem:[%s4245_s4] sm:$0xff]  ;;  %v2891_v24 = vpack.c.bf16 %v1355_v47, %v1353_v44  ;;  %v1345_v44 = vld [vmem:[#allocation3 + $0x28] sm:$0xff] }
 0xc88   :  { %v2873_v9 = vpack.c.bf16 %v1202_v5, %v1200_v29  ;;  %v1352_v29 = vld [vmem:[%s4250_s6 + $0x20] sm:$0xff] }
 0xc89   :  { %v2726_v23 = vmul.f32 -1.442695, %v1163_v20  ;;  %v1225_v20 = vrot.slane %v1216_v21, %v3344_v43  ;;  %v2893_v5 = vpack.c.bf16 %v1354_v61, %v1352_v29  ;;  %v1541_v21 = vld [vmem:[%s4251_s8 + $0x30] sm:$0xff]  ;;  %v1364_v61 = vld [vmem:[%s4253_s7] sm:$0x3] }
 0xc8a   :  { %2874 = vmatpush1.bf16.msra.mxu1 %v2873_v9  ;;  %v1359_v9 = vld [vmem:[%s4250_s6 + $0x58] sm:$0xff] }
 0xc8b   :  { %3070 = vpow2.f32 %v2726_v23  ;;  %2876 = vmatprep.subr.bf16.mxu1 %v2875_v46  ;;  %v2895_v46 = vpack.c.bf16 %v1359_v9, %v1357_v36 }
 0xc8e   :  { %2878 = vmatpush1.bf16.msra.mxu1 %v2877_v53  ;;  %v1363_v53 = vld [vmem:[%s4250_s6 + $0x78] sm:$0xff] }
 0xc8f   :  { %2880 = vmatprep.subr.bf16.mxu1 %v2879_v54  ;;  %v1360_v54 = vld [vmem:[%s4250_s6 + $0x60] sm:$0xff]  ;;  %v2899_v55 = vpack.c.bf16 %v1363_v53, %v1361_v45 }
 0xc90   :  { %v2901_v58 = vpack.c.bf16 %v1362_v57, %v1360_v54 }
 0xc92   :  { %2882 = vmatpush1.bf16.msra.mxu1 %v2881_v62 }
 0xc93   :  { %2884 = vmatprep.subr.bf16.mxu1 %v2883_v63 }
 0xc95   :  { %v3071_v28 = vpop.eup %3070 }
 0xc96   :  { %v1167_v30 = vadd.f32 1.0, %v3071_v28  ;;  %2886 = vmatpush1.bf16.msra.mxu1 %v2885_v4  ;;  %v1536_v4 = vld [vmem:[%s4251_s8 + $0x8] sm:$0xff] }
 0xc98   :  { %3072 = vrcp.f32 %v1167_v30 }
 0xca2   :  { %v3073_v27 = vpop.eup %3072 }
 0xca3   :  { %v1170_v39 = vmul.f32 %v3073_v27, %v1161_v38  ;;  %v1173_v8 = vsub.f32 1.0, %v3073_v27  ;;  %v1182_v11 = vmul.f32 %v3073_v27, %v1180_v10  ;;  %v1351_v27 = vld [vmem:[%s4250_s6 + $0x18] sm:$0xff] }
 0xca5   :  { %v1171_v42 = vadd.f32 %v1170_v39, %v1060_v40  ;;  %v1348_v39 = vld [vmem:[%s4250_s6] sm:$0xff]  ;;  %v2887_v40 = vpack.c.bf16 %v1351_v27, %v1349_v34 }
 0xca7   :  { %3074 = vtanh.f32 %v1171_v42  ;;  %v1350_v42 = vld [vmem:[%s4250_s6 + $0x10] sm:$0xff]  ;;  %2888 = vmatprep.subr.bf16.mxu0 %v2887_v40  ;;  %v1343_v40 = vld [vmem:[#allocation3 + $0x18] sm:$0xff] }
 0xca8   :  { %v2889_v51 = vpack.c.bf16 %v1350_v42, %v1348_v39  ;;  %v1342_v39 = vld [vmem:[#allocation3 + $0x10] sm:$0xff]  ;;  %v1344_v42 = vld [vmem:[#allocation3 + $0x20] sm:$0xff] }
 0xcaa   :  { %2890 = vmatpush1.bf16.msra.mxu0 %v2889_v51 }
 0xcab   :  { %2892 = vmatprep.subr.bf16.mxu0 %v2891_v24 }
 0xcae   :  { %2894 = vmatpush1.bf16.msra.mxu0 %v2893_v5  ;;  %v1369_v5 = vrot.slane %v1364_v61, %v3339_v41 }
 0xcaf   :  { %2896 = vmatprep.subr.bf16.mxu0 %v2895_v46 }
 0xcb1   :  { %v3075_v60 = vpop.eup %3074 }
 0xcb2   :  { %1175 = vrot.lane.b32.xlu1 %v3075_v60, %s3131_s15  ;;  %2898 = vmatpush1.bf16.msra.mxu0 %v2897_v50 }
 0xcb3   :  { %2900 = vmatprep.subr.bf16.mxu0 %v2899_v55 }
 0xcb6   :  { %2902 = vmatpush1.bf16.msra.mxu0 %v2901_v58 }
 0xd24   :  { %v1176_v7 = vpop.permute.xlu1 %1175 }
 0xd25   :  { %v1178_v15 = vmul.f32 %v1176_v7, %v1173_v8  ;;  %v1538_v8 = vld [vmem:[%s4251_s8 + $0x18] sm:$0xff]  ;;  %v1535_v7 = vld [vmem:[%s4251_s8] sm:$0xff] }
 0xd26   :  { %v3726_v10 = vpack.c.bf16 %v1538_v8, %v1536_v4 }
 0xd27   :  { %v1183_v16 = vadd.f32 %v1182_v11, %v1178_v15  ;;  %v1537_v11 = vld [vmem:[%s4251_s8 + $0x10] sm:$0xff] }
 0xd28   :  { %v3734_v15 = vpack.c.bf16 %v1537_v11, %v1535_v7  ;;  %2904 = vmatprep.subr.bf16.mxu1 %v3726_v10  ;;  %2936 = vmatprep.subr.bf16.mxu0 %v3726_v10 }
 0xd29   :  { %1187 = vrot.lane.b32.xlu1 %v1183_v16, %s3131_s15  ;;  %v1540_v16 = vld [vmem:[%s4251_s8 + $0x28] sm:$0xff] }
 0xd9b   :  { %v1188_v12 = vpop.permute.xlu1 %1187 }
 0xd9c   :  { %v1190_v19 = vsel %vm1185_vm12, %v1188_v12, 0.0  ;;  %v3649_v18 = vsel %vm1185_vm12, %v1188_v12, %v3572_v14  ;;  %v3745_v12 = vpack.c.bf16 %v1542_v56, %v1540_v16 }
 0xd9d   :  { %1191 = vst.msk [vmem:[#allocation3 + $0x30] sm:$0xff] %vm356_vm5, %v1190_v19  ;;  %1318 = vrot.lane.b32.xlu1 %v3649_v18, %s3131_s15  ;;  %2727 = vmatmul.mubr.msk.f32.vlgmr.msra.gmra.mrb[8].mxu1 %vm207_vm1, %v3649_v18 }
 0xd9e   :  { %1192 = vst.msk [vmem:[#allocation3 + $0x8] sm:$0xff] %vm358_vm6, %v1190_v19  ;;  %1627 = vmatprep.mubr.f32.mxu1 %v3130_v3  ;;  %2906 = vmatpush1.bf16.msra.mxu1 %v3734_v15  ;;  %v1539_v19 = vld [vmem:[%s4251_s8 + $0x20] sm:$0xff] }
 0xd9f   :  { %2908 = vmatprep.subr.bf16.mxu1 %v3745_v12 }
 0xda4   :  { %v1346_v47 = vld [vmem:[#allocation3 + $0x30] sm:$0xff] }
 0xe0f   :  { %v1319_v60 = vpop.permute.xlu1 %1318 }
 0xe70   :  { %v1297_v25 = vpop.f32.mrb[8].mxu1 }
 0xe71   :  { %v1298_v6 = vadd.f32 %v1297_v25, %v1221_v22  ;;  %v1299_v14 = vpop.f32.mrb[9].mxu1  ;;  %v3753_v22 = vpack.c.bf16 %v1541_v21, %v1539_v19  ;;  %v1544_v25 = vld [vmem:[%s4251_s8 + $0x48] sm:$0xff]  ;;  %v1551_v21 = vld [vmem:[%s4254_s9] sm:$0x3] }
 0xe72   :  { %v1300_v23 = vadd.f32 %v1299_v14, %v1225_v20  ;;  %v1543_v14 = vld [vmem:[%s4251_s8 + $0x40] sm:$0xff] }
 0xe73   :  { %v1302_v32 = vadd.f32 %v1298_v6, %v1198_v13  ;;  %2910 = vmatpush1.bf16.msra.mxu1 %v3753_v22  ;;  %v3763_v6 = vpack.c.bf16 %v1546_v26, %v1544_v25  ;;  %v1545_v13 = vld [vmem:[%s4251_s8 + $0x50] sm:$0xff]  ;;  %v1547_v20 = vld [vmem:[%s4251_s8 + $0x60] sm:$0xff] }
 0xe75   :  { %v2728_v35 = vmul.f32 -1.442695, %v1302_v32  ;;  %v3771_v32 = vpack.c.bf16 %v1545_v13, %v1543_v14  ;;  %2912 = vmatprep.subr.bf16.mxu1 %v3763_v6 }
 0xe77   :  { %3076 = vpow2.f32 %v2728_v35  ;;  %2914 = vmatpush1.bf16.msra.mxu1 %v3771_v32  ;;  %v1548_v35 = vld [vmem:[%s4251_s8 + $0x68] sm:$0xff] }
 0xe81   :  { %v3077_v37 = vpop.eup %3076 }
 0xe82   :  { %v1306_v17 = vadd.f32 1.0, %v3077_v37  ;;  %v1550_v37 = vld [vmem:[%s4251_s8 + $0x78] sm:$0xff] }
 0xe84   :  { %3078 = vrcp.f32 %v1306_v17  ;;  %v3781_v17 = vpack.c.bf16 %v1550_v37, %v1548_v35  ;;  %v1556_v35 = vrot.slane %v1551_v21, %v3339_v41 }
 0xe86   :  { %2916 = vmatprep.subr.bf16.mxu1 %v3781_v17 }
 0xe8e   :  { %v3079_v28 = vpop.eup %3078 }
 0xe8f   :  { %v1309_v30 = vmul.f32 %v3079_v28, %v1300_v23  ;;  %v1312_v59 = vsub.f32 1.0, %v3079_v28  ;;  %v1321_v63 = vmul.f32 %v3079_v28, %v1319_v60  ;;  %v1549_v23 = vld [vmem:[%s4251_s8 + $0x70] sm:$0xff] }
 0xe90   :  { %v3789_v28 = vpack.c.bf16 %v1549_v23, %v1547_v20 }
 0xe91   :  { %v1310_v38 = vadd.f32 %v1309_v30, %v1199_v33  ;;  %v1323_v30 = vld [vmem:[%s4249_s1 + $0x38] sm:$0xff] }
 0xe92   :  { %2918 = vmatpush1.bf16.msra.mxu1 %v3789_v28  ;;  %vm1324_vm13 = vcmp.gt.f32.partialorder %v1323_v30, 0.0 }
 0xe93   :  { %3080 = vtanh.f32 %v1310_v38  ;;  %2920 = vmatprep.subr.bf16.mxu1 %v3726_v10 }
 0xe95   :  { %1628 = vmatmul.mubr.f32.vlgmr.msra.gmra.mrb[10].mxu1 %v3130_v3 }
 0xe96   :  { %2922 = vmatpush1.bf16.msra.mxu1 %v3734_v15  ;;  %1762 = vmatprep.mubr.f32.mxu1 %v3130_v3 }
 0xe97   :  { %2924 = vmatprep.subr.bf16.mxu1 %v3745_v12 }
 0xe9a   :  { %2926 = vmatpush1.bf16.msra.mxu1 %v3753_v22 }
 0xe9b   :  { %2928 = vmatprep.subr.bf16.mxu1 %v3763_v6 }
 0xe9d   :  { %v3081_v31 = vpop.eup %3080 }
 0xe9e   :  { %1314 = vrot.lane.b32.xlu0 %v3081_v31, %s3131_s15  ;;  %2930 = vmatpush1.bf16.msra.mxu1 %v3771_v32  ;;  %v1373_v31 = vrot.slane %v1364_v61, %v3344_v43 }
 0xe9f   :  { %2932 = vmatprep.subr.bf16.mxu1 %v3781_v17 }
 0xea2   :  { %2934 = vmatpush1.bf16.msra.mxu1 %v3789_v28 }
 0xea3   :  { %2952 = vmatprep.subr.bf16.mxu1 %v3726_v10 }
 0xf10   :  { %v1315_v62 = vpop.permute.xlu0 %1314 }
 0xf11   :  { %v1317_v0 = vmul.f32 %v1315_v62, %v1312_v59 }
 0xf13   :  { %v1322_v1 = vadd.f32 %v1321_v63, %v1317_v0 }
 0xf15   :  { %1326 = vrot.lane.b32.xlu0 %v1322_v1, %s3131_s15 }
 0xf68   :  { %v1629_v24 = vpop.f32.mrb[10].mxu1 }
 0xf69   :  { %v3841_v29 = vpop.f32.mrb[11].mxu1 }
 0xf87   :  { %v1327_v33 = vpop.permute.xlu0 %1326 }
 0xf88   :  { %v1329_v38 = vsel %vm1324_vm13, %v1327_v33, 0.0  ;;  %v3808_v34 = vsel %vm1324_vm13, %v1327_v33, %v3649_v18  ;;  %v1341_v18 = vld [vmem:[#allocation3 + $0x8] sm:$0xff] }
 0xf89   :  { %1330 = vst.msk [vmem:[#allocation3 + $0x38] sm:$0xff] %vm356_vm5, %v1329_v38  ;;  %1333 = vst.msk [vmem:[%s4252_s11] sm:$0xff] %vm356_vm5, %v3808_v34 }
 0xf8a   :  { %1331 = vst.msk [vmem:[#allocation3] sm:$0xff] %vm358_vm6, %v1329_v38 }
 0xf90   :  { %v1347_v51 = vld [vmem:[#allocation3 + $0x38] sm:$0xff] }
 0xf91   :  { %v1340_v27 = vld [vmem:[#allocation3] sm:$0xff] }
 0xf92   :  { %2730 = vmatmul.mubr.msk.f32.vlgmr.msra.gmra.mrb[22].mxu0 %vm207_vm1, %v1340_v27 }
 0xf93   :  { %1470 = vmatprep.mubr.f32.mxu0 %v3130_v3  ;;  %2938 = vmatpush1.bf16.msra.mxu0 %v3734_v15 }
 0xf94   :  { %2940 = vmatprep.subr.bf16.mxu0 %v3745_v12 }
 0xf96   :  { %2731 = vmatmul.mubr.msk.f32.gmra.mrb[24].mxu0 %vm207_vm1, %v1341_v18 }
 0xf97   :  { %1476 = vmatprep.mubr.f32.mxu0 %v3130_v3  ;;  %2942 = vmatpush1.bf16.msra.mxu0 %v3753_v22 }
 0xf98   :  { %2944 = vmatprep.subr.bf16.mxu0 %v3763_v6 }
 0xf9a   :  { %2732 = vmatmul.mubr.msk.f32.gmra.mrb[26].mxu0 %vm207_vm1, %v1342_v39  ;;  %v1630_v39 = vadd.f32 %v1629_v24, %v1556_v35 }
 0xf9b   :  { %1482 = vmatprep.mubr.f32.mxu0 %v3130_v3  ;;  %2946 = vmatpush1.bf16.msra.mxu0 %v3771_v32 }
 0xf9c   :  { %2948 = vmatprep.subr.bf16.mxu0 %v3781_v17 }
 0xf9e   :  { %2733 = vmatmul.mubr.msk.f32.gmra.mrb[28].mxu0 %vm207_vm1, %v1343_v40 }
 0xf9f   :  { %1488 = vmatprep.mubr.f32.mxu0 %v3130_v3  ;;  %2950 = vmatpush1.bf16.msra.mxu0 %v3789_v28 }
 0xfa0   :  { %2968 = vmatprep.subr.bf16.mxu0 %v3726_v10 }
 0xfa2   :  { %2734 = vmatmul.mubr.msk.f32.gmra.mrb[30].mxu0 %vm207_vm1, %v1344_v42 }
 0xfa3   :  { %1494 = vmatprep.mubr.f32.mxu0 %v3130_v3 }
 0xfa6   :  { %2735 = vmatmul.mubr.msk.f32.gmra.mrb[32].mxu0 %vm207_vm1, %v1345_v44 }
 0xfa7   :  { %1500 = vmatprep.mubr.f32.mxu0 %v3130_v3 }
 0xfaa   :  { %2736 = vmatmul.mubr.msk.f32.gmra.mrb[34].mxu0 %vm207_vm1, %v1346_v47 }
 0xfab   :  { %1506 = vmatprep.mubr.f32.mxu0 %v3130_v3 }
 0xfae   :  { %2737 = vmatmul.mubr.msk.f32.gmra.mrb[36].mxu0 %vm207_vm1, %v1347_v51 }
 0xfaf   :  { %1901 = vmatprep.mubr.f32.mxu0 %v3130_v3 }
0x1065   :  { %v1466_v36 = vpop.f32.mrb[22].mxu0 }
0x1066   :  { %v1467_v9 = vadd.f32 %v1466_v36, %v1369_v5  ;;  %v1468_v46 = vpop.f32.mrb[23].mxu0 }
0x1067   :  { %v1469_v48 = vadd.f32 %v1468_v46, %v1373_v31 }
0x1068   :  { %1513 = vst [vmem:[#allocation2] sm:$0xff] %v1467_v9 }
0x1069   :  { %1514 = vst.msk [vmem:[#allocation2 + $0x8] sm:$0xff] %vm207_vm1, %v1469_v48  ;;  %v1472_v49 = vpop.f32.mrb[24].mxu0 }
0x106a   :  { %v3849_v50 = vadd.f32 %v1472_v49, %v1369_v5  ;;  %v1474_v45 = vpop.f32.mrb[25].mxu0 }
0x106b   :  { %v1475_v53 = vadd.f32 %v1474_v45, %v1373_v31 }
0x106d   :  { %1516 = vst.msk [vmem:[#allocation2 + $0x18] sm:$0xff] %vm207_vm1, %v1475_v53  ;;  %v1478_v54 = vpop.f32.mrb[26].mxu0  ;;  %v1560_v53 = vrot.slane %v1551_v21, %v3344_v43 }
0x106e   :  { %v3852_v55 = vadd.f32 %v1478_v54, %v1369_v5  ;;  %v1480_v57 = vpop.f32.mrb[27].mxu0 }
0x106f   :  { %v1481_v58 = vadd.f32 %v1480_v57, %v1373_v31  ;;  %v1632_v57 = vadd.f32 %v3841_v29, %v1560_v53  ;;  %v1652_v29 = vld [vmem:[%s4249_s1] sm:$0xff] }
0x1070   :  { %vm1653_vm14 = vcmp.gt.f32.partialorder %v1652_v29, 0.0  ;;  %v1822_v29 = vld [vmem:[%s4254_s9] sm:$0x3] }
0x1071   :  { %1518 = vst.msk [vmem:[#allocation2 + $0x28] sm:$0xff] %vm207_vm1, %v1481_v58  ;;  %v1484_v59 = vpop.f32.mrb[28].mxu0 }
0x1072   :  { %v3855_v60 = vadd.f32 %v1484_v59, %v1369_v5  ;;  %v1486_v62 = vpop.f32.mrb[29].mxu0  ;;  %v1530_v59 = vld [vmem:[#allocation2 + $0x8] sm:$0xff] }
0x1073   :  { %v1487_v63 = vadd.f32 %v1486_v62, %v1373_v31 }
0x1075   :  { %1520 = vst.msk [vmem:[#allocation2 + $0x38] sm:$0xff] %vm207_vm1, %v1487_v63  ;;  %v1490_v0 = vpop.f32.mrb[30].mxu0 }
0x1076   :  { %v3858_v1 = vadd.f32 %v1490_v0, %v1369_v5  ;;  %v1492_v4 = vpop.f32.mrb[31].mxu0 }
0x1077   :  { %v1493_v8 = vadd.f32 %v1492_v4, %v1373_v31 }
0x1078   :  { %v1943_v7 = vsel %vm3358_vm2, %v3855_v60, %v3858_v1  ;;  %v2082_v11 = vsel %vm3358_vm2, %v3858_v1, %v3855_v60  ;;  %v3905_v61 = vld [vmem:[#allocation2 + $0x28] sm:$0xff] }
0x1079   :  { %1522 = vst.msk [vmem:[#allocation2 + $0x48] sm:$0xff] %vm207_vm1, %v1493_v8  ;;  %v1496_v16 = vpop.f32.mrb[32].mxu0 }
0x107a   :  { %v3869_v56 = vadd.f32 %v1496_v16, %v1369_v5  ;;  %v1498_v19 = vpop.f32.mrb[33].mxu0 }
0x107b   :  { %v1499_v25 = vadd.f32 %v1498_v19, %v1373_v31 }
0x107c   :  { %v1804_v26 = vsel %vm3358_vm2, %v3852_v55, %v3869_v56  ;;  %v2221_v14 = vsel %vm3358_vm2, %v3869_v56, %v3852_v55  ;;  %v3890_v33 = vld [vmem:[#allocation2 + $0x38] sm:$0xff] }
0x107d   :  { %1524 = vst.msk [vmem:[#allocation2 + $0x58] sm:$0xff] %vm207_vm1, %v1499_v25  ;;  %v1502_v13 = vpop.f32.mrb[34].mxu0 }
0x107e   :  { %v3884_v37 = vadd.f32 %v1502_v13, %v1369_v5  ;;  %v1504_v20 = vpop.f32.mrb[35].mxu0 }
0x107f   :  { %v1505_v23 = vadd.f32 %v1504_v20, %v1373_v31  ;;  %v1683_v20 = vld [vmem:[%s4254_s9] sm:$0x3] }
0x1080   :  { %v1665_v30 = vsel %vm3358_vm2, %v3849_v50, %v3884_v37  ;;  %v3892_v38 = vld [vmem:[#allocation2 + $0x48] sm:$0xff]  ;;  %v2360_v27 = vsel %vm3358_vm2, %v3884_v37, %v3849_v50  ;;  %v2504_v37 = vld [vmem:[%s4251_s8 + $0x18] sm:$0xff] }
0x1081   :  { %1526 = vst.msk [vmem:[#allocation2 + $0x68] sm:$0xff] %vm207_vm1, %v1505_v23  ;;  %v1508_v18 = vpop.f32.mrb[36].mxu0  ;;  %v2083_v40 = vsel %vm3408_vm3, %v3892_v38, %v3890_v33  ;;  %v1688_v23 = vrot.slane %v1683_v20, %v3339_v41  ;;  %v2502_v50 = vld [vmem:[%s4251_s8 + $0x8] sm:$0xff] }
0x1082   :  { %v1509_v42 = vadd.f32 %v1508_v18, %v1369_v5  ;;  %v1510_v44 = vpop.f32.mrb[37].mxu0  ;;  %v3914_v5 = vld [vmem:[#allocation2 + $0x18] sm:$0xff] }
0x1083   :  { %v1511_v47 = vadd.f32 %v1510_v44, %v1373_v31 }
0x1084   :  { %1527 = vst [vmem:[#allocation2 + $0x70] sm:$0xff] %v1509_v42  ;;  %v1533_v51 = vsel %vm3358_vm2, %v1467_v9, %v1509_v42  ;;  %v3907_v36 = vld [vmem:[#allocation2 + $0x58] sm:$0xff] }
0x1085   :  { %1528 = vst.msk [vmem:[#allocation2 + $0x78] sm:$0xff] %vm207_vm1, %v1511_v47  ;;  %v1634_v46 = vadd.f32 %v1630_v39, %v1533_v51  ;;  %v2222_v24 = vsel %vm3408_vm3, %v3907_v36, %v3905_v61 }
0x1087   :  { %v2738_v48 = vmul.f32 -1.442695, %v1634_v46 }
0x1088   :  { %v3916_v31 = vld [vmem:[#allocation2 + $0x68] sm:$0xff] }
0x1089   :  { %3082 = vpow2.f32 %v2738_v48  ;;  %v2361_v9 = vsel %vm3408_vm3, %v3916_v31, %v3914_v5  ;;  %v1692_v48 = vrot.slane %v1683_v20, %v3344_v43 }
0x108c   :  { %v3923_v54 = vld [vmem:[#allocation2 + $0x78] sm:$0xff] }
0x108d   :  { %v1534_v63 = vsel %vm3408_vm3, %v1530_v59, %v3923_v54 }
0x1093   :  { %v3083_v49 = vpop.eup %3082 }
0x1094   :  { %v1638_v45 = vadd.f32 1.0, %v3083_v49 }
0x1096   :  { %3084 = vrcp.f32 %v1638_v45 }
0x10a0   :  { %v3085_v58 = vpop.eup %3084 }
0x10a1   :  { %v1641_v62 = vmul.f32 %v3085_v58, %v1632_v57  ;;  %v1644_v8 = vsub.f32 1.0, %v3085_v58  ;;  %v1650_v19 = vmul.f32 0.0, %v3085_v58  ;;  %v1666_v57 = vsel %vm3408_vm3, %v3914_v5, %v3916_v31  ;;  %v2506_v5 = vld [vmem:[%s4251_s8 + $0x28] sm:$0xff]  ;;  %v2508_v31 = vld [vmem:[%s4251_s8 + $0x38] sm:$0xff] }
0x10a3   :  { %v1642_v0 = vadd.f32 %v1641_v62, %v1534_v63 }
0x10a5   :  { %3086 = vtanh.f32 %v1642_v0 }
0x10af   :  { %v3087_v4 = vpop.eup %3086 }
0x10b0   :  { %1646 = vrot.lane.b32.xlu1 %v3087_v4, %s3131_s15 }
0x1122   :  { %v1647_v16 = vpop.permute.xlu1 %1646 }
0x1123   :  { %v1649_v21 = vmul.f32 %v1647_v16, %v1644_v8  ;;  %v1790_v16 = vld [vmem:[%s4249_s1 + $0x8] sm:$0xff] }
0x1124   :  { %vm1791_vm15 = vcmp.gt.f32.partialorder %v1790_v16, 0.0 }
0x1125   :  { %v1651_v25 = vadd.f32 %v1650_v19, %v1649_v21 }
0x1127   :  { %1655 = vrot.lane.b32.xlu0 %v1651_v25, %s3131_s15 }
0x1199   :  { %v1656_v13 = vpop.permute.xlu0 %1655 }
0x119a   :  { %v1658_v35 = vsel %vm1653_vm14, %v1656_v13, 0.0  ;;  %v1827_v13 = vrot.slane %v1822_v29, %v3339_v41 }
0x119b   :  { %1659 = vst.msk [vmem:[#allocation3] sm:$0xff] %vm356_vm5, %v1658_v35  ;;  %1785 = vrot.lane.b32.xlu0 %v1658_v35, %s3131_s15  ;;  %2739 = vmatmul.mubr.msk.f32.vlgmr.msra.gmra.mrb[12].mxu1 %vm207_vm1, %v1658_v35 }
0x119c   :  { %1660 = vst.msk [vmem:[#allocation3 + $0x38] sm:$0xff] %vm358_vm6, %v1658_v35  ;;  %2954 = vmatpush1.bf16.msra.mxu1 %v3734_v15  ;;  %2040 = vmatprep.mubr.f32.mxu1 %v3130_v3 }
0x119d   :  { %2956 = vmatprep.subr.bf16.mxu1 %v3745_v12 }
0x11a0   :  { %2958 = vmatpush1.bf16.msra.mxu1 %v3753_v22 }
0x11a1   :  { %2960 = vmatprep.subr.bf16.mxu1 %v3763_v6 }
0x11a4   :  { %2962 = vmatpush1.bf16.msra.mxu1 %v3771_v32 }
0x11a5   :  { %2964 = vmatprep.subr.bf16.mxu1 %v3781_v17 }
0x11a8   :  { %2966 = vmatpush1.bf16.msra.mxu1 %v3789_v28 }
0x11a9   :  { %2984 = vmatprep.subr.bf16.mxu1 %v3726_v10 }
0x120d   :  { %v1786_v62 = vpop.permute.xlu0 %1785 }
0x126e   :  { %v1764_v18 = vpop.f32.mrb[12].mxu1 }
0x126f   :  { %v1765_v39 = vadd.f32 %v1764_v18, %v1688_v23  ;;  %v1766_v42 = vpop.f32.mrb[13].mxu1 }
0x1270   :  { %v1767_v49 = vadd.f32 %v1766_v42, %v1692_v48  ;;  %v1805_v48 = vsel %vm3408_vm3, %v3905_v61, %v3907_v36 }
0x1271   :  { %v1769_v44 = vadd.f32 %v1765_v39, %v1665_v30 }
0x1273   :  { %v2740_v47 = vmul.f32 -1.442695, %v1769_v44 }
0x1275   :  { %3088 = vpow2.f32 %v2740_v47 }
0x127f   :  { %v3089_v51 = vpop.eup %3088 }
0x1280   :  { %v1773_v46 = vadd.f32 1.0, %v3089_v51 }
0x1282   :  { %3090 = vrcp.f32 %v1773_v46 }
0x128c   :  { %v3091_v45 = vpop.eup %3090 }
0x128d   :  { %v1776_v53 = vmul.f32 %v3091_v45, %v1767_v49  ;;  %v1779_v30 = vsub.f32 1.0, %v3091_v45  ;;  %v1788_v0 = vmul.f32 %v3091_v45, %v1786_v62  ;;  %v1929_v62 = vld [vmem:[%s4249_s1 + $0x10] sm:$0xff] }
0x128e   :  { %vm1930_vm0 = vcmp.gt.f32.partialorder %v1929_v62, 0.0 }
0x128f   :  { %v1777_v58 = vadd.f32 %v1776_v53, %v1666_v57 }
0x1291   :  { %3092 = vtanh.f32 %v1777_v58 }
0x129b   :  { %v3093_v59 = vpop.eup %3092 }
0x129c   :  { %1781 = vrot.lane.b32.xlu1 %v3093_v59, %s3131_s15 }
0x130e   :  { %v1782_v63 = vpop.permute.xlu1 %1781 }
0x130f   :  { %v1784_v4 = vmul.f32 %v1782_v63, %v1779_v30 }
0x1311   :  { %v1789_v8 = vadd.f32 %v1788_v0, %v1784_v4 }
0x1313   :  { %1793 = vrot.lane.b32.xlu1 %v1789_v8, %s3131_s15  ;;  %v1961_v8 = vld [vmem:[%s4254_s9] sm:$0x3] }
0x1314   :  { %v1966_v16 = vrot.slane %v1961_v8, %v3339_v41 }
0x1385   :  { %v1794_v19 = vpop.permute.xlu1 %1793 }
0x1386   :  { %v1796_v21 = vsel %vm1791_vm15, %v1794_v19, 0.0  ;;  %v1799_v25 = vsel %vm1791_vm15, %v1794_v19, %v1658_v35 }
0x1387   :  { %1797 = vst.msk [vmem:[#allocation3 + $0x8] sm:$0xff] %vm356_vm5, %v1796_v21  ;;  %1924 = vrot.lane.b32.xlu1 %v1799_v25, %s3131_s15  ;;  %2741 = vmatmul.mubr.msk.f32.vlgmr.msra.gmra.mrb[38].mxu0 %vm207_vm1, %v1799_v25 }
0x1388   :  { %1798 = vst.msk [vmem:[#allocation3 + $0x30] sm:$0xff] %vm358_vm6, %v1796_v21  ;;  %2970 = vmatpush1.bf16.msra.mxu0 %v3734_v15  ;;  %2179 = vmatprep.mubr.f32.mxu0 %v3130_v3 }
0x1389   :  { %2972 = vmatprep.subr.bf16.mxu0 %v3745_v12 }
0x138c   :  { %2974 = vmatpush1.bf16.msra.mxu0 %v3753_v22 }
0x138d   :  { %2976 = vmatprep.subr.bf16.mxu0 %v3763_v6 }
0x1390   :  { %2978 = vmatpush1.bf16.msra.mxu0 %v3771_v32 }
0x1391   :  { %2980 = vmatprep.subr.bf16.mxu0 %v3781_v17 }
0x1394   :  { %2982 = vmatpush1.bf16.msra.mxu0 %v3789_v28 }
0x1395   :  { %3000 = vmatprep.subr.bf16.mxu0 %v3726_v10  ;;  %v1831_v10 = vrot.slane %v1822_v29, %v3344_v43 }
0x13f9   :  { %v1925_v53 = vpop.permute.xlu1 %1924 }
0x145a   :  { %v1903_v35 = vpop.f32.mrb[38].mxu0 }
0x145b   :  { %v1904_v20 = vadd.f32 %v1903_v35, %v1827_v13  ;;  %v1905_v23 = vpop.f32.mrb[39].mxu0 }
0x145c   :  { %v1906_v47 = vadd.f32 %v1905_v23, %v1831_v10  ;;  %v1970_v23 = vrot.slane %v1961_v8, %v3344_v43 }
0x145d   :  { %v1908_v18 = vadd.f32 %v1904_v20, %v1804_v26 }
0x145f   :  { %v2742_v39 = vmul.f32 -1.442695, %v1908_v18 }
0x1461   :  { %3094 = vpow2.f32 %v2742_v39 }
0x146b   :  { %v3095_v42 = vpop.eup %3094 }
0x146c   :  { %v1912_v44 = vadd.f32 1.0, %v3095_v42 }
0x146e   :  { %3096 = vrcp.f32 %v1912_v44  ;;  %v1944_v44 = vsel %vm3408_vm3, %v3890_v33, %v3892_v38 }
0x1478   :  { %v3097_v51 = vpop.eup %3096 }
0x1479   :  { %v1915_v46 = vmul.f32 %v3097_v51, %v1906_v47  ;;  %v1918_v26 = vsub.f32 1.0, %v3097_v51  ;;  %v1927_v58 = vmul.f32 %v3097_v51, %v1925_v53 }
0x147b   :  { %v1916_v49 = vadd.f32 %v1915_v46, %v1805_v48 }
0x147d   :  { %3098 = vtanh.f32 %v1916_v49 }
0x1487   :  { %v3099_v45 = vpop.eup %3098 }
0x1488   :  { %1920 = vrot.lane.b32.xlu0 %v3099_v45, %s3131_s15 }
0x14fa   :  { %v1921_v57 = vpop.permute.xlu0 %1920 }
0x14fb   :  { %v1923_v59 = vmul.f32 %v1921_v57, %v1918_v26  ;;  %v2068_v26 = vld [vmem:[%s4249_s1 + $0x18] sm:$0xff] }
0x14fc   :  { %vm2069_vm4 = vcmp.gt.f32.partialorder %v2068_v26, 0.0 }
0x14fd   :  { %v1928_v30 = vadd.f32 %v1927_v58, %v1923_v59  ;;  %v2100_v59 = vld [vmem:[%s4254_s9] sm:$0x3] }
0x14ff   :  { %1932 = vrot.lane.b32.xlu0 %v1928_v30, %s3131_s15 }
0x1571   :  { %v1933_v63 = vpop.permute.xlu0 %1932 }
0x1572   :  { %v1935_v0 = vsel %vm1930_vm0, %v1933_v63, 0.0  ;;  %v1938_v4 = vsel %vm1930_vm0, %v1933_v63, %v1799_v25 }
0x1573   :  { %1936 = vst.msk [vmem:[#allocation3 + $0x10] sm:$0xff] %vm356_vm5, %v1935_v0  ;;  %2063 = vrot.lane.b32.xlu0 %v1938_v4, %s3131_s15  ;;  %2743 = vmatmul.mubr.msk.f32.vlgmr.msra.gmra.mrb[14].mxu1 %vm207_vm1, %v1938_v4 }
0x1574   :  { %1937 = vst.msk [vmem:[#allocation3 + $0x28] sm:$0xff] %vm358_vm6, %v1935_v0  ;;  %2986 = vmatpush1.bf16.msra.mxu1 %v3734_v15  ;;  %2318 = vmatprep.mubr.f32.mxu1 %v3130_v3 }
0x1575   :  { %2988 = vmatprep.subr.bf16.mxu1 %v3745_v12 }
0x1578   :  { %2990 = vmatpush1.bf16.msra.mxu1 %v3753_v22 }
0x1579   :  { %2992 = vmatprep.subr.bf16.mxu1 %v3763_v6 }
0x157c   :  { %2994 = vmatpush1.bf16.msra.mxu1 %v3771_v32 }
0x157d   :  { %2996 = vmatprep.subr.bf16.mxu1 %v3781_v17 }
0x1580   :  { %2998 = vmatpush1.bf16.msra.mxu1 %v3789_v28 }
0x15e5   :  { %v2064_v51 = vpop.permute.xlu0 %2063 }
0x1646   :  { %v2042_v19 = vpop.f32.mrb[14].mxu1 }
0x1647   :  { %v2043_v21 = vadd.f32 %v2042_v19, %v1966_v16  ;;  %v2044_v25 = vpop.f32.mrb[15].mxu1 }
0x1648   :  { %v2045_v18 = vadd.f32 %v2044_v25, %v1970_v23 }
0x1649   :  { %v2047_v29 = vadd.f32 %v2043_v21, %v1943_v7 }
0x164b   :  { %v2744_v13 = vmul.f32 -1.442695, %v2047_v29  ;;  %v2207_v29 = vld [vmem:[%s4249_s1 + $0x20] sm:$0xff] }
0x164c   :  { %vm2208_vm7 = vcmp.gt.f32.partialorder %v2207_v29, 0.0  ;;  %v2509_v29 = vld [vmem:[%s4251_s8 + $0x40] sm:$0xff] }
0x164d   :  { %3100 = vpow2.f32 %v2744_v13 }
0x1657   :  { %v3101_v35 = vpop.eup %3100 }
0x1658   :  { %v2051_v20 = vadd.f32 1.0, %v3101_v35 }
0x165a   :  { %3102 = vrcp.f32 %v2051_v20 }
0x1664   :  { %v3103_v39 = vpop.eup %3102 }
0x1665   :  { %v2054_v42 = vmul.f32 %v3103_v39, %v2045_v18  ;;  %v2057_v7 = vsub.f32 1.0, %v3103_v39  ;;  %v2066_v48 = vmul.f32 %v3103_v39, %v2064_v51 }
0x1667   :  { %v2055_v10 = vadd.f32 %v2054_v42, %v1944_v44 }
0x1669   :  { %3104 = vtanh.f32 %v2055_v10 }
0x1673   :  { %v3105_v47 = vpop.eup %3104 }
0x1674   :  { %2059 = vrot.lane.b32.xlu1 %v3105_v47, %s3131_s15 }
0x16e6   :  { %v2060_v46 = vpop.permute.xlu1 %2059 }
0x16e7   :  { %v2062_v49 = vmul.f32 %v2060_v46, %v2057_v7 }
0x16e9   :  { %v2067_v45 = vadd.f32 %v2066_v48, %v2062_v49 }
0x16eb   :  { %2071 = vrot.lane.b32.xlu1 %v2067_v45, %s3131_s15 }
0x175d   :  { %v2072_v53 = vpop.permute.xlu1 %2071 }
0x175e   :  { %v2074_v57 = vsel %vm2069_vm4, %v2072_v53, 0.0  ;;  %v2077_v58 = vsel %vm2069_vm4, %v2072_v53, %v1938_v4  ;;  %v2346_v53 = vld [vmem:[%s4249_s1 + $0x28] sm:$0xff] }
0x175f   :  { %2075 = vst.msk [vmem:[#allocation3 + $0x18] sm:$0xff] %vm356_vm5, %v2074_v57  ;;  %2202 = vrot.lane.b32.xlu1 %v2077_v58, %s3131_s15  ;;  %2745 = vmatmul.mubr.msk.f32.vlgmr.msra.gmra.mrb[40].mxu0 %vm207_vm1, %v2077_v58  ;;  %vm2347_vm8 = vcmp.gt.f32.partialorder %v2346_v53, 0.0 }
0x1760   :  { %2076 = vst.msk [vmem:[#allocation3 + $0x20] sm:$0xff] %vm358_vm6, %v2074_v57  ;;  %3002 = vmatpush1.bf16.msra.mxu0 %v3734_v15  ;;  %2457 = vmatprep.mubr.f32.mxu0 %v3130_v3  ;;  %v2105_v15 = vrot.slane %v2100_v59, %v3339_v41 }
0x1761   :  { %3004 = vmatprep.subr.bf16.mxu0 %v3745_v12 }
0x1764   :  { %3006 = vmatpush1.bf16.msra.mxu0 %v3753_v22 }
0x1765   :  { %3008 = vmatprep.subr.bf16.mxu0 %v3763_v6 }
0x1768   :  { %3010 = vmatpush1.bf16.msra.mxu0 %v3771_v32 }
0x1769   :  { %3012 = vmatprep.subr.bf16.mxu0 %v3781_v17  ;;  %v2109_v17 = vrot.slane %v2100_v59, %v3344_v43 }
0x176c   :  { %3014 = vmatpush1.bf16.msra.mxu0 %v3789_v28 }
0x17d1   :  { %v2203_v1 = vpop.permute.xlu1 %2202 }
0x1832   :  { %v2181_v30 = vpop.f32.mrb[40].mxu0 }
0x1833   :  { %v2182_v62 = vadd.f32 %v2181_v30, %v2105_v15  ;;  %v2183_v63 = vpop.f32.mrb[41].mxu0 }
0x1834   :  { %v2184_v28 = vadd.f32 %v2183_v63, %v2109_v17 }
0x1835   :  { %v2186_v12 = vadd.f32 %v2182_v62, %v2082_v11 }
0x1837   :  { %v2746_v22 = vmul.f32 -1.442695, %v2186_v12 }
0x1839   :  { %3106 = vpow2.f32 %v2746_v22 }
0x1843   :  { %v3107_v6 = vpop.eup %3106 }
0x1844   :  { %v2190_v32 = vadd.f32 1.0, %v3107_v6 }
0x1846   :  { %3108 = vrcp.f32 %v2190_v32 }
0x1850   :  { %v3109_v0 = vpop.eup %3108 }
0x1851   :  { %v2193_v4 = vmul.f32 %v3109_v0, %v2184_v28  ;;  %v2196_v60 = vsub.f32 1.0, %v3109_v0  ;;  %v2205_v19 = vmul.f32 %v3109_v0, %v2203_v1  ;;  %v2507_v1 = vld [vmem:[%s4251_s8 + $0x30] sm:$0xff] }
0x1853   :  { %v2194_v8 = vadd.f32 %v2193_v4, %v2083_v40  ;;  %v2239_v40 = vld [vmem:[%s4254_s9] sm:$0x3]  ;;  %v3015_v4 = vpack.c.bf16 %v2504_v37, %v2502_v50 }
0x1854   :  { %v2244_v35 = vrot.slane %v2239_v40, %v3339_v41 }
0x1855   :  { %3110 = vtanh.f32 %v2194_v8  ;;  %v2503_v8 = vld [vmem:[%s4251_s8 + $0x10] sm:$0xff]  ;;  %3016 = vmatprep.subr.bf16.mxu1 %v3015_v4 }
0x185f   :  { %v3111_v16 = vpop.eup %3110 }
0x1860   :  { %2198 = vrot.lane.b32.xlu0 %v3111_v16, %s3131_s15  ;;  %v3019_v16 = vpack.c.bf16 %v2508_v31, %v2506_v5 }
0x18d2   :  { %v2199_v11 = vpop.permute.xlu0 %2198 }
0x18d3   :  { %v2201_v21 = vmul.f32 %v2199_v11, %v2196_v60  ;;  %v2505_v60 = vld [vmem:[%s4251_s8 + $0x20] sm:$0xff]  ;;  %v2510_v11 = vld [vmem:[%s4251_s8 + $0x48] sm:$0xff] }
0x18d5   :  { %v2206_v25 = vadd.f32 %v2205_v19, %v2201_v21  ;;  %v2512_v19 = vld [vmem:[%s4251_s8 + $0x58] sm:$0xff]  ;;  %v3021_v21 = vpack.c.bf16 %v2507_v1, %v2505_v60 }
0x18d7   :  { %2210 = vrot.lane.b32.xlu0 %v2206_v25, %s3131_s15  ;;  %v3023_v25 = vpack.c.bf16 %v2512_v19, %v2510_v11 }
0x1949   :  { %v2211_v13 = vpop.permute.xlu0 %2210 }
0x194a   :  { %v2213_v33 = vsel %vm2208_vm7, %v2211_v13, 0.0  ;;  %v2216_v38 = vsel %vm2208_vm7, %v2211_v13, %v2077_v58  ;;  %v2511_v13 = vld [vmem:[%s4251_s8 + $0x50] sm:$0xff] }
0x194b   :  { %2214 = vst.msk [vmem:[#allocation3 + $0x20] sm:$0xff] %vm356_vm5, %v2213_v33  ;;  %2341 = vrot.lane.b32.xlu0 %v2216_v38, %s3131_s15  ;;  %2747 = vmatmul.mubr.msk.f32.vlgmr.msra.gmra.mrb[16].mxu1 %vm207_vm1, %v2216_v38 }
0x194c   :  { %2215 = vst.msk [vmem:[#allocation3 + $0x18] sm:$0xff] %vm358_vm6, %v2213_v33  ;;  %2596 = vmatprep.mubr.f32.mxu1 %v3130_v3  ;;  %v2248_v3 = vrot.slane %v2239_v40, %v3344_v43  ;;  %v2514_v33 = vld [vmem:[%s4251_s8 + $0x68] sm:$0xff] }
0x1953   :  { %v2645_v1 = vld [vmem:[#allocation3 + $0x18] sm:$0xff] }
0x19bd   :  { %v2342_v56 = vpop.permute.xlu0 %2341 }
0x1a1e   :  { %v2320_v20 = vpop.f32.mrb[16].mxu1 }
0x1a1f   :  { %v2321_v23 = vadd.f32 %v2320_v20, %v2244_v35  ;;  %v2322_v18 = vpop.f32.mrb[17].mxu1  ;;  %v3025_v35 = vpack.c.bf16 %v2511_v13, %v2509_v29 }
0x1a20   :  { %v2323_v47 = vadd.f32 %v2322_v18, %v2248_v3  ;;  %v2515_v18 = vld [vmem:[%s4251_s8 + $0x70] sm:$0xff] }
0x1a21   :  { %v2325_v39 = vadd.f32 %v2321_v23, %v2221_v14  ;;  %v2513_v23 = vld [vmem:[%s4251_s8 + $0x60] sm:$0xff] }
0x1a23   :  { %v2748_v42 = vmul.f32 -1.442695, %v2325_v39  ;;  %v3029_v39 = vpack.c.bf16 %v2515_v18, %v2513_v23 }
0x1a25   :  { %3112 = vpow2.f32 %v2748_v42 }
0x1a2f   :  { %v3113_v44 = vpop.eup %3112 }
0x1a30   :  { %v2329_v10 = vadd.f32 1.0, %v3113_v44 }
0x1a32   :  { %3114 = vrcp.f32 %v2329_v10 }
0x1a3c   :  { %v3115_v7 = vpop.eup %3114 }
0x1a3d   :  { %v2332_v51 = vmul.f32 %v3115_v7, %v2323_v47  ;;  %v2335_v55 = vsub.f32 1.0, %v3115_v7  ;;  %v2344_v49 = vmul.f32 %v3115_v7, %v2342_v56 }
0x1a3f   :  { %v2333_v46 = vadd.f32 %v2332_v51, %v2222_v24  ;;  %v2378_v24 = vld [vmem:[%s4254_s9] sm:$0x3]  ;;  %v2485_v51 = vld [vmem:[%s4249_s1 + $0x30] sm:$0xff] }
0x1a40   :  { %v2383_v58 = vrot.slane %v2378_v24, %v3339_v41  ;;  %v2387_v6 = vrot.slane %v2378_v24, %v3344_v43  ;;  %vm2486_vm9 = vcmp.gt.f32.partialorder %v2485_v51, 0.0 }
0x1a41   :  { %3116 = vtanh.f32 %v2333_v46 }
0x1a4b   :  { %v3117_v48 = vpop.eup %3116 }
0x1a4c   :  { %2337 = vrot.lane.b32.xlu1 %v3117_v48, %s3131_s15 }
0x1abe   :  { %v2338_v14 = vpop.permute.xlu1 %2337 }
0x1abf   :  { %v2340_v45 = vmul.f32 %v2338_v14, %v2335_v55  ;;  %v2646_v14 = vld [vmem:[#allocation3 + $0x20] sm:$0xff] }
0x1ac1   :  { %v2345_v26 = vadd.f32 %v2344_v49, %v2340_v45 }
0x1ac3   :  { %2349 = vrot.lane.b32.xlu1 %v2345_v26, %s3131_s15 }
0x1b35   :  { %v2350_v57 = vpop.permute.xlu1 %2349 }
0x1b36   :  { %v2352_v61 = vsel %vm2347_vm8, %v2350_v57, 0.0  ;;  %v4086_v36 = vsel %vm2347_vm8, %v2350_v57, %v2216_v38  ;;  %v2516_v38 = vld [vmem:[%s4251_s8 + $0x78] sm:$0xff] }
0x1b37   :  { %2353 = vst.msk [vmem:[#allocation3 + $0x28] sm:$0xff] %vm356_vm5, %v2352_v61  ;;  %2480 = vrot.lane.b32.xlu1 %v4086_v36, %s3131_s15  ;;  %2749 = vmatmul.mubr.msk.f32.vlgmr.msra.gmra.mrb[42].mxu0 %vm207_vm1, %v4086_v36  ;;  %v3027_v20 = vpack.c.bf16 %v2516_v38, %v2514_v33 }
0x1b38   :  { %2354 = vst.msk [vmem:[#allocation3 + $0x10] sm:$0xff] %vm358_vm6, %v2352_v61 }
0x1b3e   :  { %v2647_v52 = vld [vmem:[#allocation3 + $0x28] sm:$0xff] }
0x1b3f   :  { %v2644_v56 = vld [vmem:[#allocation3 + $0x10] sm:$0xff] }
0x1ba9   :  { %v2481_v44 = vpop.permute.xlu1 %2480 }
0x1c0a   :  { %v2459_v59 = vpop.f32.mrb[42].mxu0 }
0x1c0b   :  { %v2460_v15 = vadd.f32 %v2459_v59, %v2383_v58  ;;  %v2461_v30 = vpop.f32.mrb[43].mxu0  ;;  %v2517_v58 = vld [vmem:[%s4254_s9] sm:$0x3] }
0x1c0c   :  { %v2462_v32 = vadd.f32 %v2461_v30, %v2387_v6  ;;  %v2522_v59 = vrot.slane %v2517_v58, %v3339_v41 }
0x1c0d   :  { %v2464_v62 = vadd.f32 %v2460_v15, %v2360_v27  ;;  %v2501_v27 = vld [vmem:[%s4251_s8] sm:$0xff]  ;;  %s3132_s8 = smov 96   ;;  %v2495_v15 = vld [vmem:[#allocation2 + $0x70] sm:$0xff] }
0x1c0f   :  { %v2750_v63 = vmul.f32 -1.442695, %v2464_v62  ;;  %v2497_v62 = vld [vmem:[#allocation2] sm:$0xff] }
0x1c11   :  { %3118 = vpow2.f32 %v2750_v63 }
0x1c1b   :  { %v3119_v12 = vpop.eup %3118 }
0x1c1c   :  { %v2468_v22 = vadd.f32 1.0, %v3119_v12 }
0x1c1e   :  { %3120 = vrcp.f32 %v2468_v22  ;;  %v2499_v22 = vsel %vm3358_vm2, %v2495_v15, %v2497_v62 }
0x1c28   :  { %v3121_v17 = vpop.eup %3120 }
0x1c29   :  { %v2471_v28 = vmul.f32 %v3121_v17, %v2462_v32  ;;  %v2474_v42 = vsub.f32 1.0, %v3121_v17  ;;  %v2483_v3 = vmul.f32 %v3121_v17, %v2481_v44 }
0x1c2b   :  { %v2472_v0 = vadd.f32 %v2471_v28, %v2361_v9  ;;  %v3017_v9 = vpack.c.bf16 %v2503_v8, %v2501_v27  ;;  %v2498_v27 = vld [vmem:[#allocation2 + $0x8] sm:$0xff] }
0x1c2c   :  { %v2500_v4 = vsel %vm3408_vm3, %v3923_v54, %v2498_v27  ;;  %v2624_v54 = vld [vmem:[%s4249_s1 + $0x38] sm:$0xff] }
0x1c2d   :  { %3122 = vtanh.f32 %v2472_v0  ;;  %3018 = vmatpush1.bf16.msra.mxu1 %v3017_v9  ;;  %v2526_v0 = vrot.slane %v2517_v58, %v3344_v43 }
0x1c2e   :  { %3020 = vmatprep.subr.bf16.mxu1 %v3019_v16 }
0x1c31   :  { %3022 = vmatpush1.bf16.msra.mxu1 %v3021_v21 }
0x1c32   :  { %3024 = vmatprep.subr.bf16.mxu1 %v3023_v25 }
0x1c35   :  { %3026 = vmatpush1.bf16.msra.mxu1 %v3025_v35 }
0x1c36   :  { %3028 = vmatprep.subr.bf16.mxu1 %v3027_v20 }
0x1c37   :  { %v3123_v40 = vpop.eup %3122 }
0x1c38   :  { %2476 = vrot.lane.b32.xlu0 %v3123_v40, %s3131_s15 }
0x1c39   :  { %3030 = vmatpush1.bf16.msra.mxu1 %v3029_v39 }
0x1caa   :  { %v2477_v10 = vpop.permute.xlu0 %2476 }
0x1cab   :  { %v2479_v47 = vmul.f32 %v2477_v10, %v2474_v42 }
0x1cad   :  { %v2484_v7 = vadd.f32 %v2483_v3, %v2479_v47 }
0x1caf   :  { %2488 = vrot.lane.b32.xlu0 %v2484_v7, %s3131_s15 }
0x1d21   :  { %v2489_v46 = vpop.permute.xlu0 %2488 }
0x1d22   :  { %v2491_v48 = vsel %vm2486_vm9, %v2489_v46, 0.0  ;;  %v4163_v55 = vsel %vm2486_vm9, %v2489_v46, %v4086_v36 }
0x1d23   :  { %2492 = vst.msk [vmem:[#allocation3 + $0x30] sm:$0xff] %vm356_vm5, %v2491_v48  ;;  %2619 = vrot.lane.b32.xlu0 %v4163_v55, %s3131_s15  ;;  %2751 = vmatmul.mubr.msk.f32.vlgmr.msra.gmra.mrb[18].mxu1 %vm207_vm1, %v4163_v55  ;;  %vm2625_vm1 = vcmp.gt.f32.partialorder %v2624_v54, 0.0 }
0x1d24   :  { %2493 = vst.msk [vmem:[#allocation3 + $0x8] sm:$0xff] %vm358_vm6, %v2491_v48 }
0x1d27   :  { %2662 = vrot.lane.b32.xlu0 %v2644_v56, %s3132_s8 }
0x1d2a   :  { %v2648_v49 = vld [vmem:[#allocation3 + $0x30] sm:$0xff] }
0x1d2b   :  { %2666 = vrot.lane.b32.xlu0 %v2646_v14, %s3132_s8  ;;  %v2643_v43 = vld [vmem:[#allocation3 + $0x8] sm:$0xff] }
0x1d2f   :  { %2670 = vrot.lane.b32.xlu0 %v2648_v49, %s3132_s8 }
0x1d95   :  { %v2620_v45 = vpop.permute.xlu0 %2619 }
0x1d99   :  { %v2663_v26 = vpop.permute.xlu0 %2662 }
0x1d9a   :  { %v2684_v53 = vadd.f32 %v2663_v26, %v2644_v56 }
0x1d9c   :  { %2692 = vst.msk [vmem:[%s4255_s10 + $0x10] sm:$0xff] %vm356_vm5, %v2684_v53 }
0x1d9d   :  { %v2667_v57 = vpop.permute.xlu0 %2666 }
0x1d9e   :  { %v2686_v61 = vadd.f32 %v2667_v57, %v2646_v14 }
0x1da0   :  { %2694 = vst.msk [vmem:[%s4255_s10 + $0x20] sm:$0xff] %vm356_vm5, %v2686_v61 }
0x1da1   :  { %v2671_v36 = vpop.permute.xlu0 %2670 }
0x1da2   :  { %v2688_v24 = vadd.f32 %v2671_v36, %v2648_v49 }
0x1da4   :  { %2696 = vst.msk [vmem:[%s4255_s10 + $0x30] sm:$0xff] %vm356_vm5, %v2688_v24 }
0x1df6   :  { %v2598_v30 = vpop.f32.mrb[18].mxu1 }
0x1df7   :  { %v2599_v63 = vadd.f32 %v2598_v30, %v2522_v59  ;;  %v2600_v12 = vpop.f32.mrb[19].mxu1 }
0x1df8   :  { %v2601_v50 = vadd.f32 %v2600_v12, %v2526_v0 }
0x1df9   :  { %v2603_v6 = vadd.f32 %v2599_v63, %v2499_v22 }
0x1dfb   :  { %v2752_v32 = vmul.f32 -1.442695, %v2603_v6 }
0x1dfd   :  { %3124 = vpow2.f32 %v2752_v32 }
0x1e07   :  { %v3125_v17 = vpop.eup %3124 }
0x1e08   :  { %v2607_v28 = vadd.f32 1.0, %v3125_v17 }
0x1e0a   :  { %3126 = vrcp.f32 %v2607_v28 }
0x1e14   :  { %v3127_v37 = vpop.eup %3126 }
0x1e15   :  { %v2610_v41 = vmul.f32 %v3127_v37, %v2601_v50  ;;  %v2613_v5 = vsub.f32 1.0, %v3127_v37  ;;  %v2622_v9 = vmul.f32 %v3127_v37, %v2620_v45 }
0x1e17   :  { %v2611_v8 = vadd.f32 %v2610_v41, %v2500_v4 }
0x1e19   :  { %3128 = vtanh.f32 %v2611_v8 }
0x1e23   :  { %v3129_v2 = vpop.eup %3128 }
0x1e24   :  { %2615 = vrot.lane.b32.xlu1 %v3129_v2, %s3131_s15 }
0x1e96   :  { %v2616_v31 = vpop.permute.xlu1 %2615 }
0x1e97   :  { %v2618_v16 = vmul.f32 %v2616_v31, %v2613_v5 }
0x1e99   :  { %v2623_v60 = vadd.f32 %v2622_v9, %v2618_v16 }
0x1e9b   :  { %2627 = vrot.lane.b32.xlu1 %v2623_v60, %s3131_s15 }
0x1e9f   :  { %2660 = vrot.lane.b32.xlu1 %v2643_v43, %s3132_s8 }
0x1ea3   :  { %2664 = vrot.lane.b32.xlu1 %v2645_v1, %s3132_s8 }
0x1ea7   :  { %2668 = vrot.lane.b32.xlu1 %v2647_v52, %s3132_s8 }
0x1f0d   :  { %v2628_v11 = vpop.permute.xlu1 %2627 }
0x1f0e   :  { %v2630_v19 = vsel %vm2625_vm1, %v2628_v11, 0.0  ;;  %v2633_v21 = vsel %vm2625_vm1, %v2628_v11, %v4163_v55 }
0x1f0f   :  { %2631 = vst.msk [vmem:[#allocation3 + $0x38] sm:$0xff] %vm356_vm5, %v2630_v19  ;;  %2753 = vst.msk [vmem:[%s4252_s11 + $0x10] sm:$0xff] %vm356_vm5, %v2633_v21 }
0x1f10   :  { %2632 = vst.msk [vmem:[#allocation3] sm:$0xff] %vm358_vm6, %v2630_v19 }
0x1f11   :  { %v2661_v25 = vpop.permute.xlu1 %2660 }
0x1f12   :  { %v2683_v29 = vadd.f32 %v2661_v25, %v2643_v43 }
0x1f14   :  { %2691 = vst.msk [vmem:[%s4255_s10 + $0x8] sm:$0xff] %vm356_vm5, %v2683_v29 }
0x1f15   :  { %v2665_v13 = vpop.permute.xlu1 %2664 }
0x1f16   :  { %v2685_v33 = vadd.f32 %v2665_v13, %v2645_v1  ;;  %v2649_v38 = vld [vmem:[#allocation3 + $0x38] sm:$0xff] }
0x1f17   :  { %v2642_v40 = vld [vmem:[#allocation3] sm:$0xff]  ;;  %2672 = vrot.lane.b32.xlu1 %v2649_v38, %s3132_s8 }
0x1f18   :  { %2658 = vrot.lane.b32.xlu0 %v2642_v40, %s3132_s8  ;;  %2693 = vst.msk [vmem:[%s4255_s10 + $0x18] sm:$0xff] %vm356_vm5, %v2685_v33 }
0x1f19   :  { %v2669_v35 = vpop.permute.xlu1 %2668 }
0x1f1a   :  { %v2687_v20 = vadd.f32 %v2669_v35, %v2647_v52 }
0x1f1b   :  { %2637 = vrot.lane.b32.xlu1 %v2633_v21, %s3132_s8 }
0x1f1c   :  { %1335 = vrot.lane.b32.xlu0 %v3808_v34, %s3132_s8  ;;  %2695 = vst.msk [vmem:[%s4255_s10 + $0x28] sm:$0xff] %vm356_vm5, %v2687_v20 }
0x1f89   :  { %v2673_v23 = vpop.permute.xlu1 %2672 }
0x1f8a   :  { %v2659_v18 = vpop.permute.xlu0 %2658  ;;  %v2689_v39 = vadd.f32 %v2673_v23, %v2649_v38 }
0x1f8b   :  { %v2682_v42 = vadd.f32 %v2659_v18, %v2642_v40 }
0x1f8c   :  { %2697 = vst.msk [vmem:[%s4255_s10 + $0x38] sm:$0xff] %vm356_vm5, %v2689_v39 }
0x1f8d   :  { %2690 = vst.msk [vmem:[%s4255_s10] sm:$0xff] %vm356_vm5, %v2682_v42  ;;  %v2638_v34 = vpop.permute.xlu1 %2637 }
0x1f8e   :  { %v1336_v44 = vpop.permute.xlu0 %1335  ;;  %2754 = vst.msk [vmem:[%s4252_s11 + $0x18] sm:$0xff] %vm356_vm5, %v2638_v34 }
0x1f8f   :  { %2729 = vst.msk [vmem:[%s4252_s11 + $0x8] sm:$0xff] %vm356_vm5, %v1336_v44 }

</bundles_post_ra>
